<compile_context>
chip_gen: v7x
topology: tpu7x:2x2x1
jax: 0.10.0
libtpu: 0.0.40
codegen_flags: <defaults>
</compile_context>

<pallas_src>
import functools
import math

import jax
import jax.numpy as jnp
from jax.experimental import pallas as pl
from jax.experimental.pallas import tpu as pltpu


# ---------------------------------------------------------------------------
# Hardware-aware helpers
# ---------------------------------------------------------------------------
@functools.lru_cache(maxsize=1)
def _vmem_limit_bytes():
    # ~75% of physical VMEM: ~96 MiB on v5e/v6e (128 MiB parts), ~48 MiB on v7x (64 MiB).
    try:
        return int(pltpu.get_tpu_info().vmem_capacity_bytes * 3 // 4)
    except Exception:
        return 48 * 1024 * 1024


def _dtype_align(*dts):
    """Sublane alignment: 16 rows for any sub-32-bit operand, else 8."""
    return 16 if any(jnp.dtype(d).itemsize < 4 for d in dts) else 8


def _m_tile(M, target=512, align=8):
    """Row tile: multiple of `align` dividing M, <= target, and (when possible)
    leaving >= 2 grid blocks so v7x's two TensorCores both get work."""
    if M <= align:
        return M
    cap = min(target, M)
    if cap >= M:
        cap = max(align, (M // 2) // align * align)
    t = cap - cap % align
    while t >= align:
        if M % t == 0:
            return t
        t -= align
    return M


def _b_tile(B, target=8):
    """Attention batch tile: divides B, <= target, keeps >= 2 grid steps when B >= 2."""
    if B <= 1:
        return max(B, 1)
    cap = max(1, min(target, B // 2))
    for cand in range(cap, 0, -1):
        if B % cand == 0:
            return cand
    return 1


# ---------------------------------------------------------------------------
# Pallas kernels
# ---------------------------------------------------------------------------
def _linear_kernel(x_ref, w_ref, b_ref, o_ref, *, relu):
    # x: (tm, K); w: (K, N) bf16 resident in VMEM; b: (1, N) f32. f32 accumulation.
    acc = jnp.dot(x_ref[...].astype(jnp.bfloat16), w_ref[...],
                  preferred_element_type=jnp.float32)
    acc = acc + b_ref[...]
    if relu:
        acc = jnp.maximum(acc, 0.0)
    o_ref[...] = acc.astype(o_ref.dtype)


def linear_pallas(x, w, b, *, relu=False, out_dtype=jnp.float32, tm=512):
    """x: (M, K); w: (K, N) bf16 pre-transposed; b: (N,). Weight stays resident in VMEM."""
    M, K = x.shape
    K2, N = w.shape
    assert K2 == K
    tm = _m_tile(M, tm, _dtype_align(x.dtype, out_dtype))
    kernel = functools.partial(_linear_kernel, relu=relu)
    xb = jnp.dtype(x.dtype).itemsize
    ob = jnp.dtype(out_dtype).itemsize
    return pl.pallas_call(
        kernel,
        grid=(M // tm,),
        in_specs=[
            pl.BlockSpec((tm, K), lambda i: (i, 0)),
            pl.BlockSpec((K, N), lambda i: (0, 0)),   # full weight, VMEM-resident
            pl.BlockSpec((1, N), lambda i: (0, 0)),
        ],
        out_specs=pl.BlockSpec((tm, N), lambda i: (i, 0)),
        out_shape=jax.ShapeDtypeStruct((M, N), out_dtype),
        compiler_params=pltpu.CompilerParams(
            dimension_semantics=("parallel",),
            vmem_limit_bytes=_vmem_limit_bytes()),
        cost_estimate=pl.CostEstimate(
            flops=2 * M * N * K, transcendentals=0,
            bytes_accessed=xb * M * K + 2 * K * N + 4 * N + ob * M * N),
    )(x, w, b.reshape(1, N).astype(jnp.float32))


def _linear_res_ln_kernel(x_ref, w_ref, b_ref, res_ref, g_ref, beta_ref, o_ref, *, eps):
    # Fused (x @ w + b + residual) -> LayerNorm over the full feature dim N.
    h = jnp.dot(x_ref[...].astype(jnp.bfloat16), w_ref[...],
                preferred_element_type=jnp.float32)
    h = h + b_ref[...] + res_ref[...]
    mu = jnp.mean(h, axis=-1, keepdims=True)
    var = jnp.mean((h - mu) ** 2, axis=-1, keepdims=True)
    y = (h - mu) * jax.lax.rsqrt(var + eps)
    o_ref[...] = (y * g_ref[...] + beta_ref[...]).astype(o_ref.dtype)


def linear_residual_ln_pallas(x, w, b, res, gamma, beta, *, eps=1e-5, tm=512):
    """Fused (x @ w + b + res) + LayerNorm. w: (K, N) bf16; output (M, N) f32."""
    M, K = x.shape
    K2, N = w.shape
    assert K2 == K and res.shape == (M, N)
    tm = _m_tile(M, tm, _dtype_align(x.dtype))
    kernel = functools.partial(_linear_res_ln_kernel, eps=eps)
    xb = jnp.dtype(x.dtype).itemsize
    return pl.pallas_call(
        kernel,
        grid=(M // tm,),
        in_specs=[
            pl.BlockSpec((tm, K), lambda i: (i, 0)),
            pl.BlockSpec((K, N), lambda i: (0, 0)),   # full weight, VMEM-resident
            pl.BlockSpec((1, N), lambda i: (0, 0)),
            pl.BlockSpec((tm, N), lambda i: (i, 0)),
            pl.BlockSpec((1, N), lambda i: (0, 0)),
            pl.BlockSpec((1, N), lambda i: (0, 0)),
        ],
        out_specs=pl.BlockSpec((tm, N), lambda i: (i, 0)),
        out_shape=jax.ShapeDtypeStruct((M, N), jnp.float32),
        compiler_params=pltpu.CompilerParams(
            dimension_semantics=("parallel",),
            vmem_limit_bytes=_vmem_limit_bytes()),
        cost_estimate=pl.CostEstimate(
            flops=2 * M * N * K + 10 * M * N, transcendentals=M,
            bytes_accessed=xb * M * K + 2 * K * N + 4 * (2 * M * N + 3 * N)),
    )(x, w, b.reshape(1, N).astype(jnp.float32), res,
      gamma.reshape(1, N).astype(jnp.float32),
      beta.reshape(1, N).astype(jnp.float32))


def _attention_kernel(q_ref, k_ref, v_ref, bias_ref, o_ref, *, heads, scale):
    # q/k/v refs: (Bt, T, H, hd) bf16; bias: (Bt, 1, T) additive key-padding bias (f32).
    bias = bias_ref[...]
    for h in range(heads):                                    # static unroll, small H
        q = q_ref[:, :, h, :]                                 # (Bt, T, hd) bf16
        k = k_ref[:, :, h, :]
        v = v_ref[:, :, h, :]
        s = jnp.einsum('bqd,bkd->bqk', q, k,
                       preferred_element_type=jnp.float32)    # (Bt, T, T) f32
        s = s * scale + bias
        m = jnp.max(s, axis=-1, keepdims=True)
        p = jnp.exp(s - m)
        denom = jnp.sum(p, axis=-1, keepdims=True)
        p = p * pl.reciprocal(denom, approx=True)
        o = jnp.einsum('bqk,bkd->bqd', p.astype(jnp.bfloat16), v,
                       preferred_element_type=jnp.float32)    # (Bt, T, hd) f32
        o_ref[:, :, h, :] = o.astype(o_ref.dtype)             # hd-aligned store, no concat


def attention_pallas(qkv, *, batch, seq, heads, bias, scale):
    """qkv: (B*T, 3*D) bf16 packed [q|k|v]; bias: (B, 1, T) additive (-1e30 on padded keys)."""
    B, T = batch, seq
    D = qkv.shape[-1] // 3
    hd = D // heads
    qkv5 = qkv.reshape(B, T, 3, heads, hd)     # free, contiguous reshape (no split copies)
    Bt = _b_tile(B)

    def qkv_spec(idx):
        return pl.BlockSpec((Bt, T, None, heads, hd),
                            lambda b, idx=idx: (b, 0, idx, 0, 0))

    kernel = functools.partial(_attention_kernel, heads=heads, scale=scale)
    out = pl.pallas_call(
        kernel,
        grid=(B // Bt,),
        in_specs=[qkv_spec(0), qkv_spec(1), qkv_spec(2),
                  pl.BlockSpec((Bt, 1, T), lambda b: (b, 0, 0))],
        out_specs=pl.BlockSpec((Bt, T, heads, hd), lambda b: (b, 0, 0, 0)),
        out_shape=jax.ShapeDtypeStruct((B, T, heads, hd), jnp.float32),
        compiler_params=pltpu.CompilerParams(
            dimension_semantics=("parallel",),
            vmem_limit_bytes=_vmem_limit_bytes()),
        cost_estimate=pl.CostEstimate(
            flops=4 * B * heads * T * T * hd,
            transcendentals=B * heads * T * T,
            bytes_accessed=2 * 3 * B * T * D + 4 * (B * T + B * T * D)),
    )(qkv5, qkv5, qkv5, bias)
    return out.reshape(B, T, D)                # head order matches PyTorch MHA concat


# ---------------------------------------------------------------------------
# Model glue (plain JAX): parameters, gathers, tiny element-wise ops
# ---------------------------------------------------------------------------
def split_fraction(x, num_digits=3):
    comps = []
    for i in range(1, num_digits + 1):
        digit = jnp.floor(x * 10.0 ** i) - jnp.floor(x * 10.0 ** (i - 1)) * 10.0
        scaled = digit / 10.0 * 10.0 ** (i - 1)
        comps.append(scaled[..., None])
    return jnp.concatenate(comps, axis=-1)


def init_params(key, *, d_model, n_layers, feat_size, vocab, dff=2048,
                frac_hidden=64, num_digits=3):
    keys = iter(jax.random.split(key, 16 + 12 * n_layers))
    bf = jnp.bfloat16

    def w(shape, scale=0.02, dtype=jnp.float32):
        return (scale * jax.random.normal(next(keys), shape)).astype(dtype)

    params = {}
    # Embedder: synthetic mat2vec table (row 0 is the zero padding row); gather stays f32.
    tbl = w((vocab, feat_size), 1.0)
    params["cbfv"] = jnp.concatenate(
        [jnp.zeros((1, feat_size), jnp.float32), tbl], axis=0)
    # All matmul weights pre-transposed (in_features, out_features) and stored bf16.
    params["fc_mat2vec_w"] = w((feat_size, d_model), dtype=bf)
    params["fc_mat2vec_b"] = w((d_model,))
    params["emb_scaler"] = jnp.array([1.0], jnp.float32)
    # LearnableFractionalEncoder
    params["frac_w1"] = w((frac_hidden,))            # first layer has in_features=1
    params["frac_b1"] = w((frac_hidden,))
    # Second layer padded from (hidden, d_model-3) to (hidden, d_model) with exactly-zero
    # trailing columns -> lane-dense Pallas output; split digits get added there later.
    w2 = w((frac_hidden, d_model - num_digits))
    params["frac_w2"] = jnp.pad(w2, ((0, 0), (0, num_digits))).astype(bf)
    params["frac_b2"] = jnp.pad(w((d_model - num_digits,)), (0, num_digits))
    # TransformerEncoder layers (post-norm, relu, dim_feedforward=2048)
    layers = []
    for _ in range(n_layers):
        layers.append(dict(
            in_proj_w=w((d_model, 3 * d_model), dtype=bf),
            in_proj_b=w((3 * d_model,)),
            out_proj_w=w((d_model, d_model), dtype=bf),
            out_proj_b=w((d_model,)),
            ln1_g=jnp.ones((d_model,), jnp.float32),
            ln1_b=jnp.zeros((d_model,), jnp.float32),
            ff1_w=w((d_model, dff), dtype=bf),
            ff1_b=w((dff,)),
            ff2_w=w((dff, d_model), dtype=bf),
            ff2_b=w((d_model,)),
            ln2_g=jnp.ones((d_model,), jnp.float32),
            ln2_b=jnp.zeros((d_model,), jnp.float32),
        ))
    params["layers"] = layers
    return params


def transformer_encoder_layer(x, bias, p, *, heads):
    """Post-norm TransformerEncoderLayer (eval mode: dropout = identity)."""
    B, T, D = x.shape
    hd = D // heads
    x2 = x.reshape(B * T, D)

    # QKV projection emitted in bf16 (its only consumer is the attention matmuls).
    qkv = linear_pallas(x2, p["in_proj_w"], p["in_proj_b"],
                        out_dtype=jnp.bfloat16)                      # (B*T, 3D) bf16
    o = attention_pallas(qkv, batch=B, seq=T, heads=heads,
                         bias=bias, scale=1.0 / math.sqrt(hd))       # (B, T, D) f32

    # TODO(synk): nn.Dropout(p=0.1) treated as identity (eval-mode semantics).
    # Fused: out_proj + residual + LayerNorm1 in a single pallas_call.
    h = linear_residual_ln_pallas(o.reshape(B * T, D), p["out_proj_w"],
                                  p["out_proj_b"], x2, p["ln1_g"], p["ln1_b"])

    # ff1 emitted in bf16 (only consumer is ff2's matmul); bias+ReLU fused.
    ff = linear_pallas(h, p["ff1_w"], p["ff1_b"], relu=True,
                       out_dtype=jnp.bfloat16)                       # (B*T, dff) bf16
    # Fused: ff2 + residual + LayerNorm2 in a single pallas_call.
    h = linear_residual_ln_pallas(ff, p["ff2_w"], p["ff2_b"],
                                  h, p["ln2_g"], p["ln2_b"])
    return h.reshape(B, T, D)


def encoder_forward(params, src, frac, *, d_model, heads,
                    fractional=False, attention=True, num_digits=3):
    B, T = src.shape
    # Embedder: embedding gather (JAX glue) + fc_mat2vec linear (Pallas)
    mat2vec_emb = params["cbfv"][src]                                 # (B, T, F)
    x = linear_pallas(mat2vec_emb.reshape(B * T, -1),
                      params["fc_mat2vec_w"], params["fc_mat2vec_b"]
                      ).reshape(B, T, d_model)
    x = x * (2.0 ** params["emb_scaler"][0])

    # mask = frac frac^T with nonzeros set to 1
    mask = frac[:, :, None] * frac[:, None, :]                        # (B, T, T)
    mask = jnp.where(mask != 0, 1.0, mask)
    src_key_padding_mask = mask[:, 0] != 1                            # (B, T), True = pad

    # LearnableFractionalEncoder: first layer (K=1) is an outer product -> VPU math.
    frac_flat = frac.reshape(B * T, 1)
    h = jnp.maximum(frac_flat * params["frac_w1"][None, :]
                    + params["frac_b1"][None, :], 0.0)                # (B*T, hidden)
    mlp_emb = linear_pallas(h, params["frac_w2"], params["frac_b2"]
                            ).reshape(B, T, d_model)                  # lane-dense, last 3 cols == 0
    split_emb = split_fraction(frac, num_digits=num_digits)           # (B, T, 3)
    frac_emb = mlp_emb + jnp.pad(split_emb,
                                 ((0, 0), (0, 0), (d_model - num_digits, 0)))

    if attention:
        xs = x + frac_emb
        # (PyTorch transposes to (T, B, D); the math is identical in batch-major layout.)
        # NOTE: a fully-masked row (frac[b,0]==0) softmaxes to uniform weights here,
        # whereas PyTorch MHA would yield NaN; both get zeroed by hmask below.
        bias = jnp.where(src_key_padding_mask,
                         jnp.float32(-1e30), jnp.float32(0.0)).reshape(B, 1, T)
        for lp in params["layers"]:
            xs = transformer_encoder_layer(xs, bias, lp, heads=heads)
        x = xs

    if fractional:
        x = x * frac[:, :, None]

    hmask = mask[:, :, 0:1]                                           # (B, T, 1)
    x = jnp.where(hmask == 0, 0.0, x)
    return x


# ---------------------------------------------------------------------------
# Demo
# ---------------------------------------------------------------------------
if __name__ == "__main__":
    d_model, n_layers, heads = 32, 2, 4
    feat_size, vocab = 48, 10
    B, T = 2, 8

    key = jax.random.PRNGKey(0)
    kp, kf = jax.random.split(key)

    params = init_params(kp, d_model=d_model, n_layers=n_layers,
                         feat_size=feat_size, vocab=vocab)

    # element ids (0 = padding) and matching fractional amounts
    src = jnp.array([[3, 5, 7, 2, 0, 0, 0, 0],
                     [1, 9, 4, 0, 0, 0, 0, 0]], dtype=jnp.int32)
    frac_vals = jax.random.uniform(kf, (B, T), minval=0.05, maxval=0.95,
                                   dtype=jnp.float32)
    frac = jnp.where(src > 0, frac_vals, 0.0)

    fwd = jax.jit(functools.partial(encoder_forward, d_model=d_model, heads=heads,
                                    fractional=False, attention=True))
    out = jax.block_until_ready(fwd(params, src, frac))
    assert out.shape == (B, T, d_model) and out.dtype == jnp.float32
    assert bool(jnp.all(jnp.isfinite(out)))
    print("KERNEL_OK")
</pallas_src>

<mosaic_0001>
module attributes {stable_mosaic.version = 11 : i64} {
  func.func @_linear_kernel(%arg0: i32, %arg1: memref<8x48xf32, #tpu.memory_space<vmem>>, %arg2: memref<48x32xbf16, #tpu.memory_space<vmem>>, %arg3: memref<1x32xf32, #tpu.memory_space<vmem>>, %arg4: memref<8x32xf32, #tpu.memory_space<vmem>>) attributes {dimension_semantics = [#tpu.dimension_semantics<parallel>], iteration_bounds = array<i64: 2>, scalar_prefetch = 0 : i64, scratch_operands = 0 : i64, tpu.core_type = #tpu.core_type<tc>, window_params = [{transform_indices = @transform_0, window_bounds = array<i64: 8, 48>}, {pipeline_mode = #tpu.pipeline_mode<synchronous>, transform_indices = @transform_1, window_bounds = array<i64: 48, 32>}, {pipeline_mode = #tpu.pipeline_mode<synchronous>, transform_indices = @transform_2, window_bounds = array<i64: 1, 32>}, {transform_indices = @transform_3, window_bounds = array<i64: 8, 32>}]} {
    %c0 = arith.constant 0 : index
    %c0_0 = arith.constant 0 : index
    %0 = vector.load %arg1[%c0, %c0_0] : memref<8x48xf32, #tpu.memory_space<vmem>>, vector<8x48xf32>
    %1 = arith.truncf %0 : vector<8x48xf32> to vector<8x48xbf16>
    %c0_1 = arith.constant 0 : index
    %c0_2 = arith.constant 0 : index
    %2 = vector.load %arg2[%c0_1, %c0_2] : memref<48x32xbf16, #tpu.memory_space<vmem>>, vector<48x32xbf16>
    %cst = arith.constant dense<0.000000e+00> : vector<8x32xf32>
    %3 = tpu.matmul %1, %2, %cst {dimension_numbers = #tpu.dot_dimension_numbers<[1], [0], [0], [1], [0, 0, 1, 1], [], []>} : vector<8x48xbf16>, vector<48x32xbf16>, vector<8x32xf32> -> vector<8x32xf32>
    %c0_3 = arith.constant 0 : index
    %c0_4 = arith.constant 0 : index
    %4 = vector.load %arg3[%c0_3, %c0_4] : memref<1x32xf32, #tpu.memory_space<vmem>>, vector<1x32xf32>
    %5 = vector.broadcast %4 : vector<1x32xf32> to vector<8x32xf32>
    %6 = arith.addf %3, %5 : vector<8x32xf32>
    %c0_5 = arith.constant 0 : index
    %c0_6 = arith.constant 0 : index
    %7 = vector.load %arg4[%c0_5, %c0_6] : memref<8x32xf32, #tpu.memory_space<vmem>>, vector<8x32xf32>
    tpu.vector_store %arg4[%c0_5, %c0_6], %6 {strides = array<i32>} : memref<8x32xf32, #tpu.memory_space<vmem>>, vector<8x32xf32>,
    return
  }
  func.func @transform_0(%arg0: i32) -> (i32, i32) {
    %c0_i32 = arith.constant 0 : i32
    %c0_i32_0 = arith.constant 0 : i32
    return %arg0, %c0_i32 : i32, i32
  }
  func.func @transform_1(%arg0: i32) -> (i32, i32) {
    %c0_i32 = arith.constant 0 : i32
    %c0_i32_0 = arith.constant 0 : i32
    %c0_i32_1 = arith.constant 0 : i32
    return %c0_i32, %c0_i32_0 : i32, i32
  }
  func.func @transform_2(%arg0: i32) -> (i32, i32) {
    %c0_i32 = arith.constant 0 : i32
    %c0_i32_0 = arith.constant 0 : i32
    %c0_i32_1 = arith.constant 0 : i32
    return %c0_i32, %c0_i32_0 : i32, i32
  }
  func.func @transform_3(%arg0: i32) -> (i32, i32) {
    %c0_i32 = arith.constant 0 : i32
    %c0_i32_0 = arith.constant 0 : i32
    return %arg0, %c0_i32 : i32, i32
  }
}

module attributes {stable_mosaic.version = 11 : i64} {
  func.func @_linear_kernel(%arg0: i32, %arg1: memref<8x64xf32, #tpu.memory_space<vmem>>, %arg2: memref<64x32xbf16, #tpu.memory_space<vmem>>, %arg3: memref<1x32xf32, #tpu.memory_space<vmem>>, %arg4: memref<8x32xf32, #tpu.memory_space<vmem>>) attributes {dimension_semantics = [#tpu.dimension_semantics<parallel>], iteration_bounds = array<i64: 2>, scalar_prefetch = 0 : i64, scratch_operands = 0 : i64, tpu.core_type = #tpu.core_type<tc>, window_params = [{transform_indices = @transform_0, window_bounds = array<i64: 8, 64>}, {pipeline_mode = #tpu.pipeline_mode<synchronous>, transform_indices = @transform_1, window_bounds = array<i64: 64, 32>}, {pipeline_mode = #tpu.pipeline_mode<synchronous>, transform_indices = @transform_2, window_bounds = array<i64: 1, 32>}, {transform_indices = @transform_3, window_bounds = array<i64: 8, 32>}]} {
    %c0 = arith.constant 0 : index
    %c0_0 = arith.constant 0 : index
    %0 = vector.load %arg1[%c0, %c0_0] : memref<8x64xf32, #tpu.memory_space<vmem>>, vector<8x64xf32>
    %1 = arith.truncf %0 : vector<8x64xf32> to vector<8x64xbf16>
    %c0_1 = arith.constant 0 : index
    %c0_2 = arith.constant 0 : index
    %2 = vector.load %arg2[%c0_1, %c0_2] : memref<64x32xbf16, #tpu.memory_space<vmem>>, vector<64x32xbf16>
    %cst = arith.constant dense<0.000000e+00> : vector<8x32xf32>
    %3 = tpu.matmul %1, %2, %cst {dimension_numbers = #tpu.dot_dimension_numbers<[1], [0], [0], [1], [0, 0, 1, 1], [], []>} : vector<8x64xbf16>, vector<64x32xbf16>, vector<8x32xf32> -> vector<8x32xf32>
    %c0_3 = arith.constant 0 : index
    %c0_4 = arith.constant 0 : index
    %4 = vector.load %arg3[%c0_3, %c0_4] : memref<1x32xf32, #tpu.memory_space<vmem>>, vector<1x32xf32>
    %5 = vector.broadcast %4 : vector<1x32xf32> to vector<8x32xf32>
    %6 = arith.addf %3, %5 : vector<8x32xf32>
    %c0_5 = arith.constant 0 : index
    %c0_6 = arith.constant 0 : index
    %7 = vector.load %arg4[%c0_5, %c0_6] : memref<8x32xf32, #tpu.memory_space<vmem>>, vector<8x32xf32>
    tpu.vector_store %arg4[%c0_5, %c0_6], %6 {strides = array<i32>} : memref<8x32xf32, #tpu.memory_space<vmem>>, vector<8x32xf32>,
    return
  }
  func.func @transform_0(%arg0: i32) -> (i32, i32) {
    %c0_i32 = arith.constant 0 : i32
    %c0_i32_0 = arith.constant 0 : i32
    return %arg0, %c0_i32 : i32, i32
  }
  func.func @transform_1(%arg0: i32) -> (i32, i32) {
    %c0_i32 = arith.constant 0 : i32
    %c0_i32_0 = arith.constant 0 : i32
    %c0_i32_1 = arith.constant 0 : i32
    return %c0_i32, %c0_i32_0 : i32, i32
  }
  func.func @transform_2(%arg0: i32) -> (i32, i32) {
    %c0_i32 = arith.constant 0 : i32
    %c0_i32_0 = arith.constant 0 : i32
    %c0_i32_1 = arith.constant 0 : i32
    return %c0_i32, %c0_i32_0 : i32, i32
  }
  func.func @transform_3(%arg0: i32) -> (i32, i32) {
    %c0_i32 = arith.constant 0 : i32
    %c0_i32_0 = arith.constant 0 : i32
    return %arg0, %c0_i32 : i32, i32
  }
}

module attributes {stable_mosaic.version = 11 : i64} {
  func.func @_linear_kernel(%arg0: i32, %arg1: memref<16x32xf32, #tpu.memory_space<vmem>>, %arg2: memref<32x96xbf16, #tpu.memory_space<vmem>>, %arg3: memref<1x96xf32, #tpu.memory_space<vmem>>, %arg4: memref<16x96xbf16, #tpu.memory_space<vmem>>) attributes {dimension_semantics = [#tpu.dimension_semantics<parallel>], iteration_bounds = array<i64: 1>, scalar_prefetch = 0 : i64, scratch_operands = 0 : i64, tpu.core_type = #tpu.core_type<tc>, window_params = [{transform_indices = @transform_0, window_bounds = array<i64: 16, 32>}, {pipeline_mode = #tpu.pipeline_mode<synchronous>, transform_indices = @transform_1, window_bounds = array<i64: 32, 96>}, {pipeline_mode = #tpu.pipeline_mode<synchronous>, transform_indices = @transform_2, window_bounds = array<i64: 1, 96>}, {transform_indices = @transform_3, window_bounds = array<i64: 16, 96>}]} {
    %c0 = arith.constant 0 : index
    %c0_0 = arith.constant 0 : index
    %0 = vector.load %arg1[%c0, %c0_0] : memref<16x32xf32, #tpu.memory_space<vmem>>, vector<16x32xf32>
    %1 = arith.truncf %0 : vector<16x32xf32> to vector<16x32xbf16>
    %c0_1 = arith.constant 0 : index
    %c0_2 = arith.constant 0 : index
    %2 = vector.load %arg2[%c0_1, %c0_2] : memref<32x96xbf16, #tpu.memory_space<vmem>>, vector<32x96xbf16>
    %cst = arith.constant dense<0.000000e+00> : vector<16x96xf32>
    %3 = tpu.matmul %1, %2, %cst {dimension_numbers = #tpu.dot_dimension_numbers<[1], [0], [0], [1], [0, 0, 1, 1], [], []>} : vector<16x32xbf16>, vector<32x96xbf16>, vector<16x96xf32> -> vector<16x96xf32>
    %c0_3 = arith.constant 0 : index
    %c0_4 = arith.constant 0 : index
    %4 = vector.load %arg3[%c0_3, %c0_4] : memref<1x96xf32, #tpu.memory_space<vmem>>, vector<1x96xf32>
    %5 = vector.broadcast %4 : vector<1x96xf32> to vector<16x96xf32>
    %6 = arith.addf %3, %5 : vector<16x96xf32>
    %7 = arith.truncf %6 : vector<16x96xf32> to vector<16x96xbf16>
    %c0_5 = arith.constant 0 : index
    %c0_6 = arith.constant 0 : index
    %8 = vector.load %arg4[%c0_5, %c0_6] : memref<16x96xbf16, #tpu.memory_space<vmem>>, vector<16x96xbf16>
    tpu.vector_store %arg4[%c0_5, %c0_6], %7 {strides = array<i32>} : memref<16x96xbf16, #tpu.memory_space<vmem>>, vector<16x96xbf16>,
    return
  }
  func.func @transform_0(%arg0: i32) -> (i32, i32) {
    %c0_i32 = arith.constant 0 : i32
    %c0_i32_0 = arith.constant 0 : i32
    return %arg0, %c0_i32 : i32, i32
  }
  func.func @transform_1(%arg0: i32) -> (i32, i32) {
    %c0_i32 = arith.constant 0 : i32
    %c0_i32_0 = arith.constant 0 : i32
    %c0_i32_1 = arith.constant 0 : i32
    return %c0_i32, %c0_i32_0 : i32, i32
  }
  func.func @transform_2(%arg0: i32) -> (i32, i32) {
    %c0_i32 = arith.constant 0 : i32
    %c0_i32_0 = arith.constant 0 : i32
    %c0_i32_1 = arith.constant 0 : i32
    return %c0_i32, %c0_i32_0 : i32, i32
  }
  func.func @transform_3(%arg0: i32) -> (i32, i32) {
    %c0_i32 = arith.constant 0 : i32
    %c0_i32_0 = arith.constant 0 : i32
    return %arg0, %c0_i32 : i32, i32
  }
}

module attributes {stable_mosaic.version = 11 : i64} {
  func.func @_attention_kernel(%arg0: i32, %arg1: memref<1x8x1x4x8xbf16, #tpu.memory_space<vmem>>, %arg2: memref<1x8x1x4x8xbf16, #tpu.memory_space<vmem>>, %arg3: memref<1x8x1x4x8xbf16, #tpu.memory_space<vmem>>, %arg4: memref<1x1x8xf32, #tpu.memory_space<vmem>>, %arg5: memref<1x8x4x8xf32, #tpu.memory_space<vmem>>) attributes {dimension_semantics = [#tpu.dimension_semantics<parallel>], iteration_bounds = array<i64: 2>, scalar_prefetch = 0 : i64, scratch_operands = 0 : i64, tpu.core_type = #tpu.core_type<tc>, window_params = [{transform_indices = @transform_0, window_bounds = array<i64: 1, 8, 1, 4, 8>}, {transform_indices = @transform_1, window_bounds = array<i64: 1, 8, 1, 4, 8>}, {transform_indices = @transform_2, window_bounds = array<i64: 1, 8, 1, 4, 8>}, {transform_indices = @transform_3, window_bounds = array<i64: 1, 1, 8>}, {transform_indices = @transform_4, window_bounds = array<i64: 1, 8, 4, 8>}]} {
    %c0 = arith.constant 0 : index
    %c0_0 = arith.constant 0 : index
    %c0_1 = arith.constant 0 : index
    %0 = vector.load %arg4[%c0, %c0_0, %c0_1] : memref<1x1x8xf32, #tpu.memory_space<vmem>>, vector<1x1x8xf32>
    %c0_2 = arith.constant 0 : index
    %c0_3 = arith.constant 0 : index
    %c0_4 = arith.constant 0 : index
    %c0_5 = arith.constant 0 : index
    %c0_6 = arith.constant 0 : index
    %1 = vector.load %arg1[%c0_2, %c0_3, %c0_4, %c0_5, %c0_6] : memref<1x8x1x4x8xbf16, #tpu.memory_space<vmem>>, vector<1x8x1x1x8xbf16>
    %2 = vector.shape_cast %1 : vector<1x8x1x1x8xbf16> to vector<1x8x8xbf16>
    %c0_7 = arith.constant 0 : index
    %c0_8 = arith.constant 0 : index
    %c0_9 = arith.constant 0 : index
    %c0_10 = arith.constant 0 : index
    %c0_11 = arith.constant 0 : index
    %3 = vector.load %arg2[%c0_7, %c0_8, %c0_9, %c0_10, %c0_11] : memref<1x8x1x4x8xbf16, #tpu.memory_space<vmem>>, vector<1x8x1x1x8xbf16>
    %4 = vector.shape_cast %3 : vector<1x8x1x1x8xbf16> to vector<1x8x8xbf16>
    %c0_12 = arith.constant 0 : index
    %c0_13 = arith.constant 0 : index
    %c0_14 = arith.constant 0 : index
    %c0_15 = arith.constant 0 : index
    %c0_16 = arith.constant 0 : index
    %5 = vector.load %arg3[%c0_12, %c0_13, %c0_14, %c0_15, %c0_16] : memref<1x8x1x4x8xbf16, #tpu.memory_space<vmem>>, vector<1x8x1x1x8xbf16>
    %6 = vector.shape_cast %5 : vector<1x8x1x1x8xbf16> to vector<1x8x8xbf16>
    "tpu.trace_start"() <{level = 10 : i32, message = "bqd,bkd->bqk"}> : () -> ()
    %cst = arith.constant dense<0.000000e+00> : vector<1x8x8xf32>
    %7 = tpu.matmul %2, %4, %cst {dimension_numbers = #tpu.dot_dimension_numbers<[2], [2], [1], [1], [0, 0, 0, 1, 1, 1], [0], [0]>} : vector<1x8x8xbf16>, vector<1x8x8xbf16>, vector<1x8x8xf32> -> vector<1x8x8xf32>
    "tpu.trace_stop"() : () -> ()
    %cst_17 = arith.constant 0.353553385 : f32
    %8 = vector.broadcast %cst_17 : f32 to vector<1x8x8xf32>
    %9 = arith.mulf %7, %8 : vector<1x8x8xf32>
    %10 = vector.broadcast %0 : vector<1x1x8xf32> to vector<1x8x8xf32>
    %11 = arith.addf %9, %10 : vector<1x8x8xf32>
    %cst_18 = arith.constant dense<0xFF800000> : vector<1x8xf32>
    %12 = vector.multi_reduction <maximumf>, %11, %cst_18 [2] : vector<1x8x8xf32> to vector<1x8xf32>
    %13 = vector.shape_cast %12 : vector<1x8xf32> to vector<1x8x1xf32>
    %14 = vector.broadcast %13 : vector<1x8x1xf32> to vector<1x8x8xf32>
    %15 = arith.subf %11, %14 : vector<1x8x8xf32>
    %16 = math.exp %15 : vector<1x8x8xf32>
    %cst_19 = arith.constant dense<0.000000e+00> : vector<1x8xf32>
    %17 = vector.multi_reduction <add>, %16, %cst_19 [2] : vector<1x8x8xf32> to vector<1x8xf32>
    %18 = vector.shape_cast %17 : vector<1x8xf32> to vector<1x8x1xf32>
    %19 = tpu.reciprocal %18 {approx = true} : vector<1x8x1xf32> -> vector<1x8x1xf32>
    %20 = vector.broadcast %19 : vector<1x8x1xf32> to vector<1x8x8xf32>
    %21 = arith.mulf %16, %20 : vector<1x8x8xf32>
    %22 = arith.truncf %21 : vector<1x8x8xf32> to vector<1x8x8xbf16>
    "tpu.trace_start"() <{level = 10 : i32, message = "bqk,bkd->bqd"}> : () -> ()
    %cst_20 = arith.constant dense<0.000000e+00> : vector<1x8x8xf32>
    %23 = tpu.matmul %22, %6, %cst_20 {dimension_numbers = #tpu.dot_dimension_numbers<[2], [1], [1], [2], [0, 0, 0, 1, 1, 2], [0], [0]>} : vector<1x8x8xbf16>, vector<1x8x8xbf16>, vector<1x8x8xf32> -> vector<1x8x8xf32>
    "tpu.trace_stop"() : () -> ()
    %c0_21 = arith.constant 0 : index
    %c0_22 = arith.constant 0 : index
    %c0_23 = arith.constant 0 : index
    %c0_24 = arith.constant 0 : index
    %24 = vector.load %arg5[%c0_21, %c0_22, %c0_23, %c0_24] : memref<1x8x4x8xf32, #tpu.memory_space<vmem>>, vector<1x8x1x8xf32>
    %25 = vector.shape_cast %24 : vector<1x8x1x8xf32> to vector<1x8x8xf32>
    %26 = vector.shape_cast %23 : vector<1x8x8xf32> to vector<1x8x1x8xf32>
    tpu.vector_store %arg5[%c0_21, %c0_22, %c0_23, %c0_24], %26 {strides = array<i32>} : memref<1x8x4x8xf32, #tpu.memory_space<vmem>>, vector<1x8x1x8xf32>,
    %c0_25 = arith.constant 0 : index
    %c0_26 = arith.constant 0 : index
    %c0_27 = arith.constant 0 : index
    %c1 = arith.constant 1 : index
    %c0_28 = arith.constant 0 : index
    %27 = vector.load %arg1[%c0_25, %c0_26, %c0_27, %c1, %c0_28] : memref<1x8x1x4x8xbf16, #tpu.memory_space<vmem>>, vector<1x8x1x1x8xbf16>
    %28 = vector.shape_cast %27 : vector<1x8x1x1x8xbf16> to vector<1x8x8xbf16>
    %c0_29 = arith.constant 0 : index
    %c0_30 = arith.constant 0 : index
    %c0_31 = arith.constant 0 : index
    %c1_32 = arith.constant 1 : index
    %c0_33 = arith.constant 0 : index
    %29 = vector.load %arg2[%c0_29, %c0_30, %c0_31, %c1_32, %c0_33] : memref<1x8x1x4x8xbf16, #tpu.memory_space<vmem>>, vector<1x8x1x1x8xbf16>
    %30 = vector.shape_cast %29 : vector<1x8x1x1x8xbf16> to vector<1x8x8xbf16>
    %c0_34 = arith.constant 0 : index
    %c0_35 = arith.constant 0 : index
    %c0_36 = arith.constant 0 : index
    %c1_37 = arith.constant 1 : index
    %c0_38 = arith.constant 0 : index
    %31 = vector.load %arg3[%c0_34, %c0_35, %c0_36, %c1_37, %c0_38] : memref<1x8x1x4x8xbf16, #tpu.memory_space<vmem>>, vector<1x8x1x1x8xbf16>
    %32 = vector.shape_cast %31 : vector<1x8x1x1x8xbf16> to vector<1x8x8xbf16>
    "tpu.trace_start"() <{level = 10 : i32, message = "bqd,bkd->bqk"}> : () -> ()
    %cst_39 = arith.constant dense<0.000000e+00> : vector<1x8x8xf32>
    %33 = tpu.matmul %28, %30, %cst_39 {dimension_numbers = #tpu.dot_dimension_numbers<[2], [2], [1], [1], [0, 0, 0, 1, 1, 1], [0], [0]>} : vector<1x8x8xbf16>, vector<1x8x8xbf16>, vector<1x8x8xf32> -> vector<1x8x8xf32>
    "tpu.trace_stop"() : () -> ()
    %cst_40 = arith.constant 0.353553385 : f32
    %34 = vector.broadcast %cst_40 : f32 to vector<1x8x8xf32>
    %35 = arith.mulf %33, %34 : vector<1x8x8xf32>
    %36 = vector.broadcast %0 : vector<1x1x8xf32> to vector<1x8x8xf32>
    %37 = arith.addf %35, %36 : vector<1x8x8xf32>
    %cst_41 = arith.constant dense<0xFF800000> : vector<1x8xf32>
    %38 = vector.multi_reduction <maximumf>, %37, %cst_41 [2] : vector<1x8x8xf32> to vector<1x8xf32>
    %39 = vector.shape_cast %38 : vector<1x8xf32> to vector<1x8x1xf32>
    %40 = vector.broadcast %39 : vector<1x8x1xf32> to vector<1x8x8xf32>
    %41 = arith.subf %37, %40 : vector<1x8x8xf32>
    %42 = math.exp %41 : vector<1x8x8xf32>
    %cst_42 = arith.constant dense<0.000000e+00> : vector<1x8xf32>
    %43 = vector.multi_reduction <add>, %42, %cst_42 [2] : vector<1x8x8xf32> to vector<1x8xf32>
    %44 = vector.shape_cast %43 : vector<1x8xf32> to vector<1x8x1xf32>
    %45 = tpu.reciprocal %44 {approx = true} : vector<1x8x1xf32> -> vector<1x8x1xf32>
    %46 = vector.broadcast %45 : vector<1x8x1xf32> to vector<1x8x8xf32>
    %47 = arith.mulf %42, %46 : vector<1x8x8xf32>
    %48 = arith.truncf %47 : vector<1x8x8xf32> to vector<1x8x8xbf16>
    "tpu.trace_start"() <{level = 10 : i32, message = "bqk,bkd->bqd"}> : () -> ()
    %cst_43 = arith.constant dense<0.000000e+00> : vector<1x8x8xf32>
    %49 = tpu.matmul %48, %32, %cst_43 {dimension_numbers = #tpu.dot_dimension_numbers<[2], [1], [1], [2], [0, 0, 0, 1, 1, 2], [0], [0]>} : vector<1x8x8xbf16>, vector<1x8x8xbf16>, vector<1x8x8xf32> -> vector<1x8x8xf32>
    "tpu.trace_stop"() : () -> ()
    %c0_44 = arith.constant 0 : index
    %c0_45 = arith.constant 0 : index
    %c1_46 = arith.constant 1 : index
    %c0_47 = arith.constant 0 : index
    %50 = vector.load %arg5[%c0_44, %c0_45, %c1_46, %c0_47] : memref<1x8x4x8xf32, #tpu.memory_space<vmem>>, vector<1x8x1x8xf32>
    %51 = vector.shape_cast %50 : vector<1x8x1x8xf32> to vector<1x8x8xf32>
    %52 = vector.shape_cast %49 : vector<1x8x8xf32> to vector<1x8x1x8xf32>
    tpu.vector_store %arg5[%c0_44, %c0_45, %c1_46, %c0_47], %52 {strides = array<i32>} : memref<1x8x4x8xf32, #tpu.memory_space<vmem>>, vector<1x8x1x8xf32>,
    %c0_48 = arith.constant 0 : index
    %c0_49 = arith.constant 0 : index
    %c0_50 = arith.constant 0 : index
    %c2 = arith.constant 2 : index
    %c0_51 = arith.constant 0 : index
    %53 = vector.load %arg1[%c0_48, %c0_49, %c0_50, %c2, %c0_51] : memref<1x8x1x4x8xbf16, #tpu.memory_space<vmem>>, vector<1x8x1x1x8xbf16>
    %54 = vector.shape_cast %53 : vector<1x8x1x1x8xbf16> to vector<1x8x8xbf16>
    %c0_52 = arith.constant 0 : index
    %c0_53 = arith.constant 0 : index
    %c0_54 = arith.constant 0 : index
    %c2_55 = arith.constant 2 : index
    %c0_56 = arith.constant 0 : index
    %55 = vector.load %arg2[%c0_52, %c0_53, %c0_54, %c2_55, %c0_56] : memref<1x8x1x4x8xbf16, #tpu.memory_space<vmem>>, vector<1x8x1x1x8xbf16>
    %56 = vector.shape_cast %55 : vector<1x8x1x1x8xbf16> to vector<1x8x8xbf16>
    %c0_57 = arith.constant 0 : index
    %c0_58 = arith.constant 0 : index
    %c0_59 = arith.constant 0 : index
    %c2_60 = arith.constant 2 : index
    %c0_61 = arith.constant 0 : index
    %57 = vector.load %arg3[%c0_57, %c0_58, %c0_59, %c2_60, %c0_61] : memref<1x8x1x4x8xbf16, #tpu.memory_space<vmem>>, vector<1x8x1x1x8xbf16>
    %58 = vector.shape_cast %57 : vector<1x8x1x1x8xbf16> to vector<1x8x8xbf16>
    "tpu.trace_start"() <{level = 10 : i32, message = "bqd,bkd->bqk"}> : () -> ()
    %cst_62 = arith.constant dense<0.000000e+00> : vector<1x8x8xf32>
    %59 = tpu.matmul %54, %56, %cst_62 {dimension_numbers = #tpu.dot_dimension_numbers<[2], [2], [1], [1], [0, 0, 0, 1, 1, 1], [0], [0]>} : vector<1x8x8xbf16>, vector<1x8x8xbf16>, vector<1x8x8xf32> -> vector<1x8x8xf32>
    "tpu.trace_stop"() : () -> ()
    %cst_63 = arith.constant 0.353553385 : f32
    %60 = vector.broadcast %cst_63 : f32 to vector<1x8x8xf32>
    %61 = arith.mulf %59, %60 : vector<1x8x8xf32>
    %62 = vector.broadcast %0 : vector<1x1x8xf32> to vector<1x8x8xf32>
    %63 = arith.addf %61, %62 : vector<1x8x8xf32>
    %cst_64 = arith.constant dense<0xFF800000> : vector<1x8xf32>
    %64 = vector.multi_reduction <maximumf>, %63, %cst_64 [2] : vector<1x8x8xf32> to vector<1x8xf32>
    %65 = vector.shape_cast %64 : vector<1x8xf32> to vector<1x8x1xf32>
    %66 = vector.broadcast %65 : vector<1x8x1xf32> to vector<1x8x8xf32>
    %67 = arith.subf %63, %66 : vector<1x8x8xf32>
    %68 = math.exp %67 : vector<1x8x8xf32>
    %cst_65 = arith.constant dense<0.000000e+00> : vector<1x8xf32>
    %69 = vector.multi_reduction <add>, %68, %cst_65 [2] : vector<1x8x8xf32> to vector<1x8xf32>
    %70 = vector.shape_cast %69 : vector<1x8xf32> to vector<1x8x1xf32>
    %71 = tpu.reciprocal %70 {approx = true} : vector<1x8x1xf32> -> vector<1x8x1xf32>
    %72 = vector.broadcast %71 : vector<1x8x1xf32> to vector<1x8x8xf32>
    %73 = arith.mulf %68, %72 : vector<1x8x8xf32>
    %74 = arith.truncf %73 : vector<1x8x8xf32> to vector<1x8x8xbf16>
    "tpu.trace_start"() <{level = 10 : i32, message = "bqk,bkd->bqd"}> : () -> ()
    %cst_66 = arith.constant dense<0.000000e+00> : vector<1x8x8xf32>
    %75 = tpu.matmul %74, %58, %cst_66 {dimension_numbers = #tpu.dot_dimension_numbers<[2], [1], [1], [2], [0, 0, 0, 1, 1, 2], [0], [0]>} : vector<1x8x8xbf16>, vector<1x8x8xbf16>, vector<1x8x8xf32> -> vector<1x8x8xf32>
    "tpu.trace_stop"() : () -> ()
    %c0_67 = arith.constant 0 : index
    %c0_68 = arith.constant 0 : index
    %c2_69 = arith.constant 2 : index
    %c0_70 = arith.constant 0 : index
    %76 = vector.load %arg5[%c0_67, %c0_68, %c2_69, %c0_70] : memref<1x8x4x8xf32, #tpu.memory_space<vmem>>, vector<1x8x1x8xf32>
    %77 = vector.shape_cast %76 : vector<1x8x1x8xf32> to vector<1x8x8xf32>
    %78 = vector.shape_cast %75 : vector<1x8x8xf32> to vector<1x8x1x8xf32>
    tpu.vector_store %arg5[%c0_67, %c0_68, %c2_69, %c0_70], %78 {strides = array<i32>} : memref<1x8x4x8xf32, #tpu.memory_space<vmem>>, vector<1x8x1x8xf32>,
    %c0_71 = arith.constant 0 : index
    %c0_72 = arith.constant 0 : index
    %c0_73 = arith.constant 0 : index
    %c3 = arith.constant 3 : index
    %c0_74 = arith.constant 0 : index
    %79 = vector.load %arg1[%c0_71, %c0_72, %c0_73, %c3, %c0_74] : memref<1x8x1x4x8xbf16, #tpu.memory_space<vmem>>, vector<1x8x1x1x8xbf16>
    %80 = vector.shape_cast %79 : vector<1x8x1x1x8xbf16> to vector<1x8x8xbf16>
    %c0_75 = arith.constant 0 : index
    %c0_76 = arith.constant 0 : index
    %c0_77 = arith.constant 0 : index
    %c3_78 = arith.constant 3 : index
    %c0_79 = arith.constant 0 : index
    %81 = vector.load %arg2[%c0_75, %c0_76, %c0_77, %c3_78, %c0_79] : memref<1x8x1x4x8xbf16, #tpu.memory_space<vmem>>, vector<1x8x1x1x8xbf16>
    %82 = vector.shape_cast %81 : vector<1x8x1x1x8xbf16> to vector<1x8x8xbf16>
    %c0_80 = arith.constant 0 : index
    %c0_81 = arith.constant 0 : index
    %c0_82 = arith.constant 0 : index
    %c3_83 = arith.constant 3 : index
    %c0_84 = arith.constant 0 : index
    %83 = vector.load %arg3[%c0_80, %c0_81, %c0_82, %c3_83, %c0_84] : memref<1x8x1x4x8xbf16, #tpu.memory_space<vmem>>, vector<1x8x1x1x8xbf16>
    %84 = vector.shape_cast %83 : vector<1x8x1x1x8xbf16> to vector<1x8x8xbf16>
    "tpu.trace_start"() <{level = 10 : i32, message = "bqd,bkd->bqk"}> : () -> ()
    %cst_85 = arith.constant dense<0.000000e+00> : vector<1x8x8xf32>
    %85 = tpu.matmul %80, %82, %cst_85 {dimension_numbers = #tpu.dot_dimension_numbers<[2], [2], [1], [1], [0, 0, 0, 1, 1, 1], [0], [0]>} : vector<1x8x8xbf16>, vector<1x8x8xbf16>, vector<1x8x8xf32> -> vector<1x8x8xf32>
    "tpu.trace_stop"() : () -> ()
    %cst_86 = arith.constant 0.353553385 : f32
    %86 = vector.broadcast %cst_86 : f32 to vector<1x8x8xf32>
    %87 = arith.mulf %85, %86 : vector<1x8x8xf32>
    %88 = vector.broadcast %0 : vector<1x1x8xf32> to vector<1x8x8xf32>
    %89 = arith.addf %87, %88 : vector<1x8x8xf32>
    %cst_87 = arith.constant dense<0xFF800000> : vector<1x8xf32>
    %90 = vector.multi_reduction <maximumf>, %89, %cst_87 [2] : vector<1x8x8xf32> to vector<1x8xf32>
    %91 = vector.shape_cast %90 : vector<1x8xf32> to vector<1x8x1xf32>
    %92 = vector.broadcast %91 : vector<1x8x1xf32> to vector<1x8x8xf32>
    %93 = arith.subf %89, %92 : vector<1x8x8xf32>
    %94 = math.exp %93 : vector<1x8x8xf32>
    %cst_88 = arith.constant dense<0.000000e+00> : vector<1x8xf32>
    %95 = vector.multi_reduction <add>, %94, %cst_88 [2] : vector<1x8x8xf32> to vector<1x8xf32>
    %96 = vector.shape_cast %95 : vector<1x8xf32> to vector<1x8x1xf32>
    %97 = tpu.reciprocal %96 {approx = true} : vector<1x8x1xf32> -> vector<1x8x1xf32>
    %98 = vector.broadcast %97 : vector<1x8x1xf32> to vector<1x8x8xf32>
    %99 = arith.mulf %94, %98 : vector<1x8x8xf32>
    %100 = arith.truncf %99 : vector<1x8x8xf32> to vector<1x8x8xbf16>
    "tpu.trace_start"() <{level = 10 : i32, message = "bqk,bkd->bqd"}> : () -> ()
    %cst_89 = arith.constant dense<0.000000e+00> : vector<1x8x8xf32>
    %101 = tpu.matmul %100, %84, %cst_89 {dimension_numbers = #tpu.dot_dimension_numbers<[2], [1], [1], [2], [0, 0, 0, 1, 1, 2], [0], [0]>} : vector<1x8x8xbf16>, vector<1x8x8xbf16>, vector<1x8x8xf32> -> vector<1x8x8xf32>
    "tpu.trace_stop"() : () -> ()
    %c0_90 = arith.constant 0 : index
    %c0_91 = arith.constant 0 : index
    %c3_92 = arith.constant 3 : index
    %c0_93 = arith.constant 0 : index
    %102 = vector.load %arg5[%c0_90, %c0_91, %c3_92, %c0_93] : memref<1x8x4x8xf32, #tpu.memory_space<vmem>>, vector<1x8x1x8xf32>
    %103 = vector.shape_cast %102 : vector<1x8x1x8xf32> to vector<1x8x8xf32>
    %104 = vector.shape_cast %101 : vector<1x8x8xf32> to vector<1x8x1x8xf32>
    tpu.vector_store %arg5[%c0_90, %c0_91, %c3_92, %c0_93], %104 {strides = array<i32>} : memref<1x8x4x8xf32, #tpu.memory_space<vmem>>, vector<1x8x1x8xf32>,
    return
  }
  func.func @transform_0(%arg0: i32) -> (i32, i32, i32, i32, i32) {
    %c0_i32 = arith.constant 0 : i32
    %c0_i32_0 = arith.constant 0 : i32
    %c0_i32_1 = arith.constant 0 : i32
    %c0_i32_2 = arith.constant 0 : i32
    %c0_i32_3 = arith.constant 0 : i32
    return %arg0, %c0_i32, %c0_i32_0, %c0_i32_1, %c0_i32_2 : i32, i32, i32, i32, i32
  }
  func.func @transform_1(%arg0: i32) -> (i32, i32, i32, i32, i32) {
    %c0_i32 = arith.constant 0 : i32
    %c1_i32 = arith.constant 1 : i32
    %c0_i32_0 = arith.constant 0 : i32
    %c0_i32_1 = arith.constant 0 : i32
    %c0_i32_2 = arith.constant 0 : i32
    return %arg0, %c0_i32, %c1_i32, %c0_i32_0, %c0_i32_1 : i32, i32, i32, i32, i32
  }
  func.func @transform_2(%arg0: i32) -> (i32, i32, i32, i32, i32) {
    %c0_i32 = arith.constant 0 : i32
    %c2_i32 = arith.constant 2 : i32
    %c0_i32_0 = arith.constant 0 : i32
    %c0_i32_1 = arith.constant 0 : i32
    %c0_i32_2 = arith.constant 0 : i32
    return %arg0, %c0_i32, %c2_i32, %c0_i32_0, %c0_i32_1 : i32, i32, i32, i32, i32
  }
  func.func @transform_3(%arg0: i32) -> (i32, i32, i32) {
    %c0_i32 = arith.constant 0 : i32
    %c0_i32_0 = arith.constant 0 : i32
    %c0_i32_1 = arith.constant 0 : i32
    return %arg0, %c0_i32, %c0_i32_0 : i32, i32, i32
  }
  func.func @transform_4(%arg0: i32) -> (i32, i32, i32, i32) {
    %c0_i32 = arith.constant 0 : i32
    %c0_i32_0 = arith.constant 0 : i32
    %c0_i32_1 = arith.constant 0 : i32
    %c0_i32_2 = arith.constant 0 : i32
    return %arg0, %c0_i32, %c0_i32_0, %c0_i32_1 : i32, i32, i32, i32
  }
}

module attributes {stable_mosaic.version = 11 : i64} {
  func.func @_linear_res_ln_kernel(%arg0: i32, %arg1: memref<8x32xf32, #tpu.memory_space<vmem>>, %arg2: memref<32x32xbf16, #tpu.memory_space<vmem>>, %arg3: memref<1x32xf32, #tpu.memory_space<vmem>>, %arg4: memref<8x32xf32, #tpu.memory_space<vmem>>, %arg5: memref<1x32xf32, #tpu.memory_space<vmem>>, %arg6: memref<1x32xf32, #tpu.memory_space<vmem>>, %arg7: memref<8x32xf32, #tpu.memory_space<vmem>>) attributes {dimension_semantics = [#tpu.dimension_semantics<parallel>], iteration_bounds = array<i64: 2>, scalar_prefetch = 0 : i64, scratch_operands = 0 : i64, tpu.core_type = #tpu.core_type<tc>, window_params = [{transform_indices = @transform_0, window_bounds = array<i64: 8, 32>}, {pipeline_mode = #tpu.pipeline_mode<synchronous>, transform_indices = @transform_1, window_bounds = array<i64: 32, 32>}, {pipeline_mode = #tpu.pipeline_mode<synchronous>, transform_indices = @transform_2, window_bounds = array<i64: 1, 32>}, {transform_indices = @transform_3, window_bounds = array<i64: 8, 32>}, {pipeline_mode = #tpu.pipeline_mode<synchronous>, transform_indices = @transform_4, window_bounds = array<i64: 1, 32>}, {pipeline_mode = #tpu.pipeline_mode<synchronous>, transform_indices = @transform_5, window_bounds = array<i64: 1, 32>}, {transform_indices = @transform_6, window_bounds = array<i64: 8, 32>}]} {
    %c0 = arith.constant 0 : index
    %c0_0 = arith.constant 0 : index
    %0 = vector.load %arg1[%c0, %c0_0] : memref<8x32xf32, #tpu.memory_space<vmem>>, vector<8x32xf32>
    %1 = arith.truncf %0 : vector<8x32xf32> to vector<8x32xbf16>
    %c0_1 = arith.constant 0 : index
    %c0_2 = arith.constant 0 : index
    %2 = vector.load %arg2[%c0_1, %c0_2] : memref<32x32xbf16, #tpu.memory_space<vmem>>, vector<32x32xbf16>
    %cst = arith.constant dense<0.000000e+00> : vector<8x32xf32>
    %3 = tpu.matmul %1, %2, %cst {dimension_numbers = #tpu.dot_dimension_numbers<[1], [0], [0], [1], [0, 0, 1, 1], [], []>} : vector<8x32xbf16>, vector<32x32xbf16>, vector<8x32xf32> -> vector<8x32xf32>
    %c0_3 = arith.constant 0 : index
    %c0_4 = arith.constant 0 : index
    %4 = vector.load %arg3[%c0_3, %c0_4] : memref<1x32xf32, #tpu.memory_space<vmem>>, vector<1x32xf32>
    %5 = vector.broadcast %4 : vector<1x32xf32> to vector<8x32xf32>
    %6 = arith.addf %3, %5 : vector<8x32xf32>
    %c0_5 = arith.constant 0 : index
    %c0_6 = arith.constant 0 : index
    %7 = vector.load %arg4[%c0_5, %c0_6] : memref<8x32xf32, #tpu.memory_space<vmem>>, vector<8x32xf32>
    %8 = arith.addf %6, %7 : vector<8x32xf32>
    %cst_7 = arith.constant dense<0.000000e+00> : vector<8xf32>
    %9 = vector.multi_reduction <add>, %8, %cst_7 [1] : vector<8x32xf32> to vector<8xf32>
    %10 = vector.shape_cast %9 : vector<8xf32> to vector<8x1xf32>
    %cst_8 = arith.constant 3.200000e+01 : f32
    %11 = vector.broadcast %cst_8 : f32 to vector<8x1xf32>
    %12 = arith.divf %10, %11 : vector<8x1xf32>
    %13 = vector.broadcast %12 : vector<8x1xf32> to vector<8x32xf32>
    %14 = arith.subf %8, %13 : vector<8x32xf32>
    %15 = arith.mulf %14, %14 : vector<8x32xf32>
    %cst_9 = arith.constant dense<0.000000e+00> : vector<8xf32>
    %16 = vector.multi_reduction <add>, %15, %cst_9 [1] : vector<8x32xf32> to vector<8xf32>
    %17 = vector.shape_cast %16 : vector<8xf32> to vector<8x1xf32>
    %cst_10 = arith.constant 3.200000e+01 : f32
    %18 = vector.broadcast %cst_10 : f32 to vector<8x1xf32>
    %19 = arith.divf %17, %18 : vector<8x1xf32>
    %20 = vector.broadcast %12 : vector<8x1xf32> to vector<8x32xf32>
    %21 = arith.subf %8, %20 : vector<8x32xf32>
    %cst_11 = arith.constant 9.99999974E-6 : f32
    %22 = vector.broadcast %cst_11 : f32 to vector<8x1xf32>
    %23 = arith.addf %19, %22 : vector<8x1xf32>
    %24 = math.rsqrt %23 : vector<8x1xf32>
    %25 = vector.broadcast %24 : vector<8x1xf32> to vector<8x32xf32>
    %26 = arith.mulf %21, %25 : vector<8x32xf32>
    %c0_12 = arith.constant 0 : index
    %c0_13 = arith.constant 0 : index
    %27 = vector.load %arg5[%c0_12, %c0_13] : memref<1x32xf32, #tpu.memory_space<vmem>>, vector<1x32xf32>
    %28 = vector.broadcast %27 : vector<1x32xf32> to vector<8x32xf32>
    %29 = arith.mulf %26, %28 : vector<8x32xf32>
    %c0_14 = arith.constant 0 : index
    %c0_15 = arith.constant 0 : index
    %30 = vector.load %arg6[%c0_14, %c0_15] : memref<1x32xf32, #tpu.memory_space<vmem>>, vector<1x32xf32>
    %31 = vector.broadcast %30 : vector<1x32xf32> to vector<8x32xf32>
    %32 = arith.addf %29, %31 : vector<8x32xf32>
    %c0_16 = arith.constant 0 : index
    %c0_17 = arith.constant 0 : index
    %33 = vector.load %arg7[%c0_16, %c0_17] : memref<8x32xf32, #tpu.memory_space<vmem>>, vector<8x32xf32>
    tpu.vector_store %arg7[%c0_16, %c0_17], %32 {strides = array<i32>} : memref<8x32xf32, #tpu.memory_space<vmem>>, vector<8x32xf32>,
    return
  }
  func.func @transform_0(%arg0: i32) -> (i32, i32) {
    %c0_i32 = arith.constant 0 : i32
    %c0_i32_0 = arith.constant 0 : i32
    return %arg0, %c0_i32 : i32, i32
  }
  func.func @transform_1(%arg0: i32) -> (i32, i32) {
    %c0_i32 = arith.constant 0 : i32
    %c0_i32_0 = arith.constant 0 : i32
    %c0_i32_1 = arith.constant 0 : i32
    return %c0_i32, %c0_i32_0 : i32, i32
  }
  func.func @transform_2(%arg0: i32) -> (i32, i32) {
    %c0_i32 = arith.constant 0 : i32
    %c0_i32_0 = arith.constant 0 : i32
    %c0_i32_1 = arith.constant 0 : i32
    return %c0_i32, %c0_i32_0 : i32, i32
  }
  func.func @transform_3(%arg0: i32) -> (i32, i32) {
    %c0_i32 = arith.constant 0 : i32
    %c0_i32_0 = arith.constant 0 : i32
    return %arg0, %c0_i32 : i32, i32
  }
  func.func @transform_4(%arg0: i32) -> (i32, i32) {
    %c0_i32 = arith.constant 0 : i32
    %c0_i32_0 = arith.constant 0 : i32
    %c0_i32_1 = arith.constant 0 : i32
    return %c0_i32, %c0_i32_0 : i32, i32
  }
  func.func @transform_5(%arg0: i32) -> (i32, i32) {
    %c0_i32 = arith.constant 0 : i32
    %c0_i32_0 = arith.constant 0 : i32
    %c0_i32_1 = arith.constant 0 : i32
    return %c0_i32, %c0_i32_0 : i32, i32
  }
  func.func @transform_6(%arg0: i32) -> (i32, i32) {
    %c0_i32 = arith.constant 0 : i32
    %c0_i32_0 = arith.constant 0 : i32
    return %arg0, %c0_i32 : i32, i32
  }
}

module attributes {stable_mosaic.version = 11 : i64} {
  func.func @_linear_kernel(%arg0: i32, %arg1: memref<16x32xf32, #tpu.memory_space<vmem>>, %arg2: memref<32x2048xbf16, #tpu.memory_space<vmem>>, %arg3: memref<1x2048xf32, #tpu.memory_space<vmem>>, %arg4: memref<16x2048xbf16, #tpu.memory_space<vmem>>) attributes {dimension_semantics = [#tpu.dimension_semantics<parallel>], iteration_bounds = array<i64: 1>, scalar_prefetch = 0 : i64, scratch_operands = 0 : i64, tpu.core_type = #tpu.core_type<tc>, window_params = [{transform_indices = @transform_0, window_bounds = array<i64: 16, 32>}, {pipeline_mode = #tpu.pipeline_mode<synchronous>, transform_indices = @transform_1, window_bounds = array<i64: 32, 2048>}, {pipeline_mode = #tpu.pipeline_mode<synchronous>, transform_indices = @transform_2, window_bounds = array<i64: 1, 2048>}, {transform_indices = @transform_3, window_bounds = array<i64: 16, 2048>}]} {
    %c0 = arith.constant 0 : index
    %c0_0 = arith.constant 0 : index
    %0 = vector.load %arg1[%c0, %c0_0] : memref<16x32xf32, #tpu.memory_space<vmem>>, vector<16x32xf32>
    %1 = arith.truncf %0 : vector<16x32xf32> to vector<16x32xbf16>
    %c0_1 = arith.constant 0 : index
    %c0_2 = arith.constant 0 : index
    %2 = vector.load %arg2[%c0_1, %c0_2] : memref<32x2048xbf16, #tpu.memory_space<vmem>>, vector<32x2048xbf16>
    %cst = arith.constant dense<0.000000e+00> : vector<16x2048xf32>
    %3 = tpu.matmul %1, %2, %cst {dimension_numbers = #tpu.dot_dimension_numbers<[1], [0], [0], [1], [0, 0, 1, 1], [], []>} : vector<16x32xbf16>, vector<32x2048xbf16>, vector<16x2048xf32> -> vector<16x2048xf32>
    %c0_3 = arith.constant 0 : index
    %c0_4 = arith.constant 0 : index
    %4 = vector.load %arg3[%c0_3, %c0_4] : memref<1x2048xf32, #tpu.memory_space<vmem>>, vector<1x2048xf32>
    %5 = vector.broadcast %4 : vector<1x2048xf32> to vector<16x2048xf32>
    %6 = arith.addf %3, %5 : vector<16x2048xf32>
    %cst_5 = arith.constant 0.000000e+00 : f32
    %7 = vector.broadcast %cst_5 : f32 to vector<16x2048xf32>
    %8 = arith.maximumf %6, %7 : vector<16x2048xf32>
    %9 = arith.truncf %8 : vector<16x2048xf32> to vector<16x2048xbf16>
    %c0_6 = arith.constant 0 : index
    %c0_7 = arith.constant 0 : index
    %10 = vector.load %arg4[%c0_6, %c0_7] : memref<16x2048xbf16, #tpu.memory_space<vmem>>, vector<16x2048xbf16>
    tpu.vector_store %arg4[%c0_6, %c0_7], %9 {strides = array<i32>} : memref<16x2048xbf16, #tpu.memory_space<vmem>>, vector<16x2048xbf16>,
    return
  }
  func.func @transform_0(%arg0: i32) -> (i32, i32) {
    %c0_i32 = arith.constant 0 : i32
    %c0_i32_0 = arith.constant 0 : i32
    return %arg0, %c0_i32 : i32, i32
  }
  func.func @transform_1(%arg0: i32) -> (i32, i32) {
    %c0_i32 = arith.constant 0 : i32
    %c0_i32_0 = arith.constant 0 : i32
    %c0_i32_1 = arith.constant 0 : i32
    return %c0_i32, %c0_i32_0 : i32, i32
  }
  func.func @transform_2(%arg0: i32) -> (i32, i32) {
    %c0_i32 = arith.constant 0 : i32
    %c0_i32_0 = arith.constant 0 : i32
    %c0_i32_1 = arith.constant 0 : i32
    return %c0_i32, %c0_i32_0 : i32, i32
  }
  func.func @transform_3(%arg0: i32) -> (i32, i32) {
    %c0_i32 = arith.constant 0 : i32
    %c0_i32_0 = arith.constant 0 : i32
    return %arg0, %c0_i32 : i32, i32
  }
}

module attributes {stable_mosaic.version = 11 : i64} {
  func.func @_linear_res_ln_kernel(%arg0: i32, %arg1: memref<16x2048xbf16, #tpu.memory_space<vmem>>, %arg2: memref<2048x32xbf16, #tpu.memory_space<vmem>>, %arg3: memref<1x32xf32, #tpu.memory_space<vmem>>, %arg4: memref<16x32xf32, #tpu.memory_space<vmem>>, %arg5: memref<1x32xf32, #tpu.memory_space<vmem>>, %arg6: memref<1x32xf32, #tpu.memory_space<vmem>>, %arg7: memref<16x32xf32, #tpu.memory_space<vmem>>) attributes {dimension_semantics = [#tpu.dimension_semantics<parallel>], iteration_bounds = array<i64: 1>, scalar_prefetch = 0 : i64, scratch_operands = 0 : i64, tpu.core_type = #tpu.core_type<tc>, window_params = [{transform_indices = @transform_0, window_bounds = array<i64: 16, 2048>}, {pipeline_mode = #tpu.pipeline_mode<synchronous>, transform_indices = @transform_1, window_bounds = array<i64: 2048, 32>}, {pipeline_mode = #tpu.pipeline_mode<synchronous>, transform_indices = @transform_2, window_bounds = array<i64: 1, 32>}, {transform_indices = @transform_3, window_bounds = array<i64: 16, 32>}, {pipeline_mode = #tpu.pipeline_mode<synchronous>, transform_indices = @transform_4, window_bounds = array<i64: 1, 32>}, {pipeline_mode = #tpu.pipeline_mode<synchronous>, transform_indices = @transform_5, window_bounds = array<i64: 1, 32>}, {transform_indices = @transform_6, window_bounds = array<i64: 16, 32>}]} {
    %c0 = arith.constant 0 : index
    %c0_0 = arith.constant 0 : index
    %0 = vector.load %arg1[%c0, %c0_0] : memref<16x2048xbf16, #tpu.memory_space<vmem>>, vector<16x2048xbf16>
    %c0_1 = arith.constant 0 : index
    %c0_2 = arith.constant 0 : index
    %1 = vector.load %arg2[%c0_1, %c0_2] : memref<2048x32xbf16, #tpu.memory_space<vmem>>, vector<2048x32xbf16>
    %cst = arith.constant dense<0.000000e+00> : vector<16x32xf32>
    %2 = tpu.matmul %0, %1, %cst {dimension_numbers = #tpu.dot_dimension_numbers<[1], [0], [0], [1], [0, 0, 1, 1], [], []>} : vector<16x2048xbf16>, vector<2048x32xbf16>, vector<16x32xf32> -> vector<16x32xf32>
    %c0_3 = arith.constant 0 : index
    %c0_4 = arith.constant 0 : index
    %3 = vector.load %arg3[%c0_3, %c0_4] : memref<1x32xf32, #tpu.memory_space<vmem>>, vector<1x32xf32>
    %4 = vector.broadcast %3 : vector<1x32xf32> to vector<16x32xf32>
    %5 = arith.addf %2, %4 : vector<16x32xf32>
    %c0_5 = arith.constant 0 : index
    %c0_6 = arith.constant 0 : index
    %6 = vector.load %arg4[%c0_5, %c0_6] : memref<16x32xf32, #tpu.memory_space<vmem>>, vector<16x32xf32>
    %7 = arith.addf %5, %6 : vector<16x32xf32>
    %cst_7 = arith.constant dense<0.000000e+00> : vector<16xf32>
    %8 = vector.multi_reduction <add>, %7, %cst_7 [1] : vector<16x32xf32> to vector<16xf32>
    %9 = vector.shape_cast %8 : vector<16xf32> to vector<16x1xf32>
    %cst_8 = arith.constant 3.200000e+01 : f32
    %10 = vector.broadcast %cst_8 : f32 to vector<16x1xf32>
    %11 = arith.divf %9, %10 : vector<16x1xf32>
    %12 = vector.broadcast %11 : vector<16x1xf32> to vector<16x32xf32>
    %13 = arith.subf %7, %12 : vector<16x32xf32>
    %14 = arith.mulf %13, %13 : vector<16x32xf32>
    %cst_9 = arith.constant dense<0.000000e+00> : vector<16xf32>
    %15 = vector.multi_reduction <add>, %14, %cst_9 [1] : vector<16x32xf32> to vector<16xf32>
    %16 = vector.shape_cast %15 : vector<16xf32> to vector<16x1xf32>
    %cst_10 = arith.constant 3.200000e+01 : f32
    %17 = vector.broadcast %cst_10 : f32 to vector<16x1xf32>
    %18 = arith.divf %16, %17 : vector<16x1xf32>
    %19 = vector.broadcast %11 : vector<16x1xf32> to vector<16x32xf32>
    %20 = arith.subf %7, %19 : vector<16x32xf32>
    %cst_11 = arith.constant 9.99999974E-6 : f32
    %21 = vector.broadcast %cst_11 : f32 to vector<16x1xf32>
    %22 = arith.addf %18, %21 : vector<16x1xf32>
    %23 = math.rsqrt %22 : vector<16x1xf32>
    %24 = vector.broadcast %23 : vector<16x1xf32> to vector<16x32xf32>
    %25 = arith.mulf %20, %24 : vector<16x32xf32>
    %c0_12 = arith.constant 0 : index
    %c0_13 = arith.constant 0 : index
    %26 = vector.load %arg5[%c0_12, %c0_13] : memref<1x32xf32, #tpu.memory_space<vmem>>, vector<1x32xf32>
    %27 = vector.broadcast %26 : vector<1x32xf32> to vector<16x32xf32>
    %28 = arith.mulf %25, %27 : vector<16x32xf32>
    %c0_14 = arith.constant 0 : index
    %c0_15 = arith.constant 0 : index
    %29 = vector.load %arg6[%c0_14, %c0_15] : memref<1x32xf32, #tpu.memory_space<vmem>>, vector<1x32xf32>
    %30 = vector.broadcast %29 : vector<1x32xf32> to vector<16x32xf32>
    %31 = arith.addf %28, %30 : vector<16x32xf32>
    %c0_16 = arith.constant 0 : index
    %c0_17 = arith.constant 0 : index
    %32 = vector.load %arg7[%c0_16, %c0_17] : memref<16x32xf32, #tpu.memory_space<vmem>>, vector<16x32xf32>
    tpu.vector_store %arg7[%c0_16, %c0_17], %31 {strides = array<i32>} : memref<16x32xf32, #tpu.memory_space<vmem>>, vector<16x32xf32>,
    return
  }
  func.func @transform_0(%arg0: i32) -> (i32, i32) {
    %c0_i32 = arith.constant 0 : i32
    %c0_i32_0 = arith.constant 0 : i32
    return %arg0, %c0_i32 : i32, i32
  }
  func.func @transform_1(%arg0: i32) -> (i32, i32) {
    %c0_i32 = arith.constant 0 : i32
    %c0_i32_0 = arith.constant 0 : i32
    %c0_i32_1 = arith.constant 0 : i32
    return %c0_i32, %c0_i32_0 : i32, i32
  }
  func.func @transform_2(%arg0: i32) -> (i32, i32) {
    %c0_i32 = arith.constant 0 : i32
    %c0_i32_0 = arith.constant 0 : i32
    %c0_i32_1 = arith.constant 0 : i32
    return %c0_i32, %c0_i32_0 : i32, i32
  }
  func.func @transform_3(%arg0: i32) -> (i32, i32) {
    %c0_i32 = arith.constant 0 : i32
    %c0_i32_0 = arith.constant 0 : i32
    return %arg0, %c0_i32 : i32, i32
  }
  func.func @transform_4(%arg0: i32) -> (i32, i32) {
    %c0_i32 = arith.constant 0 : i32
    %c0_i32_0 = arith.constant 0 : i32
    %c0_i32_1 = arith.constant 0 : i32
    return %c0_i32, %c0_i32_0 : i32, i32
  }
  func.func @transform_5(%arg0: i32) -> (i32, i32) {
    %c0_i32 = arith.constant 0 : i32
    %c0_i32_0 = arith.constant 0 : i32
    %c0_i32_1 = arith.constant 0 : i32
    return %c0_i32, %c0_i32_0 : i32, i32
  }
  func.func @transform_6(%arg0: i32) -> (i32, i32) {
    %c0_i32 = arith.constant 0 : i32
    %c0_i32_0 = arith.constant 0 : i32
    return %arg0, %c0_i32 : i32, i32
  }
}

</mosaic_0001>

<bundles_post_ra>
// kernel: mul.36
= control target key start
LH: loop header
LB: loop body
LE: loop exit
PB: predicated region body
PF: predicated region fallthrough
CT: control target
= control target key end

     0   :  { %vm7_vm0 = vcmask 64512   ;;  %vm13_vm1 = vcmask 130112   ;;  %s39_s0 = inlined_call_operand.vmem [shape: f32[2,8], index: 0, kind: input, shape index: {}]   ;;  %s40_s1 = inlined_call_operand.vmem [shape: f32[16], index: 1, kind: output, shape index: {}]  }
   0x1   :  { %v4_v0 = vld [vmem:[%s39_s0] sm:$0x3]  ;;  %s22_s0 = smov 8  }
   0x2   :  { %5 = vst [vmem:[#allocation1] sm:$0x3] %v4_v0 }
   0x9   :  { %v10_v1 = vld [vmem:[#allocation1 + $0x1] sm:$0x1]   ;;  %v6_v2 = vld [vmem:[#allocation1] sm:$0x1]  }
   0xa   :  { %11 = vrot.lane.b32.xlu0 %v10_v1, %s22_s0  ;;  %8 = vst.msk [vmem:[#allocation0] sm:$0x1] %vm7_vm0, %v6_v2  }
  0x7c   :  { %v12_v3 = vpop.permute.xlu0 %11  }
  0x7d   :  { %14 = vst.msk [vmem:[#allocation0] sm:$0x1] %vm13_vm1, %v12_v3  }
  0x84   :  { %v18_v4 = vld [vmem:[#allocation0] sm:$0x1] }
  0x85   :  { %20 = vst [vmem:[%s40_s1] sm:$0x1] %v18_v4 }

// kernel: encoder_forward.13
= control target key start
LH: loop header
LB: loop body
LE: loop exit
PB: predicated region body
PF: predicated region fallthrough
CT: control target
= control target key end

     0   :  { %s383_s12 = smov 0   ;;  %s415_s0 = inlined_call_operand.vmem [shape: f32[16,64], index: 0, kind: input, shape index: {}]   ;;  %s416_s1 = inlined_call_operand.vmem [shape: bf16[64,32], index: 1, kind: input, shape index: {}]   ;;  %s417_s2 = inlined_call_operand.vmem [shape: f32[1,32], index: 2, kind: input, shape index: {}]   ;;  %s418_s3 = inlined_call_operand.vmem [shape: f32[16,32], index: 3, kind: output, shape index: {}]  }
   0x1 LB: > { %s307_s13 = sadd.s32 4294967295, %s359_s12   ;;  %p311_p0 = scmp.ge.s32.totalorder %s359_s12, 1  ;;  %s359_s12 = sphi %s383_s12, %s13_s12  }
   0x2   : > { %p136_p1 = scmp.lt.s32.totalorder %s359_s12, 3 }
   0x4   : > { %p137_p2 = pnand %p311_p0, %p136_p1 }
   0x5   : > { %v349_v0 = vld [vmem:[%s416_s1] sm:$0xff] (!%p137_p2)   ;;  %v361_v1 = vmov (!%p137_p2), 0.0   ;;  %v350_v2 = vld [vmem:[%s416_s1 + $0x8] sm:$0xff] (!%p137_p2)   ;;  %vm362_vm0 = vmmov (!%p137_p2), 0   ;;  %p158_p3 = scmp.lt.s32.totalorder (!%p137_p2), %s307_s13, 1  ;;  %v351_v3 = vld [vmem:[%s416_s1 + $0x10] sm:$0xff] (!%p137_p2)  }
   0x6   : > { %140 = sbr.rel (%p137_p2) target bundleno = 237 (0xed), region = 32  ;;  %327 = vmatprep.subr.bf16.mxu0 (!%p137_p2), %v361_v1  ;;  %335 = vmatprep.mubr.msk.bf16.mxu0 (!%p137_p2), %vm362_vm0, %v361_v1  ;;  %v352_v4 = vld [vmem:[%s416_s1 + $0x18] sm:$0xff] (!%p137_p2)   ;;  %vm208_vm1 = vcmask (!%p137_p2), 523264   ;;  %v314_v7 = vld [vmem:[%s417_s2] ss:$0 sm:$0xff] (!%p137_p2)  ;;  %vm252_vm2 = vcmask (!%p137_p2), 261120  }
   0x7   : > { %328 = vmatpush3.bf16.msra.mxu0 (!%p137_p2), %v349_v0 }
   0x8   : > { %329 = vmatprep.subr.bf16.mxu0 (!%p137_p2), %v361_v1 }
   0xb   : > { %330 = vmatpush3.bf16.msra.mxu0 (!%p137_p2), %v350_v2 }
   0xc   : > { %331 = vmatprep.subr.bf16.mxu0 (!%p137_p2), %v361_v1 }
   0xd   : > { %s420_s13 = smov (!%p158_p3, %s307_s13), 1 }
   0xe   : > { %s312_s20 = sshll.u32 %s420_s13, 3 }
   0xf   : > { %s161_s23 = scalar_lea.vmem %s415_s0, %s312_s20  ;;  %332 = vmatpush3.bf16.msra.mxu0 %v351_v3  ;;  %s165_s30 = scalar_lea.vmem %s418_s3, %s312_s20 }
  0x10   : > { %v167_v5 = vld [vmem:[%s161_s23] sm:$0xff]  ;;  %333 = vmatprep.subr.bf16.mxu0 %v361_v1 }
  0x11   : > { %v168_v6 = vpack.c.bf16 %v167_v5, %v167_v5 }
  0x13   : > { %334 = vmatpush3.bf16.msra.mxu0 %v352_v4 }
  0x16   : > { %336 = vmatmul.mubr.msk.bf16.vlgmr.msra.gmra.mrb[0].mxu0 %vm208_vm1, %v168_v6 }
  0xe9   : > { %v246_v8 = vpop.f32.mrb[0].mxu0 }
  0xea   : > { %v247_v9 = vadd.f32 %v314_v7, %v246_v8  ;;  %v337_v10 = vpop.f32.mrb[1].mxu0 }
  0xeb   : > { %v249_v11 = vpop.f32.mrb[2].mxu0 }
  0xec   : > { %253 = vst.msk [vmem:[%s165_s30] sm:$0xff] %vm252_vm2, %v247_v9  ;;  %v338_v12 = vpop.f32.mrb[3].mxu0 }
  0xed PF: > { %s13_s12 = sadd.s32 1, %s359_s12  }
  0xee   : > { %p10_p4 = scmp.ge.s32.totalorder %s13_s12, 4  }
  0xf0   :  { %12 = sbr.rel (!%p10_p4) target bundleno = 1 (0x1), region = 62 }

// kernel: encoder_forward.14
= control target key start
LH: loop header
LB: loop body
LE: loop exit
PB: predicated region body
PF: predicated region fallthrough
CT: control target
= control target key end

     0   :  { %v124_v0 = vmov 0.0   ;;  %vm125_vm0 = vmmov 0   ;;  %vm41_vm1 = vcmask 261120   ;;  %vm94_vm2 = vcmask 781312   ;;  %s167_s1 = inlined_call_operand.vmem [shape: bf16[32,96], index: 1, kind: input, shape index: {}]   ;;  %s168_s0 = inlined_call_operand.vmem [shape: f32[16,32], index: 0, kind: input, shape index: {}]   ;;  %s169_s2 = inlined_call_operand.vmem [shape: f32[1,96], index: 2, kind: input, shape index: {}]   ;;  %s170_s3 = inlined_call_operand.vmem [shape: bf16[16,96], index: 3, kind: output, shape index: {}]  }
   0x1   :  { %112 = vmatprep.subr.bf16.mxu0 %v124_v0  ;;  %v122_v1 = vld [vmem:[%s167_s1] sm:$0xff]   ;;  %116 = vmatprep.mubr.msk.bf16.mxu0 %vm125_vm0, %v124_v0  ;;  %v123_v2 = vld [vmem:[%s167_s1 + $0x8] sm:$0xff]  }
   0x2   :  { %113 = vmatpush3.bf16.msra.mxu0 %v122_v1  ;;  %v15_v3 = vld [vmem:[%s168_s0] sm:$0xff]  ;;  %v16_v4 = vld [vmem:[%s168_s0 + $0x8] sm:$0xff] }
   0x3   :  { %114 = vmatprep.subr.bf16.mxu0 %v124_v0  ;;  %v17_v5 = vpack.c.bf16 %v16_v4, %v15_v3  ;;  %v101_v6 = vld [vmem:[%s169_s2] ss:$0 sm:$0xff] }
   0x6   :  { %115 = vmatpush3.bf16.msra.mxu0 %v123_v2 }
   0x9   :  { %117 = vmatmul.mubr.msk.bf16.vlgmr.msra.gmra.mrb[0].mxu0 %vm41_vm1, %v17_v5 }
  0xdc   :  { %v79_v7 = vpop.f32.mrb[0].mxu0 }
  0xdd   :  { %v80_v8 = vadd.f32 %v101_v6, %v79_v7  ;;  %v118_v9 = vpop.f32.mrb[1].mxu0 }
  0xde   :  { %v82_v10 = vpop.f32.mrb[2].mxu0 }
  0xdf   :  { %v107_v11 = vpack.c.bf16 %v80_v8, %v80_v8  ;;  %v83_v12 = vadd.f32 %v101_v6, %v82_v10  ;;  %v119_v13 = vpop.f32.mrb[3].mxu0 }
  0xe1   :  { %95 = vst.msk [vmem:[%s170_s3] sm:$0xf] %vm94_vm2, %v107_v11  ;;  %v108_v14 = vpack.c.bf16 %v83_v12, %v83_v12 }
  0xe3   :  { %96 = vst.msk [vmem:[%s170_s3 + $0x4] sm:$0xf] %vm94_vm2, %v108_v14 }

// kernel: encoder_forward.12
= control target key start
LH: loop header
LB: loop body
LE: loop exit
PB: predicated region body
PF: predicated region fallthrough
CT: control target
= control target key end

     0   :  { %s370_s12 = smov 0   ;;  %s399_s0 = inlined_call_operand.vmem [shape: f32[16,48], index: 0, kind: input, shape index: {}]   ;;  %s400_s1 = inlined_call_operand.vmem [shape: bf16[48,32], index: 1, kind: input, shape index: {}]   ;;  %s401_s2 = inlined_call_operand.vmem [shape: f32[1,32], index: 2, kind: input, shape index: {}]   ;;  %s402_s3 = inlined_call_operand.vmem [shape: f32[16,32], index: 3, kind: output, shape index: {}]  }
   0x1 LB: > { %s299_s13 = sadd.s32 4294967295, %s346_s12   ;;  %p303_p0 = scmp.ge.s32.totalorder %s346_s12, 1  ;;  %s346_s12 = sphi %s370_s12, %s13_s12  }
   0x2   : > { %p136_p1 = scmp.lt.s32.totalorder %s346_s12, 3 }
   0x4   : > { %p137_p2 = pnand %p303_p0, %p136_p1 }
   0x5   : > { %v337_v0 = vld [vmem:[%s400_s1] sm:$0xff] (!%p137_p2)   ;;  %v348_v1 = vmov (!%p137_p2), 0.0   ;;  %v338_v2 = vld [vmem:[%s400_s1 + $0x8] sm:$0xff] (!%p137_p2)   ;;  %vm349_vm0 = vmmov (!%p137_p2), 0   ;;  %p158_p3 = scmp.lt.s32.totalorder (!%p137_p2), %s299_s13, 1  ;;  %v339_v3 = vld [vmem:[%s400_s1 + $0x10] sm:$0xff] (!%p137_p2)  }
   0x6   : > { %140 = sbr.rel (%p137_p2) target bundleno = 234 (0xea), region = 32  ;;  %317 = vmatprep.subr.bf16.mxu0 (!%p137_p2), %v348_v1  ;;  %323 = vmatprep.mubr.msk.bf16.mxu0 (!%p137_p2), %vm349_vm0, %v348_v1  ;;  %vm200_vm1 = vcmask (!%p137_p2), 392192   ;;  %v306_v6 = vld [vmem:[%s401_s2] ss:$0 sm:$0xff] (!%p137_p2)  ;;  %vm244_vm2 = vcmask (!%p137_p2), 261120  }
   0x7   : > { %318 = vmatpush3.bf16.msra.mxu0 (!%p137_p2), %v337_v0 }
   0x8   : > { %319 = vmatprep.subr.bf16.mxu0 (!%p137_p2), %v348_v1 }
   0xb   : > { %320 = vmatpush3.bf16.msra.mxu0 (!%p137_p2), %v338_v2 }
   0xc   : > { %321 = vmatprep.subr.bf16.mxu0 (!%p137_p2), %v348_v1 }
   0xd   : > { %s404_s13 = smov (!%p158_p3, %s299_s13), 1 }
   0xe   : > { %s304_s20 = sshll.u32 %s404_s13, 3 }
   0xf   : > { %s161_s23 = scalar_lea.vmem %s399_s0, %s304_s20  ;;  %322 = vmatpush3.bf16.msra.mxu0 %v339_v3  ;;  %s165_s28 = scalar_lea.vmem %s402_s3, %s304_s20 }
  0x10   : > { %v167_v4 = vld [vmem:[%s161_s23] sm:$0xff] }
  0x11   : > { %v168_v5 = vpack.c.bf16 %v167_v4, %v167_v4 }
  0x13   : > { %324 = vmatmul.mubr.msk.bf16.vlgmr.msra.gmra.mrb[0].mxu0 %vm200_vm1, %v168_v5 }
  0xe6   : > { %v238_v7 = vpop.f32.mrb[0].mxu0 }
  0xe7   : > { %v239_v8 = vadd.f32 %v306_v6, %v238_v7  ;;  %v325_v9 = vpop.f32.mrb[1].mxu0 }
  0xe8   : > { %v241_v10 = vpop.f32.mrb[2].mxu0 }
  0xe9   : > { %245 = vst.msk [vmem:[%s165_s28] sm:$0xff] %vm244_vm2, %v239_v8  ;;  %v326_v11 = vpop.f32.mrb[3].mxu0 }
  0xea PF: > { %s13_s12 = sadd.s32 1, %s346_s12  }
  0xeb   : > { %p10_p4 = scmp.ge.s32.totalorder %s13_s12, 4  }
  0xed   :  { %12 = sbr.rel (!%p10_p4) target bundleno = 1 (0x1), region = 62 }

// kernel: encoder_forward.16
= control target key start
LH: loop header
LB: loop body
LE: loop exit
PB: predicated region body
PF: predicated region fallthrough
CT: control target
= control target key end

     0   :  { %s518_s21 = smov 0   ;;  %s562_s0 = inlined_call_operand.vmem [shape: f32[16,32], index: 0, kind: input, shape index: {}]   ;;  %s563_s1 = inlined_call_operand.vmem [shape: bf16[32,32], index: 1, kind: input, shape index: {}]   ;;  %s564_s2 = inlined_call_operand.vmem [shape: f32[1,32], index: 2, kind: input, shape index: {}]   ;;  %s565_s3 = inlined_call_operand.vmem [shape: f32[16,32], index: 3, kind: input, shape index: {}]   ;;  %s566_s4 = inlined_call_operand.vmem [shape: f32[1,32], index: 4, kind: input, shape index: {}]   ;;  %s567_s5 = inlined_call_operand.vmem [shape: f32[1,32], index: 5, kind: input, shape index: {}]   ;;  %s568_s6 = inlined_call_operand.vmem [shape: f32[16,32], index: 6, kind: output, shape index: {}]  }
   0x1 LB: > { %s432_s22 = sadd.s32 4294967295, %s479_s21   ;;  %p436_p0 = scmp.ge.s32.totalorder %s479_s21, 1  ;;  %s479_s21 = sphi %s518_s21, %s16_s21  }
   0x2   : > { %p220_p1 = scmp.lt.s32.totalorder %s479_s21, 3 }
   0x4   : > { %p221_p2 = pnand %p436_p0, %p220_p1 }
   0x5   : > { %v469_v0 = vld [vmem:[%s563_s1] sm:$0xff] (!%p221_p2)   ;;  %v481_v1 = vmov (!%p221_p2), 0.0   ;;  %v470_v2 = vld [vmem:[%s563_s1 + $0x8] sm:$0xff] (!%p221_p2)   ;;  %vm482_vm0 = vmmov (!%p221_p2), 0   ;;  %p252_p3 = scmp.lt.s32.totalorder (!%p221_p2), %s432_s22, 1  ;;  %vm290_vm1 = vcmask (!%p221_p2), 261120  }
   0x6   : > { %224 = sbr.rel (%p221_p2) target bundleno = 549 (0x225), region = 44  ;;  %451 = vmatprep.subr.bf16.mxu0 (!%p221_p2), %v481_v1  ;;  %455 = vmatprep.mubr.msk.bf16.mxu0 (!%p221_p2), %vm482_vm0, %v481_v1  ;;  %v440_v5 = vld [vmem:[%s564_s2] ss:$0 sm:$0xff] (!%p221_p2) }
   0x7   : > { %452 = vmatpush3.bf16.msra.mxu0 (!%p221_p2), %v469_v0  ;;  %v444_v23 = vld [vmem:[%s566_s4] ss:$0 sm:$0xff] (!%p221_p2) }
   0x8   : > { %453 = vmatprep.subr.bf16.mxu0 (!%p221_p2), %v481_v1  ;;  %v445_v25 = vld [vmem:[%s567_s5] ss:$0 sm:$0xff] (!%p221_p2) }
   0xb   : > { %454 = vmatpush3.bf16.msra.mxu0 (!%p221_p2), %v470_v2 }
   0xd   : > { %s570_s22 = smov (!%p252_p3, %s432_s22), 1 }
   0xe   : > { %s532_s27 = sshll.u32 %s570_s22, 3 }
   0xf   : > { %s255_s30 = scalar_lea.vmem %s562_s0, %s532_s27  ;;  %s259_s9 = scalar_lea.vmem %s565_s3, %s532_s27 }
  0x10   : > { %v265_v3 = vld [vmem:[%s255_s30] sm:$0xff]  ;;  %s263_s18 = scalar_lea.vmem %s568_s6, %s532_s27 }
  0x11   : > { %v266_v4 = vpack.c.bf16 %v265_v3, %v265_v3  ;;  %v334_v7 = vld [vmem:[%s259_s9] sm:$0xff] }
  0x13   : > { %456 = vmatmul.mubr.msk.bf16.vlgmr.msra.gmra.mrb[0].mxu0 %vm290_vm1, %v266_v4 }
  0xe6   : > { %v328_v6 = vpop.f32.mrb[0].mxu0 }
  0xe7   : > { %v329_v8 = vadd.f32 %v440_v5, %v328_v6  ;;  %v457_v9 = vpop.f32.mrb[1].mxu0 }
  0xe8   : > { %v331_v10 = vpop.f32.mrb[2].mxu0 }
  0xe9   : > { %v458_v11 = vpop.f32.mrb[3].mxu0  ;;  %v335_v12 = vadd.f32 %v334_v7, %v329_v8 }
  0xeb   : > { %v336_v13 = vsel %vm290_vm1, %v335_v12, 0.0 }
  0xec   : > { %337 = vadd.xlane.f32.xlu0 %v336_v13 }
 0x179   : > { %v338_v14 = vpop.xlane.xlu0 %337 }
 0x17a   : > { %v340_v15 = vmul.f32 0.03125, %v338_v14 }
 0x17c   : > { %v341_v16 = vsub.f32 %v335_v12, %v340_v15 }
 0x17e   : > { %v342_v17 = vmul.f32 %v341_v16, %v341_v16 }
 0x180   : > { %v343_v18 = vsel %vm290_vm1, %v342_v17, 0.0 }
 0x181   : > { %344 = vadd.xlane.f32.xlu0 %v343_v18 }
 0x20e   : > { %v345_v19 = vpop.xlane.xlu0 %344 }
 0x20f   : > { %v346_v20 = vmul.f32 0.03125, %v345_v19 }
 0x211   : > { %v347_v21 = vadd.f32 1e-05, %v346_v20 }
 0x213   : > { %471 = vrsqrt.f32 %v347_v21 }
 0x21d   : > { %v472_v22 = vpop.eup %471 }
 0x21e   : > { %v349_v24 = vmul.f32 %v472_v22, %v341_v16 }
 0x220   : > { %v357_v26 = vmul.f32 %v444_v23, %v349_v24 }
 0x222   : > { %v365_v27 = vadd.f32 %v445_v25, %v357_v26 }
 0x224   : > { %366 = vst.msk [vmem:[%s263_s18] sm:$0xff] %vm290_vm1, %v365_v27 }
 0x225 PF: > { %s16_s21 = sadd.s32 1, %s479_s21  }
 0x226   : > { %p13_p4 = scmp.ge.s32.totalorder %s16_s21, 4  }
 0x228   :  { %15 = sbr.rel (!%p13_p4) target bundleno = 1 (0x1), region = 77 }

// kernel: encoder_forward.15
= control target key start
LH: loop header
LB: loop body
LE: loop exit
PB: predicated region body
PF: predicated region fallthrough
CT: control target
= control target key end

     0   :  { %s2720_s15 = smov 0   ;;  %s2722_s16 = smov 0   ;;  %s3296_s0 = inlined_call_operand.vmem [shape: bf16[2,8,3,4,8], index: 0, kind: input, shape index: {}, may-alias: {0,1,2}]   ;;  %s3297_s1 = inlined_call_operand.vmem [shape: bf16[2,8,3,4,8], index: 1, kind: input, shape index: {}, may-alias: {0,1,2}]   ;;  %s3298_s2 = inlined_call_operand.vmem [shape: bf16[2,8,3,4,8], index: 2, kind: input, shape index: {}, may-alias: {0,1,2}]   ;;  %s3299_s3 = inlined_call_operand.vmem [shape: f32[2,1,8], index: 3, kind: input, shape index: {}]   ;;  %s3300_s4 = inlined_call_operand.vmem [shape: f32[2,8,4,8], index: 4, kind: output, shape index: {}]  }
   0x1   :  { %s2724_s17 = smov 0  }
   0x2 LB: > { %s2420_s18 = sadd.s32 4294967295, %s2690_s17   ;;  %s2737_s19 = sadd.s32 1, %s2690_s17   ;;  %s2690_s17 = sphi %s2724_s17, %s3304_s17   ;;  %s2686_s16 = sphi %s2722_s16, %s3303_s16   ;;  %s2682_s15 = sphi %s2720_s15, %s3302_s15  }
   0x3   : > { %s18_s20 = ssub.s32 %s2690_s17, %s2737_s19  ;;  %s21_s21 = sadd.s32 1, %s2686_s16 }
   0x4   : > { %p19_p0 = scmp.eq.s32.totalorder %s18_s20, 0  ;;  %p28_p1 = scmp.ne.s32.totalorder %s2686_s16, %s2682_s15 }
   0x5   : > { %p29_p2 = scmp.eq.s32.totalorder %s2690_s17, 0  ;;  %p2423_p4 = scmp.ge.s32.totalorder %s2690_s17, 2 }
   0x6   : > { %s2746_s22 = scalar_select %p19_p0, %s2686_s16, %s21_s21  }
   0x7   : > { %p2748_p3 = por %p29_p2, %p28_p1  ;;  %158 = sbr.rel (%p2423_p4) target bundleno = 44 (0x2c), region = 16 }
   0xe   : > { %161 = sbr.rel (!%p2748_p3) target bundleno = 24 (0x18), region = 20  ;;  %s163_s24 = sand.u32 (%p2748_p3), 1, %s2686_s16  }
   0xf   : > { %s2624_s25 = smul.u32 (%p2748_p3), 48, %s2690_s17  ;;  %s2424_s26 = sshll.u32 (%p2748_p3), %s163_s24, 4 }
  0x10   : > { %s165_s30 = scalar_lea.vmem (%p2748_p3), [#allocation2], %s2424_s26 }
  0x11   : > { %s168_s29 = scalar_lea.vmem (%p2748_p3), %s3296_s0, %s2624_s25 }
  0x12   : > { %v184_v0 = vld [vmem:[%s168_s29] sm:$0x3] (%p2748_p3)  ;;  %v186_v1 = vld [vmem:[%s168_s29 + $0x6] sm:$0x3] (%p2748_p3)  ;;  %v188_v2 = vld [vmem:[%s168_s29 + $0xc] sm:$0x3] (%p2748_p3) }
  0x13   : > { %185 = vst [vmem:[%s165_s30] sm:$0x3] (%p2748_p3), %v184_v0  ;;  %187 = vst [vmem:[%s165_s30 + $0x2] sm:$0x3] (%p2748_p3), %v186_v1  ;;  %v190_v3 = vld [vmem:[%s168_s29 + $0x12] sm:$0x3] (%p2748_p3) }
  0x14   : > { %189 = vst [vmem:[%s165_s30 + $0x4] sm:$0x3] (%p2748_p3), %v188_v2  ;;  %v192_v4 = vld [vmem:[%s168_s29 + $0x18] sm:$0x3] (%p2748_p3)  ;;  %v194_v5 = vld [vmem:[%s168_s29 + $0x1e] sm:$0x3] (%p2748_p3) }
  0x15   : > { %191 = vst [vmem:[%s165_s30 + $0x6] sm:$0x3] %v190_v3  ;;  %193 = vst [vmem:[%s165_s30 + $0x8] sm:$0x3] %v192_v4  ;;  %v196_v6 = vld [vmem:[%s168_s29 + $0x24] sm:$0x3] }
  0x16   : > { %195 = vst [vmem:[%s165_s30 + $0xa] sm:$0x3] %v194_v5  ;;  %v198_v7 = vld [vmem:[%s168_s29 + $0x2a] sm:$0x3]  ;;  %197 = vst [vmem:[%s165_s30 + $0xc] sm:$0x3] %v196_v6 }
  0x17   : > { %199 = vst [vmem:[%s165_s30 + $0xe] sm:$0x3] %v198_v7 }
  0x18 PF: > { %238 = sbr.rel (!%p2748_p3) target bundleno = 34 (0x22), region = 61  ;;  %s240_s5 = sand.u32 (%p2748_p3), 1, %s2686_s16  }
  0x19   : > { %s2427_s6 = smul.u32 (%p2748_p3), 48, %s2690_s17  ;;  %s2426_s7 = sshll.u32 (%p2748_p3), %s240_s5, 4 }
  0x1a   : > { %s242_s11 = scalar_lea.vmem (%p2748_p3), [#allocation3], %s2426_s7 }
  0x1b   : > { %s2339_s10 = scalar_lea.vmem (%p2748_p3), %s3297_s1, %s2427_s6 }
  0x1c   : > { %v2428_v8 = vld [vmem:[%s2339_s10 + $0x2] sm:$0x3] (%p2748_p3)  ;;  %v2429_v9 = vld [vmem:[%s2339_s10 + $0x8] sm:$0x3] (%p2748_p3)  ;;  %v2430_v10 = vld [vmem:[%s2339_s10 + $0xe] sm:$0x3] (%p2748_p3) }
  0x1d   : > { %263 = vst [vmem:[%s242_s11] sm:$0x3] (%p2748_p3), %v2428_v8  ;;  %265 = vst [vmem:[%s242_s11 + $0x2] sm:$0x3] (%p2748_p3), %v2429_v9  ;;  %v2431_v11 = vld [vmem:[%s2339_s10 + $0x14] sm:$0x3] (%p2748_p3) }
  0x1e   : > { %267 = vst [vmem:[%s242_s11 + $0x4] sm:$0x3] (%p2748_p3), %v2430_v10  ;;  %v2432_v12 = vld [vmem:[%s2339_s10 + $0x1a] sm:$0x3] (%p2748_p3)  ;;  %v2433_v13 = vld [vmem:[%s2339_s10 + $0x20] sm:$0x3] (%p2748_p3) }
  0x1f   : > { %269 = vst [vmem:[%s242_s11 + $0x6] sm:$0x3] %v2431_v11  ;;  %271 = vst [vmem:[%s242_s11 + $0x8] sm:$0x3] %v2432_v12  ;;  %v2434_v14 = vld [vmem:[%s2339_s10 + $0x26] sm:$0x3] }
  0x20   : > { %273 = vst [vmem:[%s242_s11 + $0xa] sm:$0x3] %v2433_v13  ;;  %v2435_v15 = vld [vmem:[%s2339_s10 + $0x2c] sm:$0x3]  ;;  %275 = vst [vmem:[%s242_s11 + $0xc] sm:$0x3] %v2434_v14 }
  0x21   : > { %277 = vst [vmem:[%s242_s11 + $0xe] sm:$0x3] %v2435_v15 }
  0x22 PF: > { %316 = sbr.rel (!%p2748_p3) target bundleno = 44 (0x2c), region = 102  ;;  %s318_s12 = sand.u32 (%p2748_p3), 1, %s2686_s16  }
  0x23   : > { %s2437_s13 = smul.u32 (%p2748_p3), 48, %s2690_s17  ;;  %s2436_s14 = sshll.u32 (%p2748_p3), %s318_s12, 4 }
  0x24   : > { %s320_s25 = scalar_lea.vmem (%p2748_p3), [#allocation4], %s2436_s14 }
  0x25   : > { %s2345_s24 = scalar_lea.vmem (%p2748_p3), %s3298_s2, %s2437_s13 }
  0x26   : > { %v2438_v16 = vld [vmem:[%s2345_s24 + $0x4] sm:$0x3] (%p2748_p3)  ;;  %v2439_v17 = vld [vmem:[%s2345_s24 + $0xa] sm:$0x3] (%p2748_p3)  ;;  %v2440_v18 = vld [vmem:[%s2345_s24 + $0x10] sm:$0x3] (%p2748_p3) }
  0x27   : > { %341 = vst [vmem:[%s320_s25] sm:$0x3] (%p2748_p3), %v2438_v16  ;;  %343 = vst [vmem:[%s320_s25 + $0x2] sm:$0x3] (%p2748_p3), %v2439_v17  ;;  %v2441_v19 = vld [vmem:[%s2345_s24 + $0x16] sm:$0x3] (%p2748_p3) }
  0x28   : > { %345 = vst [vmem:[%s320_s25 + $0x4] sm:$0x3] (%p2748_p3), %v2440_v18  ;;  %v2442_v20 = vld [vmem:[%s2345_s24 + $0x1c] sm:$0x3] (%p2748_p3)  ;;  %v2443_v21 = vld [vmem:[%s2345_s24 + $0x22] sm:$0x3] (%p2748_p3) }
  0x29   : > { %347 = vst [vmem:[%s320_s25 + $0x6] sm:$0x3] %v2441_v19  ;;  %349 = vst [vmem:[%s320_s25 + $0x8] sm:$0x3] %v2442_v20  ;;  %v2444_v22 = vld [vmem:[%s2345_s24 + $0x28] sm:$0x3] }
  0x2a   : > { %351 = vst [vmem:[%s320_s25 + $0xa] sm:$0x3] %v2443_v21  ;;  %v2445_v23 = vld [vmem:[%s2345_s24 + $0x2e] sm:$0x3]  ;;  %353 = vst [vmem:[%s320_s25 + $0xc] sm:$0x3] %v2444_v22 }
  0x2b   : > { %355 = vst [vmem:[%s320_s25 + $0xe] sm:$0x3] %v2445_v23 }
  0x2c PF: > { %p2446_p5 = scmp.ge.s32.totalorder %s2690_s17, 1  ;;  %p399_p6 = scmp.lt.s32.totalorder %s2690_s17, 3 }
  0x2e   : > { %p400_p7 = pnand %p2446_p5, %p399_p6 }
  0x2f   : > { %s406_s23 = sand.u32 (!%p400_p7), 1, %s2682_s15   ;;  %v2692_v24 = vmov (!%p400_p7), 0.0   ;;  %vm2693_vm0 = vmmov (!%p400_p7), 0   ;;  %vm563_vm1 = vcmask (!%p400_p7), 1041409   ;;  %vm566_vm2 = vcmask (!%p400_p7), 1042434   ;;  %p456_p8 = scmp.lt.s32.totalorder (!%p400_p7), %s2420_s18, 1 }
  0x30   : > { %403 = sbr.rel (%p400_p7) target bundleno = 1384 (0x568), region = 147  ;;  %2576 = vmatprep.subr.bf16.mxu0 (!%p400_p7), %v2692_v24  ;;  %s2778_s26 = sshll.u32 (!%p400_p7), %s406_s23, 4  ;;  %2582 = vmatprep.subr.bf16.mxu1 (!%p400_p7), %v2692_v24  ;;  %vm569_vm3 = vcmask (!%p400_p7), 1043459   ;;  %vm572_vm4 = vcmask (!%p400_p7), 1044484   ;;  %vm575_vm5 = vcmask (!%p400_p7), 1045509   ;;  %vm578_vm6 = vcmask (!%p400_p7), 1046534  }
  0x31   : > { %s2782_s27 = scalar_lea.vmem (!%p400_p7), [#allocation3], %s2778_s26  ;;  %2578 = vmatprep.mubr.msk.bf16.mxu0 (!%p400_p7), %vm2693_vm0, %v2692_v24  ;;  %2584 = vmatprep.mubr.msk.bf16.mxu1 (!%p400_p7), %vm2693_vm0, %v2692_v24  ;;  %s2836_s15 = scalar_lea.vmem (!%p400_p7), [#allocation2], %s2778_s26  ;;  %vm581_vm7 = vcmask (!%p400_p7), 1047559   ;;  %vm671_vm8 = vcmask (!%p400_p7), 64512   ;;  %vm828_vm9 = vcmask (!%p400_p7), 1043456   ;;  %vm930_vm10 = vcmask (!%p400_p7), 57344  }
  0x32   : > { %v2785_v25 = vld.sshfl [vmem:[%s2782_s27] sm:$0x1 pattern:$0x76325410] (!%p400_p7)  ;;  %s2925_s17 = scalar_lea.vmem (!%p400_p7), [#allocation4], %s2778_s26 }
  0x33   : > { %v2792_v26 = vld.sshfl [vmem:[%s2782_s27 + $0x2] sm:$0x1 pattern:$0x76325410] (!%p400_p7)  ;;  %v648_v28 = vunpack.c.l.b16 (!%p400_p7), %v2785_v25 }
  0x34   : > { %v2795_v27 = vld.sshfl [vmem:[%s2782_s27 + $0x4] sm:$0x1 pattern:$0x76325410] (!%p400_p7)  ;;  %v649_v29 = vunpack.c.l.b16 (!%p400_p7), %v2792_v26 }
  0x35   : > { %v2800_v30 = vld.sshfl [vmem:[%s2782_s27 + $0x6] sm:$0x1 pattern:$0x76325410] (!%p400_p7)  ;;  %v650_v31 = vunpack.c.l.b16 (!%p400_p7), %v2795_v27 }
  0x36   : > { %v2804_v32 = vld.sshfl [vmem:[%s2782_s27 + $0x8] sm:$0x1 pattern:$0x76325410] (!%p400_p7)  ;;  %v651_v33 = vunpack.c.l.b16 (!%p400_p7), %v2800_v30  ;;  %v656_v34 = vrot.slane (!%p400_p7), %v649_v29, 7 }
  0x37   : > { %v2810_v35 = vld.sshfl [vmem:[%s2782_s27 + $0xa] sm:$0x1 pattern:$0x76325410]  ;;  %v652_v36 = vunpack.c.l.b16 %v2804_v32  ;;  %v658_v37 = vrot.slane %v650_v31, 6  ;;  %s3306_s18 = smov (!%p456_p8, %s2420_s18), 1 }
  0x38   : > { %v2816_v38 = vld.sshfl [vmem:[%s2782_s27 + $0xc] sm:$0x1 pattern:$0x76325410]  ;;  %v653_v39 = vunpack.c.l.b16 %v2810_v35  ;;  %v657_v40 = vsel %vm563_vm1, %v656_v34, %v648_v28  ;;  %v660_v41 = vrot.slane %v651_v33, 5  ;;  %s458_s30 = scalar_lea.vmem %s3299_s3, %s3306_s18  ;;  %s2559_s5 = sshll.u32 %s3306_s18, 5 }
  0x39   : > { %v2825_v42 = vld.sshfl [vmem:[%s2782_s27 + $0xe] sm:$0x1 pattern:$0x76325410]  ;;  %v654_v43 = vunpack.c.l.b16 %v2816_v38  ;;  %v659_v44 = vsel %vm566_vm2, %v658_v37, %v657_v40  ;;  %v662_v45 = vrot.slane %v652_v36, 4  ;;  %s3119_s8 = scalar_lea.vmem %s3300_s4, %s2559_s5 }
  0x3a   : > { %v655_v46 = vunpack.c.l.b16 %v2825_v42  ;;  %v661_v47 = vsel %vm569_vm3, %v660_v41, %v659_v44  ;;  %v664_v48 = vrot.slane %v653_v39, 3  ;;  %v2839_v49 = vld.sshfl [vmem:[%s2836_s15] sm:$0x1 pattern:$0x76325410] }
  0x3b   : > { %v663_v50 = vsel %vm572_vm4, %v662_v45, %v661_v47  ;;  %v666_v51 = vrot.slane %v654_v43, 2  ;;  %v2845_v52 = vld.sshfl [vmem:[%s2836_s15 + $0x2] sm:$0x1 pattern:$0x76325410]  ;;  %v554_v56 = vunpack.c.l.b16 %v2839_v49 }
  0x3c   : > { %v665_v53 = vsel %vm575_vm5, %v664_v48, %v663_v50  ;;  %v668_v54 = vrot.slane %v655_v46, 1  ;;  %v2851_v55 = vld.sshfl [vmem:[%s2836_s15 + $0x4] sm:$0x1 pattern:$0x76325410]  ;;  %v555_v57 = vunpack.c.l.b16 %v2845_v52 }
  0x3d   : > { %v667_v58 = vsel %vm578_vm6, %v666_v51, %v665_v53  ;;  %v2857_v59 = vld.sshfl [vmem:[%s2836_s15 + $0x6] sm:$0x1 pattern:$0x76325410]  ;;  %v556_v60 = vunpack.c.l.b16 %v2851_v55  ;;  %v2916_v37 = vld [vmem:[%s458_s30] ss:$0 sm:$0xff] }
  0x3e   : > { %v669_v61 = vsel %vm581_vm7, %v668_v54, %v667_v58  ;;  %v2862_v62 = vld.sshfl [vmem:[%s2836_s15 + $0x8] sm:$0x1 pattern:$0x76325410]  ;;  %v557_v63 = vunpack.c.l.b16 %v2857_v59  ;;  %v562_v0 = vrot.slane %v555_v57, 7  ;;  %v1035_v27 = vrot.slane %v554_v56, 1 }
  0x3f   : > { %v670_v1 = vpack.c.b16 %v669_v61, %v669_v61  ;;  %v2868_v2 = vld.sshfl [vmem:[%s2836_s15 + $0xa] sm:$0x1 pattern:$0x76325410]  ;;  %v558_v3 = vunpack.c.l.b16 %v2862_v62  ;;  %v565_v4 = vrot.slane %v556_v60, 6 }
  0x40   : > { %v2874_v5 = vld.sshfl [vmem:[%s2836_s15 + $0xc] sm:$0x1 pattern:$0x76325410]  ;;  %v559_v6 = vunpack.c.l.b16 %v2868_v2  ;;  %v564_v7 = vsel %vm563_vm1, %v562_v0, %v554_v56  ;;  %v568_v8 = vrot.slane %v557_v63, 5 }
  0x41   : > { %v676_v9 = vsel %vm671_vm8, %v670_v1, 0  ;;  %v2884_v10 = vld.sshfl [vmem:[%s2836_s15 + $0xe] sm:$0x1 pattern:$0x76325410]  ;;  %v560_v11 = vunpack.c.l.b16 %v2874_v5  ;;  %v567_v12 = vsel %vm566_vm2, %v565_v4, %v564_v7  ;;  %v571_v13 = vrot.slane %v558_v3, 4 }
  0x42   : > { %2577 = vmatpush3.bf16.xpose.msra.mxu0 %v676_v9  ;;  %v561_v14 = vunpack.c.l.b16 %v2884_v10  ;;  %v570_v15 = vsel %vm569_vm3, %v568_v8, %v567_v12  ;;  %v574_v16 = vrot.slane %v559_v6, 3  ;;  %v2928_v61 = vld.sshfl [vmem:[%s2925_s17 + $0x2] sm:$0x1 pattern:$0x76325410] }
  0x43   : > { %v573_v17 = vsel %vm572_vm4, %v571_v13, %v570_v15  ;;  %v577_v18 = vrot.slane %v560_v11, 2  ;;  %2594 = vmatprep.subr.bf16.mxu0 %v2692_v24  ;;  %v2931_v0 = vld.sshfl [vmem:[%s2925_s17 + $0x4] sm:$0x1 pattern:$0x76325410]  ;;  %v803_v1 = vunpack.c.l.b16 %v2928_v61  ;;  %v1045_v2 = vrot.slane %v560_v11, 3 }
  0x44   : > { %v576_v19 = vsel %vm575_vm5, %v574_v16, %v573_v17  ;;  %v580_v20 = vrot.slane %v561_v14, 1  ;;  %v2935_v4 = vld.sshfl [vmem:[%s2925_s17] sm:$0x1 pattern:$0x76325410]  ;;  %v804_v7 = vunpack.c.l.b16 %v2931_v0 }
  0x45   : > { %v579_v21 = vsel %vm578_vm6, %v577_v18, %v576_v19  ;;  %v2939_v8 = vld.sshfl [vmem:[%s2925_s17 + $0x6] sm:$0x1 pattern:$0x76325410]  ;;  %v802_v9 = vunpack.c.l.b16 %v2935_v4  ;;  %v810_v12 = vrot.slane %v803_v1, 7 }
  0x46   : > { %v582_v22 = vsel %vm581_vm7, %v580_v20, %v579_v21  ;;  %v2945_v13 = vld.sshfl [vmem:[%s2925_s17 + $0x8] sm:$0x1 pattern:$0x76325410]  ;;  %v805_v15 = vunpack.c.l.b16 %v2939_v8  ;;  %v812_v16 = vrot.slane %v804_v7, 6 }
  0x47   : > { %v583_v23 = vpack.c.b16 %v582_v22, %v582_v22  ;;  %v2951_v17 = vld.sshfl [vmem:[%s2925_s17 + $0xa] sm:$0x1 pattern:$0x76325410]  ;;  %v806_v18 = vunpack.c.l.b16 %v2945_v13  ;;  %v811_v19 = vsel %vm563_vm1, %v810_v12, %v802_v9 }
  0x48   : > { %v2958_v20 = vld.sshfl [vmem:[%s2925_s17 + $0xc] sm:$0x1 pattern:$0x76325410]  ;;  %v807_v21 = vunpack.c.l.b16 %v2951_v17  ;;  %v813_v22 = vsel %vm566_vm2, %v812_v16, %v811_v19 }
  0x49   : > { %2579 = vmatmul.mubr.msk.bf16.vlgmr.msra.gmra.mrb[0].mxu0 %vm671_vm8, %v583_v23  ;;  %v814_v23 = vrot.slane %v805_v15, 5  ;;  %v2506_v56 = vld.sshfl [vmem:[%s2836_s15 + $0x2] sm:$0x2 pattern:$0x76325410]  ;;  %v1275_v4 = vrot.slane %v806_v18, 5 }
  0x4a   : > { %2596 = vmatprep.mubr.msk.bf16.mxu0 %vm2693_vm0, %v2692_v24  ;;  %v1485_v52 = vunpack.c.l.b16 %v2506_v56  ;;  %v3046_v59 = vld.sshfl [vmem:[%s2836_s15 + $0x6] sm:$0x2 pattern:$0x76325410]  ;;  %v1043_v56 = vrot.slane %v559_v6, 4  ;;  %v1277_v0 = vrot.slane %v807_v21, 4 }
  0x4b   : > { %v1487_v62 = vunpack.c.l.b16 %v3046_v59 }
  0x4c   : > { %v1950_v5 = vrot.slane %v1485_v52, 2 }
 0x11c   : > { %v712_v34 = vpop.f32.mrb[0].mxu0 }
 0x11d   : > { %v718_v40 = vmul.f32 0.35355338, %v712_v34  ;;  %v2580_v41 = vpop.f32.mrb[1].mxu0 }
 0x11e   : > { %v715_v44 = vpop.f32.mrb[2].mxu0  ;;  %v2965_v34 = vld.sshfl [vmem:[%s2925_s17 + $0xe] sm:$0x1 pattern:$0x76325410]  ;;  %v816_v41 = vrot.slane %v806_v18, 4 }
 0x11f   : > { %v2581_v45 = vpop.f32.mrb[3].mxu0  ;;  %v725_v47 = vadd.f32 %v2916_v37, %v718_v40  ;;  %v808_v40 = vunpack.c.l.b16 %v2958_v20  ;;  %v809_v44 = vunpack.c.l.b16 %v2965_v34  ;;  %v2523_v20 = vld.sshfl [vmem:[%s2925_s17 + $0x2] sm:$0x2 pattern:$0x76325410] }
 0x120   : > { %v815_v45 = vsel %vm569_vm3, %v814_v23, %v813_v22  ;;  %v1122_v22 = vrot.slane %v648_v28, 1  ;;  %v2513_v23 = vld.sshfl [vmem:[%s2782_s27] sm:$0x2 pattern:$0x76325410]  ;;  %v1128_v28 = vrot.slane %v652_v36, 5 }
 0x121   : > { %v726_v48 = vsel %vm671_vm8, %v725_v47, -inf  ;;  %v1037_v36 = vrot.slane %v556_v60, 7  ;;  %v1281_v8 = vrot.slane %v809_v44, 2 }
 0x122   : > { %727 = vmax.xlane.f32.xlu0 %v726_v48  ;;  %v817_v48 = vsel %vm572_vm4, %v816_v41, %v815_v45  ;;  %v1124_v41 = vrot.slane %v650_v31, 7  ;;  %v2514_v45 = vld.sshfl [vmem:[%s2782_s27 + $0x2] sm:$0x2 pattern:$0x76325410] }
 0x123   : > { %v3001_v31 = vld.sshfl [vmem:[%s2782_s27 + $0x6] sm:$0x2 pattern:$0x76325410] }
 0x124   : > { %v2524_v34 = vld.sshfl [vmem:[%s2925_s17 + $0x4] sm:$0x2 pattern:$0x76325410] }
 0x1af   : > { %v728_v50 = vpop.xlane.xlu0 %727 }
 0x1b0   : > { %v729_v51 = vsub.f32 %v725_v47, %v728_v50  ;;  %v818_v47 = vrot.slane %v807_v21, 3  ;;  %v820_v50 = vrot.slane %v808_v40, 2  ;;  %v2522_v21 = vld.sshfl [vmem:[%s2925_s17] sm:$0x2 pattern:$0x76325410] }
 0x1b2   : > { %v730_v53 = vmul.f32 1.442695, %v729_v51  ;;  %v819_v51 = vsel %vm575_vm5, %v818_v47, %v817_v48  ;;  %v1123_v47 = vsel %vm563_vm1, %v649_v29, %v1122_v22  ;;  %v1126_v48 = vrot.slane %v651_v33, 6 }
 0x1b3   : > { %v1125_v25 = vsel %vm566_vm2, %v1124_v41, %v1123_v47  ;;  %v2515_v29 = vld.sshfl [vmem:[%s2782_s27 + $0x4] sm:$0x2 pattern:$0x76325410] }
 0x1b4   : > { %2652 = vpow2.f32 %v730_v53  ;;  %v822_v53 = vrot.slane %v809_v44, 1  ;;  %v1127_v26 = vsel %vm569_vm3, %v1126_v48, %v1125_v25  ;;  %v2517_v33 = vld.sshfl [vmem:[%s2782_s27 + $0x8] sm:$0x2 pattern:$0x76325410]  ;;  %v1573_v49 = vunpack.c.l.b16 %v2515_v29 }
 0x1b5   : > { %v1129_v32 = vsel %vm572_vm4, %v1128_v28, %v1127_v26  ;;  %v3023_v22 = vld.sshfl [vmem:[%s2782_s27 + $0xa] sm:$0x2 pattern:$0x76325410] }
 0x1b6   : > { %v3035_v47 = vld.sshfl [vmem:[%s2782_s27 + $0xc] sm:$0x2 pattern:$0x76325410]  ;;  %v1576_v28 = vunpack.c.l.b16 %v3023_v22 }
 0x1b7   : > { %v3039_v25 = vld.sshfl [vmem:[%s2782_s27 + $0xe] sm:$0x2 pattern:$0x76325410] }
 0x1be   : > { %v2920_v54 = vpop.eup %2652 }
 0x1bf   : > { %v732_v58 = vsel %vm671_vm8, %v2920_v54, 0.0 }
 0x1c0   : > { %733 = vadd.xlane.f32.xlu0 %v732_v58  ;;  %v821_v58 = vsel %vm578_vm6, %v820_v50, %v819_v51  ;;  %v1571_v50 = vunpack.c.l.b16 %v2513_v23  ;;  %v1572_v51 = vunpack.c.l.b16 %v2514_v45  ;;  %v1575_v23 = vunpack.c.l.b16 %v2517_v33 }
 0x1c1   : > { %v823_v12 = vsel %vm581_vm7, %v822_v53, %v821_v58  ;;  %v1130_v58 = vrot.slane %v653_v39, 4  ;;  %v1132_v39 = vrot.slane %v654_v43, 3  ;;  %v1039_v43 = vrot.slane %v557_v63, 6 }
 0x1c2   : > { %v824_v16 = vpack.c.b16 %v823_v12, %v823_v12  ;;  %v1579_v53 = vrot.slane %v1571_v50, 2  ;;  %v1580_v30 = vrot.slane %v1572_v51, 1  ;;  %v1574_v12 = vunpack.c.l.b16 %v3001_v31 }
 0x1c3   : > { %v1131_v41 = vsel %vm575_vm5, %v1130_v58, %v1129_v32  ;;  %v2037_v26 = vrot.slane %v1572_v51, 2  ;;  %v1585_v29 = vrot.slane %v1575_v23, 6  ;;  %v1493_v33 = vrot.slane %v1485_v52, 1 }
 0x1c4   : > { %v830_v19 = vsel %vm828_vm9, %v824_v16, 0  ;;  %v3010_v16 = vld.sshfl [vmem:[%s2836_s15] sm:$0x2 pattern:$0x76325410]  ;;  %v1581_v35 = vsel %vm563_vm1, %v1580_v30, %v1579_v53  ;;  %v1583_v55 = vrot.slane %v1574_v12, 7  ;;  %v1133_v42 = vsel %vm578_vm6, %v1132_v39, %v1131_v41 }
 0x1c5   : > { %2583 = vmatpush3.bf16.msra.mxu1 %v830_v19  ;;  %v1036_v19 = vsel %vm563_vm1, %v555_v57, %v1035_v27  ;;  %v1484_v60 = vunpack.c.l.b16 %v3010_v16  ;;  %v1134_v57 = vrot.slane %v655_v46, 2  ;;  %v1582_v48 = vsel %vm566_vm2, %v1573_v49, %v1581_v35  ;;  %v2507_v53 = vld.sshfl [vmem:[%s2836_s15 + $0x4] sm:$0x2 pattern:$0x76325410] }
 0x1c6   : > { %2588 = vmatprep.subr.bf16.mxu1 %v2692_v24  ;;  %v1038_v38 = vsel %vm566_vm2, %v1037_v36, %v1036_v19  ;;  %v2036_v27 = vrot.slane %v1571_v50, 3  ;;  %v1041_v46 = vrot.slane %v558_v3, 5  ;;  %v1584_v63 = vsel %vm569_vm3, %v1583_v55, %v1582_v48  ;;  %v2509_v36 = vld.sshfl [vmem:[%s2836_s15 + $0x8] sm:$0x2 pattern:$0x76325410] }
 0x1c7   : > { %v1492_v30 = vrot.slane %v1484_v60, 2  ;;  %v1040_v58 = vsel %vm569_vm3, %v1039_v43, %v1038_v38  ;;  %v1577_v16 = vunpack.c.l.b16 %v3035_v47  ;;  %v2039_v50 = vrot.slane %v1573_v49, 1 }
 0x1c8   : > { %v1135_v51 = vsel %vm581_vm7, %v1134_v57, %v1133_v42  ;;  %v1587_v32 = vrot.slane %v1576_v28, 5  ;;  %v2038_v3 = vsel %vm563_vm1, %v2037_v26, %v2036_v27  ;;  %v1578_v19 = vunpack.c.l.b16 %v3039_v25  ;;  %v2511_v42 = vld.sshfl [vmem:[%s2836_s15 + $0xc] sm:$0x2 pattern:$0x76325410] }
 0x1c9   : > { %v1586_v35 = vsel %vm572_vm4, %v1585_v29, %v1584_v63  ;;  %v1486_v39 = vunpack.c.l.b16 %v2507_v53  ;;  %v1042_v22 = vsel %vm572_vm4, %v1041_v46, %v1040_v58  ;;  %v1494_v49 = vsel %vm563_vm1, %v1493_v33, %v1492_v30 }
 0x1ca   : > { %v1136_v41 = vpack.c.b16 %v1135_v51, %v1135_v51  ;;  %v1589_v55 = vrot.slane %v1577_v16, 4  ;;  %v1488_v57 = vunpack.c.l.b16 %v2509_v36  ;;  %v2040_v38 = vsel %vm566_vm2, %v2039_v50, %v2038_v3  ;;  %v2512_v51 = vld.sshfl [vmem:[%s2836_s15 + $0xe] sm:$0x2 pattern:$0x76325410] }
 0x1cb   : > { %v1588_v6 = vsel %vm575_vm5, %v1587_v32, %v1586_v35  ;;  %v1496_v43 = vrot.slane %v1487_v62, 7  ;;  %v1044_v47 = vsel %vm575_vm5, %v1043_v56, %v1042_v22  ;;  %v1591_v48 = vrot.slane %v1578_v19, 3 }
 0x1cc   : > { %v1495_v25 = vsel %vm566_vm2, %v1486_v39, %v1494_v49  ;;  %v2042_v27 = vrot.slane %v1575_v23, 7  ;;  %v2041_v29 = vsel %vm569_vm3, %v1574_v12, %v2040_v38  ;;  %v1949_v59 = vrot.slane %v1484_v60, 3 }
 0x1cd   : > { %v1141_v63 = vsel %vm671_vm8, %v1136_v41, 0  ;;  %v1590_v53 = vsel %vm578_vm6, %v1589_v55, %v1588_v6  ;;  %v1498_v30 = vrot.slane %v1488_v57, 6  ;;  %v1046_v33 = vsel %vm578_vm6, %v1045_v2, %v1044_v47 }
 0x1ce   : > { %v1047_v23 = vrot.slane %v561_v14, 2  ;;  %v1497_v58 = vsel %vm569_vm3, %v1496_v43, %v1495_v25  ;;  %v2044_v50 = vrot.slane %v1576_v28, 6  ;;  %v1490_v12 = vunpack.c.l.b16 %v2511_v42 }
 0x1cf   : > { %v2043_v60 = vsel %vm572_vm4, %v2042_v27, %v2041_v29  ;;  %v1952_v52 = vrot.slane %v1486_v39, 1  ;;  %v1951_v36 = vsel %vm563_vm1, %v1950_v5, %v1949_v59  ;;  %v1499_v3 = vsel %vm572_vm4, %v1498_v30, %v1497_v58 }
 0x1d0   : > { %v2046_v10 = vrot.slane %v1577_v16, 5  ;;  %v1048_v14 = vsel %vm581_vm7, %v1047_v23, %v1046_v33  ;;  %v1491_v28 = vunpack.c.l.b16 %v2512_v51  ;;  %v2045_v56 = vsel %vm575_vm5, %v2044_v50, %v2043_v60 }
 0x1d1   : > { %v1502_v39 = vrot.slane %v1490_v12, 4  ;;  %v1953_v22 = vsel %vm566_vm2, %v1952_v52, %v1951_v36  ;;  %v2048_v41 = vrot.slane %v1578_v19, 4  ;;  %v1049_v55 = vpack.c.b16 %v1048_v14, %v1048_v14 }
 0x1d2   : > { %v2047_v16 = vsel %vm578_vm6, %v2046_v10, %v2045_v56  ;;  %v1504_v38 = vrot.slane %v1491_v28, 3  ;;  %v1954_v2 = vsel %vm569_vm3, %v1487_v62, %v1953_v22  ;;  %v1961_v42 = vrot.slane %v1491_v28, 4 }
 0x1d3   : > { %v2049_v47 = vsel %vm581_vm7, %v2048_v41, %v2047_v16 }
 0x1d4   : > { %v2050_v62 = vpack.c.b16 %v2049_v47, %v2049_v47 }
 0x24d   : > { %v734_v45 = vpop.xlane.xlu0 %733 }
 0x24e   : > { %2654 = vrcp.f32 %v734_v45  ;;  %v2510_v45 = vld.sshfl [vmem:[%s2836_s15 + $0xa] sm:$0x2 pattern:$0x76325410] }
 0x24f   : > { %v1489_v46 = vunpack.c.l.b16 %v2510_v45  ;;  %v1955_v45 = vrot.slane %v1488_v57, 7  ;;  %v1959_v57 = vrot.slane %v1490_v12, 5 }
 0x251   : > { %v1500_v32 = vrot.slane %v1489_v46, 5  ;;  %v1956_v25 = vsel %vm572_vm4, %v1955_v45, %v1954_v2 }
 0x253   : > { %v1501_v49 = vsel %vm575_vm5, %v1500_v32, %v1499_v3 }
 0x254   : > { %v1503_v43 = vsel %vm578_vm6, %v1502_v39, %v1501_v49 }
 0x255   : > { %v1505_v19 = vsel %vm581_vm7, %v1504_v38, %v1503_v43 }
 0x258   : > { %v2655_v26 = vpop.eup %2654 }
 0x259   : > { %v736_v11 = vmul.f32 %v2655_v26, %v2920_v54  ;;  %v1592_v54 = vsel %vm581_vm7, %v1591_v48, %v1590_v53  ;;  %v1957_v48 = vrot.slane %v1489_v46, 6  ;;  %v1506_v26 = vpack.c.b16 %v1505_v19, %v1505_v19 }
 0x25a   : > { %v1593_v35 = vpack.c.b16 %v1592_v54, %v1592_v54  ;;  %v2055_v46 = vsel %vm671_vm8, %v2050_v62, 0  ;;  %v877_v53 = vlaneseq }
 0x25b   : > { %v737_v31 = vpack.c.bf16 %v736_v11, %v736_v11  ;;  %v1958_v27 = vsel %vm575_vm5, %v1957_v48, %v1956_v25  ;;  %v2694_v11 = vmov 1966171168  }
 0x25c   : > { %v1598_v6 = vsel %vm671_vm8, %v1593_v35, 0  ;;  %v1960_v29 = vsel %vm578_vm6, %v1959_v57, %v1958_v27  ;;  %v878_v33 = vshrl.u32 %v877_v53, 7 }
 0x25d   : > { %2585 = vmatmul.mubr.msk.bf16.vlgmr.msra.gmra.mrb[0].mxu1 %vm671_vm8, %v737_v31  ;;  %v1962_v59 = vsel %vm581_vm7, %v1961_v42, %v1960_v29 }
 0x25e   : > { %2589 = vmatpush3.bf16.xpose.msra.mxu1 %v1141_v63  ;;  %2590 = vmatprep.mubr.msk.bf16.mxu1 %vm2693_vm0, %v2692_v24  ;;  %v1963_v5 = vpack.c.b16 %v1962_v59, %v1962_v59  ;;  %v875_v63 = vunpack.c.l.s4 %v2694_v11 }
 0x25f   : > { %2600 = vmatprep.subr.bf16.mxu1 %v2692_v24 }
 0x260   : > { %v876_v30 = vunpack.c.0.s8 %v875_v63 }
 0x262   : > { %v3112_v23 = vsub.s32 %v876_v30, %v878_v33 }
 0x265   : > { %2591 = vmatmul.mubr.msk.bf16.vlgmr.msra.gmra.mrb[4].mxu1 %vm671_vm8, %v1049_v55 }
 0x266   : > { %2601 = vmatpush3.bf16.xpose.msra.mxu1 %v1598_v6  ;;  %2602 = vmatprep.mubr.msk.bf16.mxu1 %vm2693_vm0, %v2692_v24 }
 0x267   : > { %2612 = vmatprep.subr.bf16.mxu1 %v2692_v24 }
 0x26d   : > { %2603 = vmatmul.mubr.msk.bf16.vlgmr.msra.gmra.mrb[8].mxu1 %vm671_vm8, %v1506_v26 }
 0x26e   : > { %2613 = vmatpush3.bf16.xpose.msra.mxu1 %v2055_v46  ;;  %2614 = vmatprep.mubr.msk.bf16.mxu1 %vm2693_vm0, %v2692_v24 }
 0x275   : > { %2615 = vmatmul.mubr.msk.bf16.vlgmr.msra.gmra.mrb[12].mxu1 %vm671_vm8, %v1963_v5 }
 0x330   : > { %v866_v58 = vpop.f32.mrb[0].mxu1 }
 0x331   : > { %v873_v50 = vcombine.high %v866_v58, %v866_v58  ;;  %v880_v31 = vrot.slane %v866_v58, %v3112_v23  ;;  %v2586_v51 = vpop.f32.mrb[1].mxu1 }
 0x332   : > { %v869_v12 = vpop.f32.mrb[2].mxu1 }
 0x333   : > { %v887_v60 = vrot.slane %v873_v50, %v3112_v23  ;;  %v888_v52 = vcombine.high %v880_v31, %v880_v31  ;;  %v896_v54 = vrot.slane %v880_v31, %v3112_v23  ;;  %v2587_v32 = vpop.f32.mrb[3].mxu1 }
 0x334   : > { %v1271_v32 = vrot.slane %v804_v7, 7 }
 0x335   : > { %v889_v36 = vcombine.high %v887_v60, %v887_v60  ;;  %v903_v3 = vrot.slane %v887_v60, %v3112_v23  ;;  %v910_v10 = vrot.slane %v888_v52, %v3112_v23  ;;  %v918_v14 = vcombine.high %v896_v54, %v896_v54  ;;  %931 = vst.msk [vmem:[%s3119_s8] sm:$0x1] %vm930_vm10, %v896_v54 }
 0x336   : > { %v1269_v52 = vrot.slane %v802_v9, 1 }
 0x337   : > { %v917_v28 = vrot.slane %v889_v36, %v3112_v23  ;;  %v919_v56 = vcombine.high %v903_v3, %v903_v3  ;;  %v920_v35 = vcombine.high %v910_v10, %v910_v10  ;;  %932 = vst.msk [vmem:[%s3119_s8 + $0x4] sm:$0x1] %vm930_vm10, %v910_v10  ;;  %933 = vst.msk [vmem:[%s3119_s8 + $0x8] sm:$0x1] %vm930_vm10, %v918_v14  ;;  %v1719_v14 = vunpack.c.l.b16 %v2523_v20 }
 0x338   : > { %935 = vst.msk [vmem:[%s3119_s8 + $0x10] sm:$0x1] %vm930_vm10, %v903_v3  ;;  %v1177_v39 = vpop.f32.mrb[4].mxu1  ;;  %v1270_v36 = vsel %vm563_vm1, %v803_v1, %v1269_v52  ;;  %v1273_v3 = vrot.slane %v805_v15, 6  ;;  %v1279_v1 = vrot.slane %v808_v40, 3  ;;  %v1718_v40 = vunpack.c.l.b16 %v2522_v21 }
 0x339   : > { %v921_v22 = vcombine.high %v917_v28, %v917_v28  ;;  %934 = vst.msk [vmem:[%s3119_s8 + $0xc] sm:$0x1] %vm930_vm10, %v920_v35  ;;  %936 = vst.msk [vmem:[%s3119_s8 + $0x14] sm:$0x1] %vm930_vm10, %v917_v28  ;;  %v1183_v49 = vmul.f32 0.35355338, %v1177_v39  ;;  %v1272_v10 = vsel %vm566_vm2, %v1271_v32, %v1270_v36 }
 0x33a   : > { %937 = vst.msk [vmem:[%s3119_s8 + $0x18] sm:$0x1] %vm930_vm10, %v919_v56  ;;  %v2592_v41 = vpop.f32.mrb[5].mxu1  ;;  %v1274_v9 = vsel %vm569_vm3, %v1273_v3, %v1272_v10  ;;  %v1726_v56 = vrot.slane %v1718_v40, 2  ;;  %v1727_v44 = vrot.slane %v1719_v14, 1 }
 0x33b   : > { %v1180_v55 = vpop.f32.mrb[6].mxu1  ;;  %938 = vst.msk [vmem:[%s3119_s8 + $0x1c] sm:$0x1] %vm930_vm10, %v921_v22  ;;  %v1184_v45 = vadd.f32 %v2916_v37, %v1183_v49  ;;  %v1276_v61 = vsel %vm572_vm4, %v1275_v4, %v1274_v9  ;;  %v1720_v22 = vunpack.c.l.b16 %v2524_v34 }
 0x33c   : > { %v2593_v16 = vpop.f32.mrb[7].mxu1  ;;  %v1278_v7 = vsel %vm575_vm5, %v1277_v0, %v1276_v61  ;;  %v2525_v28 = vld.sshfl [vmem:[%s2925_s17 + $0x6] sm:$0x2 pattern:$0x76325410]  ;;  %v1728_v49 = vsel %vm563_vm1, %v1727_v44, %v1726_v56 }
 0x33d   : > { %v1185_v38 = vsel %vm671_vm8, %v1184_v45, -inf  ;;  %v1280_v13 = vsel %vm578_vm6, %v1279_v1, %v1278_v7  ;;  %v2526_v35 = vld.sshfl [vmem:[%s2925_s17 + $0x8] sm:$0x2 pattern:$0x76325410]  ;;  %v1721_v39 = vunpack.c.l.b16 %v2525_v28 }
 0x33e   : > { %1186 = vmax.xlane.f32.xlu1 %v1185_v38  ;;  %v1282_v15 = vsel %vm581_vm7, %v1281_v8, %v1280_v13  ;;  %v2527_v41 = vld.sshfl [vmem:[%s2925_s17 + $0xa] sm:$0x2 pattern:$0x76325410]  ;;  %v1722_v55 = vunpack.c.l.b16 %v2526_v35 }
 0x33f   : > { %v1283_v18 = vpack.c.b16 %v1282_v15, %v1282_v15  ;;  %v1730_v16 = vrot.slane %v1721_v39, 7  ;;  %v2528_v38 = vld.sshfl [vmem:[%s2925_s17 + $0xc] sm:$0x2 pattern:$0x76325410] }
 0x340   : > { %v1634_v2 = vpop.f32.mrb[8].mxu1 }
 0x341   : > { %v1640_v6 = vmul.f32 0.35355338, %v1634_v2  ;;  %v2604_v43 = vpop.f32.mrb[9].mxu1  ;;  %v1288_v17 = vsel %vm828_vm9, %v1283_v18, 0  ;;  %v1723_v2 = vunpack.c.l.b16 %v2527_v41 }
 0x342   : > { %v1637_v47 = vpop.f32.mrb[10].mxu1  ;;  %2595 = vmatpush3.bf16.msra.mxu0 %v1288_v17  ;;  %v2184_v43 = vrot.slane %v1719_v14, 2 }
 0x343   : > { %v2605_v48 = vpop.f32.mrb[11].mxu1  ;;  %v1641_v25 = vadd.f32 %v2916_v37, %v1640_v6  ;;  %2606 = vmatprep.subr.bf16.mxu0 %v2692_v24  ;;  %v2183_v6 = vrot.slane %v1718_v40, 3  ;;  %v1732_v47 = vrot.slane %v1722_v55, 6 }
 0x345   : > { %v1642_v19 = vsel %vm671_vm8, %v1641_v25, -inf }
 0x346   : > { %1643 = vmax.xlane.f32.xlu1 %v1642_v19  ;;  %v1724_v19 = vunpack.c.l.b16 %v2528_v38 }
 0x348   : > { %v2091_v62 = vpop.f32.mrb[12].mxu1 }
 0x349   : > { %v2097_v57 = vmul.f32 0.35355338, %v2091_v62  ;;  %v2616_v27 = vpop.f32.mrb[13].mxu1  ;;  %v2186_v62 = vrot.slane %v1720_v22, 1 }
 0x34a   : > { %v2094_v26 = vpop.f32.mrb[14].mxu1  ;;  %v2185_v27 = vsel %vm563_vm1, %v2184_v43, %v2183_v6 }
 0x34b   : > { %v2617_v42 = vpop.f32.mrb[15].mxu1  ;;  %v2098_v46 = vadd.f32 %v2916_v37, %v2097_v57  ;;  %v1734_v57 = vrot.slane %v1723_v2, 5 }
 0x34d   : > { %v2099_v29 = vsel %vm671_vm8, %v2098_v46, -inf }
 0x34e   : > { %2100 = vmax.xlane.f32.xlu0 %v2099_v29  ;;  %v1736_v29 = vrot.slane %v1724_v19, 4 }
 0x3cb   : > { %v1187_v59 = vpop.xlane.xlu1 %1186 }
 0x3cc   : > { %v1188_v5 = vsub.f32 %v1184_v45, %v1187_v59  ;;  %v1729_v45 = vsel %vm566_vm2, %v1720_v22, %v1728_v49  ;;  %v2187_v59 = vsel %vm566_vm2, %v2186_v62, %v2185_v27 }
 0x3cd   : > { %v1731_v48 = vsel %vm569_vm3, %v1730_v16, %v1729_v45 }
 0x3ce   : > { %v1189_v11 = vmul.f32 1.442695, %v1188_v5  ;;  %v1733_v26 = vsel %vm572_vm4, %v1732_v47, %v1731_v48 }
 0x3cf   : > { %v1735_v5 = vsel %vm575_vm5, %v1734_v57, %v1733_v26 }
 0x3d0   : > { %2656 = vpow2.f32 %v1189_v11  ;;  %v2189_v11 = vrot.slane %v1722_v55, 7 }
 0x3d3   : > { %v1644_v63 = vpop.xlane.xlu1 %1643 }
 0x3d4   : > { %v1645_v53 = vsub.f32 %v1641_v25, %v1644_v63  ;;  %v2529_v25 = vld.sshfl [vmem:[%s2925_s17 + $0xe] sm:$0x2 pattern:$0x76325410] }
 0x3d5   : > { %v1725_v42 = vunpack.c.l.b16 %v2529_v25 }
 0x3d6   : > { %v1646_v30 = vmul.f32 1.442695, %v1645_v53  ;;  %v2188_v53 = vsel %vm569_vm3, %v1721_v39, %v2187_v59 }
 0x3d7   : > { %v1738_v63 = vrot.slane %v1725_v42, 3  ;;  %v2195_v36 = vrot.slane %v1725_v42, 4 }
 0x3d8   : > { %2658 = vpow2.f32 %v1646_v30  ;;  %v1737_v30 = vsel %vm578_vm6, %v1736_v29, %v1735_v5 }
 0x3da   : > { %v3148_v33 = vpop.eup %2656 }
 0x3db   : > { %v2101_v58 = vpop.xlane.xlu0 %2100  ;;  %v1191_v50 = vsel %vm671_vm8, %v3148_v33, 0.0 }
 0x3dc   : > { %v2102_v31 = vsub.f32 %v2098_v46, %v2101_v58  ;;  %1192 = vadd.xlane.f32.xlu1 %v1191_v50  ;;  %v2191_v58 = vrot.slane %v1723_v2, 6  ;;  %v2190_v50 = vsel %vm572_vm4, %v2189_v11, %v2188_v53 }
 0x3de   : > { %v2103_v37 = vmul.f32 1.442695, %v2102_v31  ;;  %v1739_v31 = vsel %vm581_vm7, %v1738_v63, %v1737_v30  ;;  %v2192_v52 = vsel %vm575_vm5, %v2191_v58, %v2190_v50 }
 0x3e0   : > { %2660 = vpow2.f32 %v2103_v37 }
 0x3e2   : > { %v3152_v51 = vpop.eup %2658 }
 0x3e3   : > { %v1648_v12 = vsel %vm671_vm8, %v3152_v51, 0.0 }
 0x3e4   : > { %1649 = vadd.xlane.f32.xlu0 %v1648_v12  ;;  %v2193_v12 = vrot.slane %v1724_v19, 5 }
 0x3e6   : > { %v2194_v10 = vsel %vm578_vm6, %v2193_v12, %v2192_v52 }
 0x3e7   : > { %v2196_v0 = vsel %vm581_vm7, %v2195_v36, %v2194_v10 }
 0x3e8   : > { %v2197_v1 = vpack.c.b16 %v2196_v0, %v2196_v0 }
 0x3ea   : > { %v3156_v60 = vpop.eup %2660  ;;  %v2202_v13 = vsel %vm828_vm9, %v2197_v1, 0 }
 0x3eb   : > { %v2105_v54 = vsel %vm671_vm8, %v3156_v60, 0.0 }
 0x3ec   : > { %2106 = vadd.xlane.f32.xlu1 %v2105_v54  ;;  %v1740_v54 = vpack.c.b16 %v1739_v31, %v1739_v31 }
 0x3ee   : > { %v1745_v9 = vsel %vm828_vm9, %v1740_v54, 0 }
 0x469   : > { %v1193_v46 = vpop.xlane.xlu1 %1192 }
 0x46a   : > { %2662 = vrcp.f32 %v1193_v46 }
 0x471   : > { %v1650_v37 = vpop.xlane.xlu0 %1649 }
 0x472   : > { %2664 = vrcp.f32 %v1650_v37 }
 0x474   : > { %v2663_v32 = vpop.eup %2662 }
 0x475   : > { %v1195_v3 = vmul.f32 %v2663_v32, %v3148_v33 }
 0x477   : > { %v1196_v4 = vpack.c.bf16 %v1195_v3, %v1195_v3 }
 0x479   : > { %2597 = vmatmul.mubr.msk.bf16.vlgmr.msra.gmra.mrb[4].mxu0 %vm671_vm8, %v1196_v4  ;;  %v2107_v61 = vpop.xlane.xlu1 %2106 }
 0x47a   : > { %2607 = vmatpush3.bf16.msra.mxu0 %v1745_v9  ;;  %2666 = vrcp.f32 %v2107_v61  ;;  %2608 = vmatprep.mubr.msk.bf16.mxu0 %vm2693_vm0, %v2692_v24 }
 0x47b   : > { %2618 = vmatprep.subr.bf16.mxu0 %v2692_v24 }
 0x47c   : > { %v2665_v7 = vpop.eup %2664 }
 0x47d   : > { %v1652_v33 = vmul.f32 %v2665_v7, %v3152_v51 }
 0x47f   : > { %v1653_v8 = vpack.c.bf16 %v1652_v33, %v1652_v33 }
 0x481   : > { %2609 = vmatmul.mubr.msk.bf16.vlgmr.msra.gmra.mrb[8].mxu0 %vm671_vm8, %v1653_v8 }
 0x482   : > { %2619 = vmatpush3.bf16.msra.mxu0 %v2202_v13  ;;  %2620 = vmatprep.mubr.msk.bf16.mxu0 %vm2693_vm0, %v2692_v24 }
 0x484   : > { %v2667_v15 = vpop.eup %2666 }
 0x485   : > { %v2109_v18 = vmul.f32 %v2667_v15, %v3156_v60 }
 0x487   : > { %v2110_v17 = vpack.c.bf16 %v2109_v18, %v2109_v18 }
 0x489   : > { %2621 = vmatmul.mubr.msk.bf16.vlgmr.msra.gmra.mrb[12].mxu0 %vm671_vm8, %v2110_v17 }
 0x54c   : > { %v1324_v21 = vpop.f32.mrb[4].mxu0 }
 0x54d   : > { %v1331_v20 = vcombine.high %v1324_v21, %v1324_v21  ;;  %v1338_v51 = vrot.slane %v1324_v21, %v3112_v23  ;;  %v2598_v40 = vpop.f32.mrb[5].mxu0 }
 0x54e   : > { %v1327_v14 = vpop.f32.mrb[6].mxu0 }
 0x54f   : > { %v1345_v28 = vrot.slane %v1331_v20, %v3112_v23  ;;  %v1346_v34 = vcombine.high %v1338_v51, %v1338_v51  ;;  %v1354_v24 = vrot.slane %v1338_v51, %v3112_v23  ;;  %v2599_v60 = vpop.f32.mrb[7].mxu0 }
 0x551   : > { %v1347_v56 = vcombine.high %v1345_v28, %v1345_v28  ;;  %v1361_v44 = vrot.slane %v1345_v28, %v3112_v23  ;;  %v1368_v35 = vrot.slane %v1346_v34, %v3112_v23  ;;  %v1376_v39 = vcombine.high %v1354_v24, %v1354_v24  ;;  %1388 = vst.msk [vmem:[%s3119_s8 + $0x1] sm:$0x1] %vm930_vm10, %v1354_v24 }
 0x553   : > { %v1375_v22 = vrot.slane %v1347_v56, %v3112_v23  ;;  %v1377_v49 = vcombine.high %v1361_v44, %v1361_v44  ;;  %v1378_v41 = vcombine.high %v1368_v35, %v1368_v35  ;;  %1389 = vst.msk [vmem:[%s3119_s8 + $0x5] sm:$0x1] %vm930_vm10, %v1368_v35  ;;  %1390 = vst.msk [vmem:[%s3119_s8 + $0x9] sm:$0x1] %vm930_vm10, %v1376_v39 }
 0x554   : > { %1392 = vst.msk [vmem:[%s3119_s8 + $0x11] sm:$0x1] %vm930_vm10, %v1361_v44  ;;  %v1781_v55 = vpop.f32.mrb[8].mxu0 }
 0x555   : > { %v1379_v16 = vcombine.high %v1375_v22, %v1375_v22  ;;  %1391 = vst.msk [vmem:[%s3119_s8 + $0xd] sm:$0x1] %vm930_vm10, %v1378_v41  ;;  %1393 = vst.msk [vmem:[%s3119_s8 + $0x15] sm:$0x1] %vm930_vm10, %v1375_v22  ;;  %v1788_v45 = vcombine.high %v1781_v55, %v1781_v55  ;;  %v1795_v38 = vrot.slane %v1781_v55, %v3112_v23  ;;  %v2610_v2 = vpop.f32.mrb[9].mxu0 }
 0x556   : > { %1394 = vst.msk [vmem:[%s3119_s8 + $0x19] sm:$0x1] %vm930_vm10, %v1377_v49  ;;  %v1784_v6 = vpop.f32.mrb[10].mxu0 }
 0x557   : > { %1395 = vst.msk [vmem:[%s3119_s8 + $0x1d] sm:$0x1] %vm930_vm10, %v1379_v16  ;;  %v1802_v43 = vrot.slane %v1788_v45, %v3112_v23  ;;  %v1803_v47 = vcombine.high %v1795_v38, %v1795_v38  ;;  %v1811_v48 = vrot.slane %v1795_v38, %v3112_v23  ;;  %v2611_v25 = vpop.f32.mrb[11].mxu0 }
 0x559   : > { %v1804_v19 = vcombine.high %v1802_v43, %v1802_v43  ;;  %v1818_v62 = vrot.slane %v1802_v43, %v3112_v23  ;;  %v1825_v57 = vrot.slane %v1803_v47, %v3112_v23  ;;  %v1833_v27 = vcombine.high %v1811_v48, %v1811_v48  ;;  %1845 = vst.msk [vmem:[%s3119_s8 + $0x2] sm:$0x1] %vm930_vm10, %v1811_v48 }
 0x55b   : > { %v1832_v26 = vrot.slane %v1804_v19, %v3112_v23  ;;  %v1834_v42 = vcombine.high %v1818_v62, %v1818_v62  ;;  %v1835_v46 = vcombine.high %v1825_v57, %v1825_v57  ;;  %1846 = vst.msk [vmem:[%s3119_s8 + $0x6] sm:$0x1] %vm930_vm10, %v1825_v57  ;;  %1847 = vst.msk [vmem:[%s3119_s8 + $0xa] sm:$0x1] %vm930_vm10, %v1833_v27 }
 0x55c   : > { %1849 = vst.msk [vmem:[%s3119_s8 + $0x12] sm:$0x1] %vm930_vm10, %v1818_v62  ;;  %v2238_v29 = vpop.f32.mrb[12].mxu0 }
 0x55d   : > { %v1836_v59 = vcombine.high %v1832_v26, %v1832_v26  ;;  %1848 = vst.msk [vmem:[%s3119_s8 + $0xe] sm:$0x1] %vm930_vm10, %v1835_v46  ;;  %1850 = vst.msk [vmem:[%s3119_s8 + $0x16] sm:$0x1] %vm930_vm10, %v1832_v26  ;;  %v2245_v5 = vcombine.high %v2238_v29, %v2238_v29  ;;  %v2252_v11 = vrot.slane %v2238_v29, %v3112_v23  ;;  %v2622_v63 = vpop.f32.mrb[13].mxu0 }
 0x55e   : > { %1851 = vst.msk [vmem:[%s3119_s8 + $0x1a] sm:$0x1] %vm930_vm10, %v1834_v42  ;;  %v2241_v53 = vpop.f32.mrb[14].mxu0 }
 0x55f   : > { %1852 = vst.msk [vmem:[%s3119_s8 + $0x1e] sm:$0x1] %vm930_vm10, %v1836_v59  ;;  %v2259_v30 = vrot.slane %v2245_v5, %v3112_v23  ;;  %v2260_v58 = vcombine.high %v2252_v11, %v2252_v11  ;;  %v2268_v50 = vrot.slane %v2252_v11, %v3112_v23  ;;  %v2623_v31 = vpop.f32.mrb[15].mxu0 }
 0x561   : > { %v2261_v37 = vcombine.high %v2259_v30, %v2259_v30  ;;  %v2275_v12 = vrot.slane %v2259_v30, %v3112_v23  ;;  %v2282_v52 = vrot.slane %v2260_v58, %v3112_v23  ;;  %v2290_v54 = vcombine.high %v2268_v50, %v2268_v50  ;;  %2302 = vst.msk [vmem:[%s3119_s8 + $0x3] sm:$0x1] %vm930_vm10, %v2268_v50 }
 0x563   : > { %v2289_v32 = vrot.slane %v2261_v37, %v3112_v23  ;;  %v2291_v36 = vcombine.high %v2275_v12, %v2275_v12  ;;  %v2292_v3 = vcombine.high %v2282_v52, %v2282_v52  ;;  %2303 = vst.msk [vmem:[%s3119_s8 + $0x7] sm:$0x1] %vm930_vm10, %v2282_v52  ;;  %2304 = vst.msk [vmem:[%s3119_s8 + $0xb] sm:$0x1] %vm930_vm10, %v2290_v54 }
 0x564   : > { %2306 = vst.msk [vmem:[%s3119_s8 + $0x13] sm:$0x1] %vm930_vm10, %v2275_v12 }
 0x565   : > { %v2293_v10 = vcombine.high %v2289_v32, %v2289_v32  ;;  %2305 = vst.msk [vmem:[%s3119_s8 + $0xf] sm:$0x1] %vm930_vm10, %v2292_v3  ;;  %2307 = vst.msk [vmem:[%s3119_s8 + $0x17] sm:$0x1] %vm930_vm10, %v2289_v32 }
 0x566   : > { %2308 = vst.msk [vmem:[%s3119_s8 + $0x1b] sm:$0x1] %vm930_vm10, %v2291_v36 }
 0x567   : > { %2309 = vst.msk [vmem:[%s3119_s8 + $0x1f] sm:$0x1] %vm930_vm10, %v2293_v10 }
 0x568 PF: > { %p11_p9 = scmp.ge.s32.totalorder %s2737_s19, 4   ;;  %s3302_s15 = smov %s2686_s16 }
 0x569   : > { %s3303_s16 = smov %s2746_s22  ;;  %s3304_s17 = smov %s2737_s19 }
 0x56a   :  { %13 = sbr.rel (!%p11_p9) target bundleno = 2 (0x2), region = 213 }

// kernel: encoder_forward.17
= control target key start
LH: loop header
LB: loop body
LE: loop exit
PB: predicated region body
PF: predicated region fallthrough
CT: control target
= control target key end

     0   :  { %v863_v3 = vmov 0   ;;  %vm294_vm0 = vcmask 261120   ;;  %s1118_s1 = inlined_call_operand.vmem [shape: bf16[32,2048], index: 1, kind: input, shape index: {}]   ;;  %s1119_s0 = inlined_call_operand.vmem [shape: f32[16,32], index: 0, kind: input, shape index: {}]   ;;  %s1120_s2 = inlined_call_operand.vmem [shape: f32[1,2048], index: 2, kind: input, shape index: {}]   ;;  %s1121_s3 = inlined_call_operand.vmem [shape: bf16[16,2048], index: 3, kind: output, shape index: {}]  }
   0x1   :  { %v18_v0 = vld [vmem:[%s1118_s1] sm:$0xff]  ;;  %v19_v2 = vld [vmem:[%s1118_s1 + $0x8] sm:$0xff]  ;;  %330 = vmatprep.mubr.bf16.mxu0 %v863_v3  ;;  %373 = vmatprep.mubr.bf16.mxu1 %v863_v3  ;;  %v20_v16 = vld [vmem:[%s1118_s1 + $0x10] sm:$0xff] }
   0x2   :  { %v26_v1 = vld [vmem:[%s1118_s1 + $0x40] sm:$0xff]  ;;  %v27_v5 = vld [vmem:[%s1118_s1 + $0x48] sm:$0xff]  ;;  %v28_v17 = vld [vmem:[%s1118_s1 + $0x50] sm:$0xff] }
   0x3   :  { %v791_v4 = vcombine.high %v18_v0, %v26_v1  ;;  %v790_v6 = vcombine.low %v18_v0, %v26_v1  ;;  %v34_v7 = vld [vmem:[%s1118_s1 + $0x80] sm:$0xff]  ;;  %v793_v9 = vcombine.high %v19_v2, %v27_v5  ;;  %v792_v10 = vcombine.low %v19_v2, %v27_v5  ;;  %v35_v12 = vld [vmem:[%s1118_s1 + $0x88] sm:$0xff]  ;;  %v21_v20 = vld [vmem:[%s1118_s1 + $0x18] sm:$0xff] }
   0x4   :  { %v42_v8 = vld [vmem:[%s1118_s1 + $0xc0] sm:$0xff]  ;;  %v43_v13 = vld [vmem:[%s1118_s1 + $0xc8] sm:$0xff]  ;;  %v29_v21 = vld [vmem:[%s1118_s1 + $0x58] sm:$0xff]  ;;  %v795_v23 = vcombine.high %v20_v16, %v28_v17  ;;  %v794_v30 = vcombine.low %v20_v16, %v28_v17  ;;  %v54_v5 = vlaneseq }
   0x5   :  { %v807_v11 = vcombine.high %v34_v7, %v42_v8  ;;  %298 = vmatprep.subr.bf16.mxu0 %v791_v4  ;;  %v809_v14 = vcombine.high %v35_v12, %v43_v13  ;;  %v15_v15 = vld [vmem:[%s1119_s0] sm:$0xff]  ;;  %341 = vmatprep.subr.bf16.mxu1 %v793_v9  ;;  %v806_v18 = vcombine.low %v34_v7, %v42_v8  ;;  %v16_v19 = vld [vmem:[%s1119_s0 + $0x8] sm:$0xff]  ;;  %v36_v25 = vld [vmem:[%s1118_s1 + $0x90] sm:$0xff] }
   0x6   :  { %299 = vmatpush1.bf16.msra.mxu0 %v790_v6  ;;  %342 = vmatpush1.bf16.msra.mxu1 %v792_v10  ;;  %v808_v22 = vcombine.low %v35_v12, %v43_v13  ;;  %v797_v24 = vcombine.high %v21_v20, %v29_v21  ;;  %v44_v26 = vld [vmem:[%s1118_s1 + $0xd0] sm:$0xff]  ;;  %v934_v27 = vpack.c.bf16 %v16_v19, %v15_v15  ;;  %v37_v28 = vld [vmem:[%s1118_s1 + $0x98] sm:$0xff]  ;;  %v22_v34 = vld [vmem:[%s1118_s1 + $0x20] sm:$0xff]  ;;  %v1012_v6 = vshrl.u32 %v54_v5, 7 }
   0x7   :  { %300 = vmatprep.subr.bf16.mxu0 %v807_v11  ;;  %343 = vmatprep.subr.bf16.mxu1 %v809_v14  ;;  %v45_v29 = vld [vmem:[%s1118_s1 + $0xd8] sm:$0xff]  ;;  %v796_v31 = vcombine.low %v21_v20, %v29_v21  ;;  %v811_v32 = vcombine.high %v36_v25, %v44_v26  ;;  %v30_v35 = vld [vmem:[%s1118_s1 + $0x60] sm:$0xff]  ;;  %v23_v36 = vld [vmem:[%s1118_s1 + $0x28] sm:$0xff]  ;;  %v810_v38 = vcombine.low %v36_v25, %v44_v26 }
   0x8   :  { %v813_v33 = vcombine.high %v37_v28, %v45_v29  ;;  %v31_v37 = vld [vmem:[%s1118_s1 + $0x68] sm:$0xff]  ;;  %v812_v39 = vcombine.low %v37_v28, %v45_v29  ;;  %v799_v40 = vcombine.high %v22_v34, %v30_v35  ;;  %v38_v42 = vld [vmem:[%s1118_s1 + $0xa0] sm:$0xff]  ;;  %v798_v46 = vcombine.low %v22_v34, %v30_v35  ;;  %v24_v50 = vld [vmem:[%s1118_s1 + $0x30] sm:$0xff] }
   0x9   :  { %v801_v41 = vcombine.high %v23_v36, %v31_v37  ;;  %v46_v43 = vld [vmem:[%s1118_s1 + $0xe0] sm:$0xff]  ;;  %v39_v44 = vld [vmem:[%s1118_s1 + $0xa8] sm:$0xff]  ;;  %v800_v47 = vcombine.low %v23_v36, %v31_v37  ;;  %v32_v51 = vld [vmem:[%s1118_s1 + $0x70] sm:$0xff]  ;;  %v56_v7 = vsub.s32 0, %v1012_v6  ;;  %v64_v9 = vsub.s32 2, %v1012_v6 }
   0xa   :  { %301 = vmatpush1.bf16.msra.mxu0 %v806_v18  ;;  %344 = vmatpush1.bf16.msra.mxu1 %v808_v22  ;;  %v47_v45 = vld [vmem:[%s1118_s1 + $0xe8] sm:$0xff]  ;;  %v815_v48 = vcombine.high %v38_v42, %v46_v43  ;;  %v25_v52 = vld [vmem:[%s1118_s1 + $0x38] sm:$0xff]  ;;  %v814_v54 = vcombine.low %v38_v42, %v46_v43  ;;  %v803_v56 = vcombine.high %v24_v50, %v32_v51  ;;  %v40_v58 = vld [vmem:[%s1118_s1 + $0xb0] sm:$0xff]  ;;  %v68_v10 = vsub.s32 3, %v1012_v6 }
   0xb   :  { %384 = vmatprep.subr.bf16.mxu0 %v795_v23  ;;  %427 = vmatprep.subr.bf16.mxu1 %v797_v24  ;;  %v817_v49 = vcombine.high %v39_v44, %v47_v45  ;;  %v33_v53 = vld [vmem:[%s1118_s1 + $0x78] sm:$0xff]  ;;  %v816_v55 = vcombine.low %v39_v44, %v47_v45  ;;  %v48_v59 = vld [vmem:[%s1118_s1 + $0xf0] sm:$0xff]  ;;  %v802_v62 = vcombine.low %v24_v50, %v32_v51  ;;  %v50_v8 = vld [vmem:[%s1120_s2] sm:$0xff]  ;;  %v72_v15 = vsub.s32 4, %v1012_v6 }
   0xc   :  { %v805_v57 = vcombine.high %v25_v52, %v33_v53  ;;  %v41_v60 = vld [vmem:[%s1118_s1 + $0xb8] sm:$0xff]  ;;  %v804_v63 = vcombine.low %v25_v52, %v33_v53  ;;  %v819_v0 = vcombine.high %v40_v58, %v48_v59  ;;  %v818_v2 = vcombine.low %v40_v58, %v48_v59  ;;  %v1047_v51 = vld [vmem:[%s1120_s2 + $0x8] sm:$0xff] }
   0xd   :  { %822 = vmatmul.mubr.msk.bf16.vlgmr.msra.gmra.mrb[0].mxu0 %vm294_vm0, %v934_v27  ;;  %823 = vmatmul.mubr.msk.bf16.vlgmr.msra.gmra.mrb[0].mxu1 %vm294_vm0, %v934_v27  ;;  %v49_v61 = vld [vmem:[%s1118_s1 + $0xf8] sm:$0xff]  ;;  %v57_v11 = vrot.slane %v50_v8, %v56_v7  ;;  %v65_v12 = vrot.slane %v50_v8, %v64_v9  ;;  %v69_v14 = vrot.slane %v50_v8, %v68_v10  ;;  %v80_v20 = vsub.s32 6, %v1012_v6 }
   0xe   :  { %385 = vmatpush1.bf16.msra.mxu0 %v794_v30  ;;  %428 = vmatpush1.bf16.msra.mxu1 %v796_v31  ;;  %v821_v1 = vcombine.high %v41_v60, %v49_v61  ;;  %v820_v4 = vcombine.low %v41_v60, %v49_v61  ;;  %v76_v25 = vsub.s32 5, %v1012_v6  ;;  %v84_v26 = vsub.s32 7, %v1012_v6 }
   0xf   :  { %386 = vmatprep.subr.bf16.mxu0 %v811_v32  ;;  %429 = vmatprep.subr.bf16.mxu1 %v813_v33  ;;  %v73_v32 = vrot.slane %v50_v8, %v72_v15 }
  0x10   :  { %416 = vmatprep.mubr.bf16.mxu0 %v863_v3  ;;  %459 = vmatprep.mubr.bf16.mxu1 %v863_v3  ;;  %v77_v45 = vrot.slane %v50_v8, %v76_v25 }
  0x12   :  { %387 = vmatpush1.bf16.msra.mxu0 %v810_v38  ;;  %430 = vmatpush1.bf16.msra.mxu1 %v812_v39 }
  0x13   :  { %470 = vmatprep.subr.bf16.mxu0 %v799_v40  ;;  %513 = vmatprep.subr.bf16.mxu1 %v801_v41  ;;  %v81_v41 = vrot.slane %v50_v8, %v80_v20 }
  0x15   :  { %824 = vmatmul.mubr.msk.bf16.vlgmr.msra.gmra.mrb[4].mxu0 %vm294_vm0, %v934_v27  ;;  %825 = vmatmul.mubr.msk.bf16.vlgmr.msra.gmra.mrb[4].mxu1 %vm294_vm0, %v934_v27 }
  0x16   :  { %471 = vmatpush1.bf16.msra.mxu0 %v798_v46  ;;  %514 = vmatpush1.bf16.msra.mxu1 %v800_v47 }
  0x17   :  { %472 = vmatprep.subr.bf16.mxu0 %v815_v48  ;;  %515 = vmatprep.subr.bf16.mxu1 %v817_v49  ;;  %v85_v48 = vrot.slane %v50_v8, %v84_v26 }
  0x18   :  { %502 = vmatprep.mubr.bf16.mxu0 %v863_v3  ;;  %545 = vmatprep.mubr.bf16.mxu1 %v863_v3 }
  0x1a   :  { %473 = vmatpush1.bf16.msra.mxu0 %v814_v54  ;;  %516 = vmatpush1.bf16.msra.mxu1 %v816_v55 }
  0x1b   :  { %556 = vmatprep.subr.bf16.mxu0 %v803_v56  ;;  %599 = vmatprep.subr.bf16.mxu1 %v805_v57 }
  0x1d   :  { %826 = vmatmul.mubr.msk.bf16.vlgmr.msra.gmra.mrb[8].mxu0 %vm294_vm0, %v934_v27  ;;  %827 = vmatmul.mubr.msk.bf16.vlgmr.msra.gmra.mrb[8].mxu1 %vm294_vm0, %v934_v27 }
  0x1e   :  { %557 = vmatpush1.bf16.msra.mxu0 %v802_v62  ;;  %600 = vmatpush1.bf16.msra.mxu1 %v804_v63 }
  0x1f   :  { %558 = vmatprep.subr.bf16.mxu0 %v819_v0  ;;  %601 = vmatprep.subr.bf16.mxu1 %v821_v1  ;;  %v89_v1 = vrot.slane %v1047_v51, %v56_v7 }
  0x20   :  { %588 = vmatprep.mubr.bf16.mxu0 %v863_v3  ;;  %631 = vmatprep.mubr.bf16.mxu1 %v863_v3  ;;  %v60_v3 = vsub.s32 1, %v1012_v6 }
  0x22   :  { %559 = vmatpush1.bf16.msra.mxu0 %v818_v2  ;;  %602 = vmatpush1.bf16.msra.mxu1 %v820_v4  ;;  %v61_v13 = vrot.slane %v50_v8, %v60_v3 }
  0x25   :  { %828 = vmatmul.mubr.msk.bf16.vlgmr.msra.gmra.mrb[12].mxu0 %vm294_vm0, %v934_v27  ;;  %829 = vmatmul.mubr.msk.bf16.vlgmr.msra.gmra.mrb[12].mxu1 %vm294_vm0, %v934_v27 }
  0xe0   :  { %v332_v16 = vpop.f32.mrb[0].mxu0  ;;  %v375_v18 = vpop.f32.mrb[0].mxu1 }
  0xe1   :  { %v333_v17 = vadd.f32 %v332_v16, %v57_v11  ;;  %v334_v19 = vpop.f32.mrb[1].mxu0  ;;  %v376_v21 = vadd.f32 %v375_v18, %v65_v12  ;;  %v377_v23 = vpop.f32.mrb[1].mxu1  ;;  %v97_v16 = vrot.slane %v1047_v51, %v64_v9 }
  0xe2   :  { %v335_v22 = vadd.f32 %v334_v19, %v61_v13  ;;  %v336_v24 = vpop.f32.mrb[2].mxu0  ;;  %v378_v28 = vadd.f32 %v377_v23, %v69_v14  ;;  %v379_v30 = vpop.f32.mrb[2].mxu1  ;;  %v101_v23 = vrot.slane %v1047_v51, %v68_v10 }
  0xe3   :  { %v642_v27 = vmax.f32 %v333_v17, 0.0  ;;  %v337_v29 = vadd.f32 %v336_v24, %v57_v11  ;;  %v338_v31 = vpop.f32.mrb[3].mxu0  ;;  %v644_v33 = vmax.f32 %v376_v21, 0.0  ;;  %v380_v35 = vadd.f32 %v379_v30, %v65_v12  ;;  %v381_v37 = vpop.f32.mrb[3].mxu1 }
  0xe4   :  { %v643_v34 = vmax.f32 %v335_v22, 0.0  ;;  %v339_v36 = vadd.f32 %v338_v31, %v61_v13  ;;  %v645_v38 = vmax.f32 %v378_v28, 0.0  ;;  %v382_v40 = vadd.f32 %v381_v37, %v69_v14 }
  0xe5   :  { %v658_v39 = vmax.f32 %v337_v29, 0.0  ;;  %v660_v43 = vmax.f32 %v380_v35, 0.0  ;;  %v93_v21 = vrot.slane %v1047_v51, %v60_v3 }
  0xe6   :  { %v846_v42 = vpack.c.bf16 %v643_v34, %v642_v27  ;;  %v659_v44 = vmax.f32 %v339_v36, 0.0  ;;  %v847_v46 = vpack.c.bf16 %v645_v38, %v644_v33  ;;  %v661_v47 = vmax.f32 %v382_v40, 0.0 }
  0xe7   :  { %v105_v38 = vrot.slane %v1047_v51, %v72_v15 }
  0xe8   :  { %770 = vst [vmem:[%s1121_s3] sm:$0xff] %v846_v42  ;;  %v854_v49 = vpack.c.bf16 %v659_v44, %v658_v39  ;;  %v418_v50 = vpop.f32.mrb[4].mxu0  ;;  %771 = vst [vmem:[%s1121_s3 + $0x8] sm:$0xff] %v847_v46  ;;  %v855_v52 = vpack.c.bf16 %v661_v47, %v660_v43  ;;  %v461_v54 = vpop.f32.mrb[4].mxu1  ;;  %v113_v47 = vrot.slane %v1047_v51, %v80_v20 }
  0xe9   :  { %v419_v53 = vadd.f32 %v418_v50, %v73_v32  ;;  %v420_v55 = vpop.f32.mrb[5].mxu0  ;;  %v462_v56 = vadd.f32 %v461_v54, %v81_v41  ;;  %v463_v58 = vpop.f32.mrb[5].mxu1  ;;  %v117_v54 = vrot.slane %v1047_v51, %v84_v26 }
  0xea   :  { %778 = vst [vmem:[%s1121_s3 + $0x40] sm:$0xff] %v854_v49  ;;  %v421_v57 = vadd.f32 %v420_v55, %v77_v45  ;;  %v422_v59 = vpop.f32.mrb[6].mxu0  ;;  %779 = vst [vmem:[%s1121_s3 + $0x48] sm:$0xff] %v855_v52  ;;  %v464_v61 = vadd.f32 %v463_v58, %v85_v48  ;;  %v465_v63 = vpop.f32.mrb[6].mxu1  ;;  %v109_v52 = vrot.slane %v1047_v51, %v76_v25 }
  0xeb   :  { %v646_v60 = vmax.f32 %v419_v53, 0.0  ;;  %v423_v62 = vadd.f32 %v422_v59, %v73_v32  ;;  %v424_v0 = vpop.f32.mrb[7].mxu0  ;;  %v648_v2 = vmax.f32 %v462_v56, 0.0  ;;  %v466_v5 = vadd.f32 %v465_v63, %v81_v41  ;;  %v467_v11 = vpop.f32.mrb[7].mxu1 }
  0xec   :  { %v647_v4 = vmax.f32 %v421_v57, 0.0  ;;  %v425_v8 = vadd.f32 %v424_v0, %v77_v45  ;;  %v649_v12 = vmax.f32 %v464_v61, 0.0  ;;  %v468_v14 = vadd.f32 %v467_v11, %v85_v48 }
  0xed   :  { %v662_v13 = vmax.f32 %v423_v62, 0.0  ;;  %v664_v18 = vmax.f32 %v466_v5, 0.0 }
  0xee   :  { %v848_v17 = vpack.c.bf16 %v647_v4, %v646_v60  ;;  %v663_v19 = vmax.f32 %v425_v8, 0.0  ;;  %v849_v7 = vpack.c.bf16 %v649_v12, %v648_v2  ;;  %v665_v22 = vmax.f32 %v468_v14, 0.0 }
  0xf0   :  { %772 = vst [vmem:[%s1121_s3 + $0x10] sm:$0xff] %v848_v17  ;;  %v856_v24 = vpack.c.bf16 %v663_v19, %v662_v13  ;;  %v504_v27 = vpop.f32.mrb[8].mxu0  ;;  %773 = vst [vmem:[%s1121_s3 + $0x18] sm:$0xff] %v849_v7  ;;  %v857_v9 = vpack.c.bf16 %v665_v22, %v664_v18  ;;  %v547_v29 = vpop.f32.mrb[8].mxu1 }
  0xf1   :  { %v505_v28 = vadd.f32 %v504_v27, %v89_v1  ;;  %v506_v3 = vpop.f32.mrb[9].mxu0  ;;  %v548_v30 = vadd.f32 %v547_v29, %v97_v16  ;;  %v549_v31 = vpop.f32.mrb[9].mxu1 }
  0xf2   :  { %780 = vst [vmem:[%s1121_s3 + $0x50] sm:$0xff] %v856_v24  ;;  %v507_v10 = vadd.f32 %v506_v3, %v93_v21  ;;  %v508_v32 = vpop.f32.mrb[10].mxu0  ;;  %781 = vst [vmem:[%s1121_s3 + $0x58] sm:$0xff] %v857_v9  ;;  %v550_v34 = vadd.f32 %v549_v31, %v101_v23  ;;  %v551_v36 = vpop.f32.mrb[10].mxu1 }
  0xf3   :  { %v650_v33 = vmax.f32 %v505_v28, 0.0  ;;  %v509_v35 = vadd.f32 %v508_v32, %v89_v1  ;;  %v510_v37 = vpop.f32.mrb[11].mxu0  ;;  %v652_v39 = vmax.f32 %v548_v30, 0.0  ;;  %v552_v41 = vadd.f32 %v551_v36, %v97_v16  ;;  %v553_v43 = vpop.f32.mrb[11].mxu1 }
  0xf4   :  { %v651_v40 = vmax.f32 %v507_v10, 0.0  ;;  %v511_v42 = vadd.f32 %v510_v37, %v93_v21  ;;  %v653_v44 = vmax.f32 %v550_v34, 0.0  ;;  %v554_v46 = vadd.f32 %v553_v43, %v101_v23 }
  0xf5   :  { %v666_v45 = vmax.f32 %v509_v35, 0.0  ;;  %v668_v49 = vmax.f32 %v552_v41, 0.0 }
  0xf6   :  { %v850_v48 = vpack.c.bf16 %v651_v40, %v650_v33  ;;  %v667_v50 = vmax.f32 %v511_v42, 0.0  ;;  %v851_v15 = vpack.c.bf16 %v653_v44, %v652_v39  ;;  %v669_v53 = vmax.f32 %v554_v46, 0.0 }
  0xf8   :  { %774 = vst [vmem:[%s1121_s3 + $0x20] sm:$0xff] %v850_v48  ;;  %v858_v55 = vpack.c.bf16 %v667_v50, %v666_v45  ;;  %v590_v56 = vpop.f32.mrb[12].mxu0  ;;  %775 = vst [vmem:[%s1121_s3 + $0x28] sm:$0xff] %v851_v15  ;;  %v859_v20 = vpack.c.bf16 %v669_v53, %v668_v49  ;;  %v633_v58 = vpop.f32.mrb[12].mxu1 }
  0xf9   :  { %v591_v57 = vadd.f32 %v590_v56, %v105_v38  ;;  %v592_v25 = vpop.f32.mrb[13].mxu0  ;;  %v634_v6 = vadd.f32 %v633_v58, %v113_v47  ;;  %v635_v51 = vpop.f32.mrb[13].mxu1 }
  0xfa   :  { %782 = vst [vmem:[%s1121_s3 + $0x60] sm:$0xff] %v858_v55  ;;  %v593_v26 = vadd.f32 %v592_v25, %v109_v52  ;;  %v594_v59 = vpop.f32.mrb[14].mxu0  ;;  %783 = vst [vmem:[%s1121_s3 + $0x68] sm:$0xff] %v859_v20  ;;  %v636_v61 = vadd.f32 %v635_v51, %v117_v54  ;;  %v637_v63 = vpop.f32.mrb[14].mxu1 }
  0xfb   :  { %v654_v60 = vmax.f32 %v591_v57, 0.0  ;;  %v595_v62 = vadd.f32 %v594_v59, %v105_v38  ;;  %v596_v0 = vpop.f32.mrb[15].mxu0  ;;  %v656_v1 = vmax.f32 %v634_v6, 0.0  ;;  %v638_v4 = vadd.f32 %v637_v63, %v113_v47  ;;  %v639_v8 = vpop.f32.mrb[15].mxu1 }
  0xfc   :  { %v655_v2 = vmax.f32 %v593_v26, 0.0  ;;  %v597_v5 = vadd.f32 %v596_v0, %v109_v52  ;;  %v657_v11 = vmax.f32 %v636_v61, 0.0  ;;  %v640_v13 = vadd.f32 %v639_v8, %v117_v54 }
  0xfd   :  { %v670_v12 = vmax.f32 %v595_v62, 0.0  ;;  %v672_v16 = vmax.f32 %v638_v4, 0.0 }
  0xfe   :  { %v852_v14 = vpack.c.bf16 %v655_v2, %v654_v60  ;;  %v671_v17 = vmax.f32 %v597_v5, 0.0  ;;  %v853_v18 = vpack.c.bf16 %v657_v11, %v656_v1  ;;  %v673_v19 = vmax.f32 %v640_v13, 0.0 }
 0x100   :  { %776 = vst [vmem:[%s1121_s3 + $0x30] sm:$0xff] %v852_v14  ;;  %v860_v21 = vpack.c.bf16 %v671_v17, %v670_v12  ;;  %777 = vst [vmem:[%s1121_s3 + $0x38] sm:$0xff] %v853_v18  ;;  %v861_v7 = vpack.c.bf16 %v673_v19, %v672_v16 }
 0x102   :  { %784 = vst [vmem:[%s1121_s3 + $0x70] sm:$0xff] %v860_v21  ;;  %785 = vst [vmem:[%s1121_s3 + $0x78] sm:$0xff] %v861_v7 }

// kernel: encoder_forward.18
= control target key start
LH: loop header
LB: loop body
LE: loop exit
PB: predicated region body
PF: predicated region fallthrough
CT: control target
= control target key end

     0   :  { %vm1483_vm0 = vcmask 261120   ;;  %s2484_s1 = inlined_call_operand.vmem [shape: bf16[2048,32], index: 1, kind: input, shape index: {}]   ;;  %s2485_s0 = inlined_call_operand.vmem [shape: bf16[16,2048], index: 0, kind: input, shape index: {}]   ;;  %s2486_s2 = inlined_call_operand.vmem [shape: f32[1,32], index: 2, kind: input, shape index: {}]   ;;  %s2487_s3 = inlined_call_operand.vmem [shape: f32[16,32], index: 3, kind: input, shape index: {}]   ;;  %s2488_s4 = inlined_call_operand.vmem [shape: f32[1,32], index: 4, kind: input, shape index: {}]   ;;  %s2489_s5 = inlined_call_operand.vmem [shape: f32[1,32], index: 5, kind: input, shape index: {}]   ;;  %s2490_s6 = inlined_call_operand.vmem [shape: f32[16,32], index: 6, kind: output, shape index: {}]  }
   0x1   :  { %v1858_v0 = vld [vmem:[%s2484_s1 + $0x40] sm:$0xff]   ;;  %v1862_v4 = vld [vmem:[%s2484_s1 + $0x48] sm:$0xff]   ;;  %v1866_v8 = vld [vmem:[%s2484_s1 + $0x50] sm:$0xff]  }
   0x2   :  { %v1859_v1 = vld [vmem:[%s2484_s1 + $0xc0] sm:$0xff]   ;;  %1682 = vmatprep.subr.bf16.mxu0 %v1858_v0  ;;  %v1863_v5 = vld [vmem:[%s2484_s1 + $0xc8] sm:$0xff]   ;;  %v1867_v9 = vld [vmem:[%s2484_s1 + $0xd0] sm:$0xff]  }
   0x3   :  { %v1860_v2 = vld [vmem:[%s2484_s1] sm:$0xff]   ;;  %1704 = vmatprep.subr.bf16.mxu1 %v1859_v1  ;;  %v1864_v6 = vld [vmem:[%s2484_s1 + $0x8] sm:$0xff]   ;;  %v1868_v10 = vld [vmem:[%s2484_s1 + $0x10] sm:$0xff]  }
   0x4   :  { %v1861_v3 = vld [vmem:[%s2484_s1 + $0x80] sm:$0xff]   ;;  %1683 = vmatpush3.bf16.msra.mxu0 %v1860_v2  ;;  %v1865_v7 = vld [vmem:[%s2484_s1 + $0x88] sm:$0xff]   ;;  %v1869_v11 = vld [vmem:[%s2484_s1 + $0x90] sm:$0xff]  }
   0x5   :  { %1705 = vmatpush3.bf16.msra.mxu1 %v1861_v3  ;;  %1684 = vmatprep.subr.bf16.mxu0 %v1862_v4  ;;  %v1870_v12 = vld [vmem:[%s2484_s1 + $0x58] sm:$0xff]   ;;  %v1874_v16 = vld [vmem:[%s2484_s1 + $0x60] sm:$0xff]   ;;  %v1878_v20 = vld [vmem:[%s2484_s1 + $0x68] sm:$0xff]  }
   0x6   :  { %1706 = vmatprep.subr.bf16.mxu1 %v1863_v5  ;;  %v1871_v13 = vld [vmem:[%s2484_s1 + $0xd8] sm:$0xff]   ;;  %v1875_v17 = vld [vmem:[%s2484_s1 + $0xe0] sm:$0xff]   ;;  %v1879_v21 = vld [vmem:[%s2484_s1 + $0xe8] sm:$0xff]  }
   0x7   :  { %v1872_v14 = vld [vmem:[%s2484_s1 + $0x18] sm:$0xff]   ;;  %v1876_v18 = vld [vmem:[%s2484_s1 + $0x20] sm:$0xff]   ;;  %v1880_v22 = vld [vmem:[%s2484_s1 + $0x28] sm:$0xff]  }
   0x8   :  { %1685 = vmatpush3.bf16.msra.mxu0 %v1864_v6  ;;  %v1873_v15 = vld [vmem:[%s2484_s1 + $0x98] sm:$0xff]   ;;  %v1877_v19 = vld [vmem:[%s2484_s1 + $0xa0] sm:$0xff]   ;;  %v1881_v23 = vld [vmem:[%s2484_s1 + $0xa8] sm:$0xff]  }
   0x9   :  { %1707 = vmatpush3.bf16.msra.mxu1 %v1865_v7  ;;  %1686 = vmatprep.subr.bf16.mxu0 %v1866_v8  ;;  %v1882_v24 = vld [vmem:[%s2484_s1 + $0x70] sm:$0xff]   ;;  %v1886_v28 = vld [vmem:[%s2484_s1 + $0x78] sm:$0xff]   ;;  %v24_v32 = vld [vmem:[%s2485_s0] sm:$0xff] }
   0xa   :  { %1708 = vmatprep.subr.bf16.mxu1 %v1867_v9  ;;  %v1883_v25 = vld [vmem:[%s2484_s1 + $0xf0] sm:$0xff]   ;;  %v1887_v29 = vld [vmem:[%s2484_s1 + $0xf8] sm:$0xff]   ;;  %v32_v33 = vld [vmem:[%s2485_s0 + $0x40] sm:$0xff] }
   0xb   :  { %v1884_v26 = vld [vmem:[%s2484_s1 + $0x30] sm:$0xff]   ;;  %v1888_v30 = vld [vmem:[%s2484_s1 + $0x38] sm:$0xff]   ;;  %v25_v34 = vld [vmem:[%s2485_s0 + $0x8] sm:$0xff]  ;;  %v1536_v35 = vcombine.low %v24_v32, %v32_v33  ;;  %v1537_v36 = vcombine.high %v24_v32, %v32_v33 }
   0xc   :  { %1687 = vmatpush3.bf16.msra.mxu0 %v1868_v10  ;;  %v1885_v27 = vld [vmem:[%s2484_s1 + $0xb0] sm:$0xff]   ;;  %v1889_v31 = vld [vmem:[%s2484_s1 + $0xb8] sm:$0xff]   ;;  %v33_v37 = vld [vmem:[%s2485_s0 + $0x48] sm:$0xff] }
   0xd   :  { %1709 = vmatpush3.bf16.msra.mxu1 %v1869_v11  ;;  %1688 = vmatprep.subr.bf16.mxu0 %v1870_v12  ;;  %v1538_v38 = vcombine.low %v25_v34, %v33_v37  ;;  %v1539_v39 = vcombine.high %v25_v34, %v33_v37  ;;  %v1890_v40 = vld [vmem:[%s2484_s1 + $0x140] sm:$0xff]   ;;  %v1894_v44 = vld [vmem:[%s2484_s1 + $0x148] sm:$0xff]   ;;  %v1898_v48 = vld [vmem:[%s2484_s1 + $0x150] sm:$0xff]  }
   0xe   :  { %1710 = vmatprep.subr.bf16.mxu1 %v1871_v13  ;;  %1183 = vmatprep.mubr.bf16.mxu0 %v1537_v36  ;;  %v1891_v41 = vld [vmem:[%s2484_s1 + $0x1c0] sm:$0xff]   ;;  %v1895_v45 = vld [vmem:[%s2484_s1 + $0x1c8] sm:$0xff]   ;;  %v1899_v49 = vld [vmem:[%s2484_s1 + $0x1d0] sm:$0xff]  }
   0xf   :  { %1224 = vmatprep.mubr.bf16.mxu1 %v1539_v39  ;;  %v1892_v42 = vld [vmem:[%s2484_s1 + $0x100] sm:$0xff]   ;;  %v1896_v46 = vld [vmem:[%s2484_s1 + $0x108] sm:$0xff]   ;;  %v1900_v50 = vld [vmem:[%s2484_s1 + $0x110] sm:$0xff]  }
  0x10   :  { %1689 = vmatpush3.bf16.msra.mxu0 %v1872_v14  ;;  %v1893_v43 = vld [vmem:[%s2484_s1 + $0x180] sm:$0xff]   ;;  %v1897_v47 = vld [vmem:[%s2484_s1 + $0x188] sm:$0xff]   ;;  %v1901_v51 = vld [vmem:[%s2484_s1 + $0x190] sm:$0xff]  }
  0x11   :  { %1711 = vmatpush3.bf16.msra.mxu1 %v1873_v15  ;;  %1690 = vmatprep.subr.bf16.mxu0 %v1874_v16  ;;  %v1902_v52 = vld [vmem:[%s2484_s1 + $0x158] sm:$0xff]   ;;  %v1906_v56 = vld [vmem:[%s2484_s1 + $0x160] sm:$0xff]   ;;  %v1910_v60 = vld [vmem:[%s2484_s1 + $0x168] sm:$0xff]  }
  0x12   :  { %1712 = vmatprep.subr.bf16.mxu1 %v1875_v17  ;;  %v1903_v53 = vld [vmem:[%s2484_s1 + $0x1d8] sm:$0xff]   ;;  %v1907_v57 = vld [vmem:[%s2484_s1 + $0x1e0] sm:$0xff]   ;;  %v1911_v61 = vld [vmem:[%s2484_s1 + $0x1e8] sm:$0xff]  }
  0x13   :  { %v1904_v54 = vld [vmem:[%s2484_s1 + $0x118] sm:$0xff]   ;;  %v1908_v58 = vld [vmem:[%s2484_s1 + $0x120] sm:$0xff]   ;;  %v1912_v62 = vld [vmem:[%s2484_s1 + $0x128] sm:$0xff]  }
  0x14   :  { %1691 = vmatpush3.bf16.msra.mxu0 %v1876_v18  ;;  %v1905_v55 = vld [vmem:[%s2484_s1 + $0x198] sm:$0xff]   ;;  %v1909_v59 = vld [vmem:[%s2484_s1 + $0x1a0] sm:$0xff]   ;;  %v1913_v63 = vld [vmem:[%s2484_s1 + $0x1a8] sm:$0xff]  }
  0x15   :  { %1713 = vmatpush3.bf16.msra.mxu1 %v1877_v19  ;;  %1692 = vmatprep.subr.bf16.mxu0 %v1878_v20  ;;  %v1914_v0 = vld [vmem:[%s2484_s1 + $0x170] sm:$0xff]   ;;  %v1918_v4 = vld [vmem:[%s2484_s1 + $0x178] sm:$0xff]   ;;  %v1922_v16 = vld [vmem:[%s2484_s1 + $0x240] sm:$0xff]  }
  0x16   :  { %1714 = vmatprep.subr.bf16.mxu1 %v1879_v21  ;;  %v1915_v1 = vld [vmem:[%s2484_s1 + $0x1f0] sm:$0xff]   ;;  %v1919_v5 = vld [vmem:[%s2484_s1 + $0x1f8] sm:$0xff]   ;;  %v1923_v17 = vld [vmem:[%s2484_s1 + $0x2c0] sm:$0xff]  }
  0x17   :  { %v1916_v2 = vld [vmem:[%s2484_s1 + $0x130] sm:$0xff]   ;;  %v1920_v6 = vld [vmem:[%s2484_s1 + $0x138] sm:$0xff]   ;;  %v1924_v18 = vld [vmem:[%s2484_s1 + $0x200] sm:$0xff]  }
  0x18   :  { %1693 = vmatpush3.bf16.msra.mxu0 %v1880_v22  ;;  %v1917_v3 = vld [vmem:[%s2484_s1 + $0x1b0] sm:$0xff]   ;;  %v1921_v7 = vld [vmem:[%s2484_s1 + $0x1b8] sm:$0xff]   ;;  %v1925_v19 = vld [vmem:[%s2484_s1 + $0x280] sm:$0xff]  }
  0x19   :  { %1715 = vmatpush3.bf16.msra.mxu1 %v1881_v23  ;;  %1694 = vmatprep.subr.bf16.mxu0 %v1882_v24  ;;  %v26_v8 = vld [vmem:[%s2485_s0 + $0x10] sm:$0xff]  ;;  %v27_v12 = vld [vmem:[%s2485_s0 + $0x18] sm:$0xff]  ;;  %v1926_v20 = vld [vmem:[%s2484_s1 + $0x248] sm:$0xff]  }
  0x1a   :  { %1716 = vmatprep.subr.bf16.mxu1 %v1883_v25  ;;  %v34_v9 = vld [vmem:[%s2485_s0 + $0x50] sm:$0xff]  ;;  %v35_v13 = vld [vmem:[%s2485_s0 + $0x58] sm:$0xff]  ;;  %v1927_v21 = vld [vmem:[%s2484_s1 + $0x2c8] sm:$0xff]  }
  0x1b   :  { %v1540_v10 = vcombine.low %v26_v8, %v34_v9  ;;  %v1541_v11 = vcombine.high %v26_v8, %v34_v9  ;;  %v1542_v14 = vcombine.low %v27_v12, %v35_v13  ;;  %v1543_v15 = vcombine.high %v27_v12, %v35_v13  ;;  %v1928_v22 = vld [vmem:[%s2484_s1 + $0x208] sm:$0xff]   ;;  %v1930_v24 = vld [vmem:[%s2484_s1 + $0x250] sm:$0xff]   ;;  %v1938_v32 = vld [vmem:[%s2484_s1 + $0x260] sm:$0xff]  }
  0x1c   :  { %1695 = vmatpush3.bf16.msra.mxu0 %v1884_v26  ;;  %v1929_v23 = vld [vmem:[%s2484_s1 + $0x288] sm:$0xff]   ;;  %v1931_v25 = vld [vmem:[%s2484_s1 + $0x2d0] sm:$0xff]   ;;  %v1939_v33 = vld [vmem:[%s2484_s1 + $0x2e0] sm:$0xff]  }
  0x1d   :  { %1717 = vmatpush3.bf16.msra.mxu1 %v1885_v27  ;;  %1696 = vmatprep.subr.bf16.mxu0 %v1886_v28  ;;  %v1932_v26 = vld [vmem:[%s2484_s1 + $0x210] sm:$0xff]   ;;  %v1934_v28 = vld [vmem:[%s2484_s1 + $0x258] sm:$0xff]   ;;  %v1940_v34 = vld [vmem:[%s2484_s1 + $0x220] sm:$0xff]  }
  0x1e   :  { %1718 = vmatprep.subr.bf16.mxu1 %v1887_v29  ;;  %v1933_v27 = vld [vmem:[%s2484_s1 + $0x290] sm:$0xff]   ;;  %v1935_v29 = vld [vmem:[%s2484_s1 + $0x2d8] sm:$0xff]   ;;  %v1942_v36 = vld [vmem:[%s2484_s1 + $0x268] sm:$0xff]  }
  0x1f   :  { %v1943_v37 = vld [vmem:[%s2484_s1 + $0x2e8] sm:$0xff]   ;;  %v1970_v8 = vld [vmem:[%s2484_s1 + $0x360] sm:$0xff]  }
  0x20   :  { %1697 = vmatpush3.bf16.msra.mxu0 %v1888_v30  ;;  %v1936_v30 = vld [vmem:[%s2484_s1 + $0x218] sm:$0xff]   ;;  %v1945_v39 = vld [vmem:[%s2484_s1 + $0x2a8] sm:$0xff]   ;;  %v1971_v9 = vld [vmem:[%s2484_s1 + $0x3e0] sm:$0xff]  }
  0x21   :  { %1719 = vmatpush3.bf16.msra.mxu1 %v1889_v31  ;;  %1726 = vmatprep.subr.bf16.mxu0 %v1890_v40  ;;  %v1937_v31 = vld [vmem:[%s2484_s1 + $0x298] sm:$0xff]   ;;  %v1946_v40 = vld [vmem:[%s2484_s1 + $0x270] sm:$0xff]   ;;  %v1974_v12 = vld [vmem:[%s2484_s1 + $0x368] sm:$0xff]  }
  0x22   :  { %1748 = vmatprep.subr.bf16.mxu1 %v1891_v41  ;;  %v1947_v41 = vld [vmem:[%s2484_s1 + $0x2f0] sm:$0xff]   ;;  %v1975_v13 = vld [vmem:[%s2484_s1 + $0x3e8] sm:$0xff]  }
  0x23   :  { %1184 = vmatmul.mubr.bf16.vlgmr.msra.gmra.mrb[0].mxu0 %v1536_v35  ;;  %v1941_v35 = vld [vmem:[%s2484_s1 + $0x2a0] sm:$0xff]  }
  0x24   :  { %1225 = vmatmul.mubr.bf16.vlgmr.msra.gmra.mrb[0].mxu1 %v1538_v38  ;;  %1727 = vmatpush3.bf16.msra.mxu0 %v1892_v42  ;;  %v1944_v38 = vld [vmem:[%s2484_s1 + $0x228] sm:$0xff]   ;;  %v1948_v42 = vld [vmem:[%s2484_s1 + $0x230] sm:$0xff]  }
  0x25   :  { %1749 = vmatpush3.bf16.msra.mxu1 %v1893_v43  ;;  %1728 = vmatprep.subr.bf16.mxu0 %v1894_v44  ;;  %v1949_v43 = vld [vmem:[%s2484_s1 + $0x2b0] sm:$0xff]   ;;  %v1950_v44 = vld [vmem:[%s2484_s1 + $0x278] sm:$0xff]  }
  0x26   :  { %1750 = vmatprep.subr.bf16.mxu1 %v1895_v45  ;;  %1265 = vmatprep.mubr.bf16.mxu0 %v1541_v11  ;;  %v1951_v45 = vld [vmem:[%s2484_s1 + $0x2f8] sm:$0xff]   ;;  %v1973_v11 = vld [vmem:[%s2484_s1 + $0x3a0] sm:$0xff]  }
  0x27   :  { %1306 = vmatprep.mubr.bf16.mxu1 %v1543_v15  ;;  %v1977_v15 = vld [vmem:[%s2484_s1 + $0x3a8] sm:$0xff]  }
  0x28   :  { %1729 = vmatpush3.bf16.msra.mxu0 %v1896_v46  ;;  %v1952_v46 = vld [vmem:[%s2484_s1 + $0x238] sm:$0xff]  }
  0x29   :  { %1751 = vmatpush3.bf16.msra.mxu1 %v1897_v47  ;;  %1730 = vmatprep.subr.bf16.mxu0 %v1898_v48  ;;  %v1953_v47 = vld [vmem:[%s2484_s1 + $0x2b8] sm:$0xff]   ;;  %v28_v48 = vld [vmem:[%s2485_s0 + $0x20] sm:$0xff] }
  0x2a   :  { %1752 = vmatprep.subr.bf16.mxu1 %v1899_v49  ;;  %v36_v49 = vld [vmem:[%s2485_s0 + $0x60] sm:$0xff] }
  0x2c   :  { %1731 = vmatpush3.bf16.msra.mxu0 %v1900_v50  ;;  %v29_v50 = vld [vmem:[%s2485_s0 + $0x28] sm:$0xff] }
  0x2d   :  { %1753 = vmatpush3.bf16.msra.mxu1 %v1901_v51  ;;  %1732 = vmatprep.subr.bf16.mxu0 %v1902_v52  ;;  %v37_v51 = vld [vmem:[%s2485_s0 + $0x68] sm:$0xff]  ;;  %v1544_v52 = vcombine.low %v28_v48, %v36_v49 }
  0x2e   :  { %1754 = vmatprep.subr.bf16.mxu1 %v1903_v53  ;;  %v1545_v53 = vcombine.high %v28_v48, %v36_v49 }
  0x30   :  { %1733 = vmatpush3.bf16.msra.mxu0 %v1904_v54  ;;  %v1546_v54 = vcombine.low %v29_v50, %v37_v51 }
  0x31   :  { %1755 = vmatpush3.bf16.msra.mxu1 %v1905_v55  ;;  %1734 = vmatprep.subr.bf16.mxu0 %v1906_v56  ;;  %v1547_v55 = vcombine.high %v29_v50, %v37_v51  ;;  %v1954_v56 = vld [vmem:[%s2484_s1 + $0x340] sm:$0xff]  }
  0x32   :  { %1756 = vmatprep.subr.bf16.mxu1 %v1907_v57  ;;  %v1955_v57 = vld [vmem:[%s2484_s1 + $0x3c0] sm:$0xff]  }
  0x34   :  { %1735 = vmatpush3.bf16.msra.mxu0 %v1908_v58  ;;  %v1956_v58 = vld [vmem:[%s2484_s1 + $0x300] sm:$0xff]  }
  0x35   :  { %1757 = vmatpush3.bf16.msra.mxu1 %v1909_v59  ;;  %1736 = vmatprep.subr.bf16.mxu0 %v1910_v60  ;;  %v1957_v59 = vld [vmem:[%s2484_s1 + $0x380] sm:$0xff]   ;;  %v1958_v60 = vld [vmem:[%s2484_s1 + $0x348] sm:$0xff]  }
  0x36   :  { %1758 = vmatprep.subr.bf16.mxu1 %v1911_v61  ;;  %v1959_v61 = vld [vmem:[%s2484_s1 + $0x3c8] sm:$0xff]  }
  0x38   :  { %1737 = vmatpush3.bf16.msra.mxu0 %v1912_v62  ;;  %v1960_v62 = vld [vmem:[%s2484_s1 + $0x308] sm:$0xff]  }
  0x39   :  { %1759 = vmatpush3.bf16.msra.mxu1 %v1913_v63  ;;  %1738 = vmatprep.subr.bf16.mxu0 %v1914_v0  ;;  %v1961_v63 = vld [vmem:[%s2484_s1 + $0x388] sm:$0xff]   ;;  %v1962_v0 = vld [vmem:[%s2484_s1 + $0x350] sm:$0xff]  }
  0x3a   :  { %1760 = vmatprep.subr.bf16.mxu1 %v1915_v1  ;;  %v1963_v1 = vld [vmem:[%s2484_s1 + $0x3d0] sm:$0xff]  }
  0x3c   :  { %1739 = vmatpush3.bf16.msra.mxu0 %v1916_v2  ;;  %v1964_v2 = vld [vmem:[%s2484_s1 + $0x310] sm:$0xff]  }
  0x3d   :  { %1761 = vmatpush3.bf16.msra.mxu1 %v1917_v3  ;;  %1740 = vmatprep.subr.bf16.mxu0 %v1918_v4  ;;  %v1965_v3 = vld [vmem:[%s2484_s1 + $0x390] sm:$0xff]   ;;  %v1966_v4 = vld [vmem:[%s2484_s1 + $0x358] sm:$0xff]  }
  0x3e   :  { %1762 = vmatprep.subr.bf16.mxu1 %v1919_v5  ;;  %v1967_v5 = vld [vmem:[%s2484_s1 + $0x3d8] sm:$0xff]  }
  0x40   :  { %1741 = vmatpush3.bf16.msra.mxu0 %v1920_v6  ;;  %v1968_v6 = vld [vmem:[%s2484_s1 + $0x318] sm:$0xff]  }
  0x41   :  { %1763 = vmatpush3.bf16.msra.mxu1 %v1921_v7  ;;  %1770 = vmatprep.subr.bf16.mxu0 %v1922_v16  ;;  %v1969_v7 = vld [vmem:[%s2484_s1 + $0x398] sm:$0xff]   ;;  %v1978_v16 = vld [vmem:[%s2484_s1 + $0x370] sm:$0xff]  }
  0x42   :  { %1792 = vmatprep.subr.bf16.mxu1 %v1923_v17  ;;  %v1979_v17 = vld [vmem:[%s2484_s1 + $0x3f0] sm:$0xff]  }
  0x43   :  { %1266 = vmatmul.mubr.bf16.vlgmr.msra.gmra.mrb[4].mxu0 %v1540_v10  ;;  %v1972_v10 = vld [vmem:[%s2484_s1 + $0x320] sm:$0xff]  }
  0x44   :  { %1307 = vmatmul.mubr.bf16.vlgmr.msra.gmra.mrb[4].mxu1 %v1542_v14  ;;  %1771 = vmatpush3.bf16.msra.mxu0 %v1924_v18  ;;  %v1976_v14 = vld [vmem:[%s2484_s1 + $0x328] sm:$0xff]   ;;  %v1980_v18 = vld [vmem:[%s2484_s1 + $0x330] sm:$0xff]  }
  0x45   :  { %1793 = vmatpush3.bf16.msra.mxu1 %v1925_v19  ;;  %1772 = vmatprep.subr.bf16.mxu0 %v1926_v20  ;;  %v1981_v19 = vld [vmem:[%s2484_s1 + $0x3b0] sm:$0xff]   ;;  %v1982_v20 = vld [vmem:[%s2484_s1 + $0x378] sm:$0xff]  }
  0x46   :  { %1794 = vmatprep.subr.bf16.mxu1 %v1927_v21  ;;  %1347 = vmatprep.mubr.bf16.mxu0 %v1545_v53  ;;  %v1983_v21 = vld [vmem:[%s2484_s1 + $0x3f8] sm:$0xff]  }
  0x47   :  { %1388 = vmatprep.mubr.bf16.mxu1 %v1547_v55 }
  0x48   :  { %1773 = vmatpush3.bf16.msra.mxu0 %v1928_v22  ;;  %v1984_v22 = vld [vmem:[%s2484_s1 + $0x338] sm:$0xff]  }
  0x49   :  { %1795 = vmatpush3.bf16.msra.mxu1 %v1929_v23  ;;  %1774 = vmatprep.subr.bf16.mxu0 %v1930_v24  ;;  %v1985_v23 = vld [vmem:[%s2484_s1 + $0x3b8] sm:$0xff]   ;;  %v30_v24 = vld [vmem:[%s2485_s0 + $0x30] sm:$0xff] }
  0x4a   :  { %1796 = vmatprep.subr.bf16.mxu1 %v1931_v25  ;;  %v38_v25 = vld [vmem:[%s2485_s0 + $0x70] sm:$0xff] }
  0x4c   :  { %1775 = vmatpush3.bf16.msra.mxu0 %v1932_v26  ;;  %v31_v26 = vld [vmem:[%s2485_s0 + $0x38] sm:$0xff] }
  0x4d   :  { %1797 = vmatpush3.bf16.msra.mxu1 %v1933_v27  ;;  %1776 = vmatprep.subr.bf16.mxu0 %v1934_v28  ;;  %v1548_v27 = vcombine.low %v30_v24, %v38_v25  ;;  %v1549_v28 = vcombine.high %v30_v24, %v38_v25 }
  0x4e   :  { %1798 = vmatprep.subr.bf16.mxu1 %v1935_v29  ;;  %v39_v29 = vld [vmem:[%s2485_s0 + $0x78] sm:$0xff] }
  0x50   :  { %1777 = vmatpush3.bf16.msra.mxu0 %v1936_v30  ;;  %v1550_v30 = vcombine.low %v31_v26, %v39_v29 }
  0x51   :  { %1799 = vmatpush3.bf16.msra.mxu1 %v1937_v31  ;;  %1778 = vmatprep.subr.bf16.mxu0 %v1938_v32  ;;  %v1551_v31 = vcombine.high %v31_v26, %v39_v29 }
  0x52   :  { %1800 = vmatprep.subr.bf16.mxu1 %v1939_v33 }
  0x54   :  { %1779 = vmatpush3.bf16.msra.mxu0 %v1940_v34  ;;  %v1535_v34 = vld [vmem:[%s2486_s2] ss:$0 sm:$0xff] }
  0x55   :  { %1801 = vmatpush3.bf16.msra.mxu1 %v1941_v35  ;;  %1780 = vmatprep.subr.bf16.mxu0 %v1942_v36 }
  0x56   :  { %1802 = vmatprep.subr.bf16.mxu1 %v1943_v37 }
  0x58   :  { %1781 = vmatpush3.bf16.msra.mxu0 %v1944_v38 }
  0x59   :  { %1803 = vmatpush3.bf16.msra.mxu1 %v1945_v39  ;;  %1782 = vmatprep.subr.bf16.mxu0 %v1946_v40 }
  0x5a   :  { %1804 = vmatprep.subr.bf16.mxu1 %v1947_v41 }
  0x5c   :  { %1783 = vmatpush3.bf16.msra.mxu0 %v1948_v42 }
  0x5d   :  { %1805 = vmatpush3.bf16.msra.mxu1 %v1949_v43  ;;  %1784 = vmatprep.subr.bf16.mxu0 %v1950_v44 }
  0x5e   :  { %1806 = vmatprep.subr.bf16.mxu1 %v1951_v45 }
  0x60   :  { %1785 = vmatpush3.bf16.msra.mxu0 %v1952_v46 }
  0x61   :  { %1807 = vmatpush3.bf16.msra.mxu1 %v1953_v47  ;;  %1814 = vmatprep.subr.bf16.mxu0 %v1954_v56 }
  0x62   :  { %1836 = vmatprep.subr.bf16.mxu1 %v1955_v57 }
  0x63   :  { %1348 = vmatmul.mubr.bf16.vlgmr.msra.gmra.mrb[8].mxu0 %v1544_v52 }
  0x64   :  { %1389 = vmatmul.mubr.bf16.vlgmr.msra.gmra.mrb[8].mxu1 %v1546_v54  ;;  %1815 = vmatpush3.bf16.msra.mxu0 %v1956_v58 }
  0x65   :  { %1837 = vmatpush3.bf16.msra.mxu1 %v1957_v59  ;;  %1816 = vmatprep.subr.bf16.mxu0 %v1958_v60 }
  0x66   :  { %1838 = vmatprep.subr.bf16.mxu1 %v1959_v61  ;;  %1429 = vmatprep.mubr.bf16.mxu0 %v1549_v28 }
  0x67   :  { %1470 = vmatprep.mubr.bf16.mxu1 %v1551_v31 }
  0x68   :  { %1817 = vmatpush3.bf16.msra.mxu0 %v1960_v62 }
  0x69   :  { %1839 = vmatpush3.bf16.msra.mxu1 %v1961_v63  ;;  %1818 = vmatprep.subr.bf16.mxu0 %v1962_v0 }
  0x6a   :  { %1840 = vmatprep.subr.bf16.mxu1 %v1963_v1 }
  0x6c   :  { %1819 = vmatpush3.bf16.msra.mxu0 %v1964_v2 }
  0x6d   :  { %1841 = vmatpush3.bf16.msra.mxu1 %v1965_v3  ;;  %1820 = vmatprep.subr.bf16.mxu0 %v1966_v4 }
  0x6e   :  { %1842 = vmatprep.subr.bf16.mxu1 %v1967_v5 }
  0x70   :  { %1821 = vmatpush3.bf16.msra.mxu0 %v1968_v6 }
  0x71   :  { %1843 = vmatpush3.bf16.msra.mxu1 %v1969_v7  ;;  %1822 = vmatprep.subr.bf16.mxu0 %v1970_v8 }
  0x72   :  { %1844 = vmatprep.subr.bf16.mxu1 %v1971_v9 }
  0x74   :  { %1823 = vmatpush3.bf16.msra.mxu0 %v1972_v10 }
  0x75   :  { %1845 = vmatpush3.bf16.msra.mxu1 %v1973_v11  ;;  %1824 = vmatprep.subr.bf16.mxu0 %v1974_v12 }
  0x76   :  { %1846 = vmatprep.subr.bf16.mxu1 %v1975_v13 }
  0x78   :  { %1825 = vmatpush3.bf16.msra.mxu0 %v1976_v14 }
  0x79   :  { %1847 = vmatpush3.bf16.msra.mxu1 %v1977_v15  ;;  %1826 = vmatprep.subr.bf16.mxu0 %v1978_v16 }
  0x7a   :  { %1848 = vmatprep.subr.bf16.mxu1 %v1979_v17 }
  0x7c   :  { %1827 = vmatpush3.bf16.msra.mxu0 %v1980_v18 }
  0x7d   :  { %1849 = vmatpush3.bf16.msra.mxu1 %v1981_v19  ;;  %1828 = vmatprep.subr.bf16.mxu0 %v1982_v20 }
  0x7e   :  { %1850 = vmatprep.subr.bf16.mxu1 %v1983_v21 }
  0x80   :  { %1829 = vmatpush3.bf16.msra.mxu0 %v1984_v22 }
  0x81   :  { %1851 = vmatpush3.bf16.msra.mxu1 %v1985_v23 }
  0x83   :  { %1430 = vmatmul.mubr.bf16.vlgmr.msra.gmra.mrb[12].mxu0 %v1548_v27 }
  0x84   :  { %1471 = vmatmul.mubr.bf16.vlgmr.msra.gmra.mrb[12].mxu1 %v1550_v30  ;;  %v1479_v30 = vld [vmem:[%s2487_s3] sm:$0xff] }
  0xf6   :  { %v1698_v32 = vpop.f32.mrb[0].mxu0 }
  0xf7   :  { %v1720_v33 = vpop.f32.mrb[0].mxu1  ;;  %v1699_v35 = vpop.f32.mrb[1].mxu0 }
  0xf8   :  { %v1700_v36 = vadd.f32 %v1699_v35, %v1698_v32  ;;  %v1721_v37 = vpop.f32.mrb[1].mxu1  ;;  %v1701_v38 = vpop.f32.mrb[2].mxu0 }
  0xf9   :  { %v1722_v39 = vadd.f32 %v1721_v37, %v1720_v33  ;;  %v1723_v40 = vpop.f32.mrb[2].mxu1  ;;  %v1702_v41 = vpop.f32.mrb[3].mxu0  ;;  %v1480_v33 = vld [vmem:[%s2487_s3 + $0x8] sm:$0xff] }
  0xfa   :  { %v1186_v42 = vadd.f32 %v1700_v36, %v1535_v34  ;;  %v1703_v43 = vadd.f32 %v1702_v41, %v1701_v38  ;;  %v1724_v44 = vpop.f32.mrb[3].mxu1 }
  0xfb   :  { %v1725_v45 = vadd.f32 %v1724_v44, %v1723_v40 }
  0xfc   :  { %v1227_v46 = vadd.f32 %v1722_v39, %v1186_v42  ;;  %v1189_v47 = vadd.f32 %v1703_v43, %v1535_v34 }
  0xfe   :  { %v1230_v48 = vadd.f32 %v1725_v45, %v1189_v47 }
 0x116   :  { %v1742_v49 = vpop.f32.mrb[4].mxu0 }
 0x117   :  { %v1764_v50 = vpop.f32.mrb[4].mxu1  ;;  %v1743_v51 = vpop.f32.mrb[5].mxu0 }
 0x118   :  { %v1744_v52 = vadd.f32 %v1743_v51, %v1742_v49  ;;  %v1765_v53 = vpop.f32.mrb[5].mxu1  ;;  %v1745_v54 = vpop.f32.mrb[6].mxu0 }
 0x119   :  { %v1766_v55 = vadd.f32 %v1765_v53, %v1764_v50  ;;  %v1767_v56 = vpop.f32.mrb[6].mxu1  ;;  %v1746_v57 = vpop.f32.mrb[7].mxu0 }
 0x11a   :  { %v1268_v58 = vadd.f32 %v1744_v52, %v1227_v46  ;;  %v1747_v59 = vadd.f32 %v1746_v57, %v1745_v54  ;;  %v1768_v60 = vpop.f32.mrb[7].mxu1 }
 0x11b   :  { %v1769_v61 = vadd.f32 %v1768_v60, %v1767_v56  ;;  %v1680_v56 = vld [vmem:[%s2488_s4] ss:$0 sm:$0xff] }
 0x11c   :  { %v1309_v62 = vadd.f32 %v1766_v55, %v1268_v58  ;;  %v1271_v63 = vadd.f32 %v1747_v59, %v1230_v48  ;;  %v1681_v58 = vld [vmem:[%s2489_s5] ss:$0 sm:$0xff] }
 0x11e   :  { %v1312_v0 = vadd.f32 %v1769_v61, %v1271_v63 }
 0x136   :  { %v1786_v1 = vpop.f32.mrb[8].mxu0 }
 0x137   :  { %v1808_v2 = vpop.f32.mrb[8].mxu1  ;;  %v1787_v3 = vpop.f32.mrb[9].mxu0 }
 0x138   :  { %v1809_v4 = vpop.f32.mrb[9].mxu1  ;;  %v1788_v5 = vadd.f32 %v1787_v3, %v1786_v1  ;;  %v1789_v7 = vpop.f32.mrb[10].mxu0 }
 0x139   :  { %v1810_v6 = vadd.f32 %v1809_v4, %v1808_v2  ;;  %v1811_v8 = vpop.f32.mrb[10].mxu1  ;;  %v1790_v9 = vpop.f32.mrb[11].mxu0 }
 0x13a   :  { %v1812_v10 = vpop.f32.mrb[11].mxu1  ;;  %v1350_v11 = vadd.f32 %v1788_v5, %v1309_v62  ;;  %v1791_v12 = vadd.f32 %v1790_v9, %v1789_v7 }
 0x13b   :  { %v1813_v13 = vadd.f32 %v1812_v10, %v1811_v8 }
 0x13c   :  { %v1391_v14 = vadd.f32 %v1810_v6, %v1350_v11  ;;  %v1353_v15 = vadd.f32 %v1791_v12, %v1312_v0 }
 0x13e   :  { %v1394_v16 = vadd.f32 %v1813_v13, %v1353_v15 }
 0x156   :  { %v1830_v17 = vpop.f32.mrb[12].mxu0 }
 0x157   :  { %v1852_v18 = vpop.f32.mrb[12].mxu1  ;;  %v1831_v19 = vpop.f32.mrb[13].mxu0 }
 0x158   :  { %v1832_v20 = vadd.f32 %v1831_v19, %v1830_v17  ;;  %v1853_v21 = vpop.f32.mrb[13].mxu1  ;;  %v1833_v22 = vpop.f32.mrb[14].mxu0 }
 0x159   :  { %v1854_v23 = vadd.f32 %v1853_v21, %v1852_v18  ;;  %v1855_v24 = vpop.f32.mrb[14].mxu1  ;;  %v1834_v25 = vpop.f32.mrb[15].mxu0 }
 0x15a   :  { %v1432_v26 = vadd.f32 %v1832_v20, %v1391_v14  ;;  %v1835_v27 = vadd.f32 %v1834_v25, %v1833_v22  ;;  %v1856_v28 = vpop.f32.mrb[15].mxu1 }
 0x15b   :  { %v1857_v29 = vadd.f32 %v1856_v28, %v1855_v24 }
 0x15c   :  { %v1473_v31 = vadd.f32 %v1854_v23, %v1432_v26  ;;  %v1435_v32 = vadd.f32 %v1835_v27, %v1394_v16 }
 0x15e   :  { %v1476_v34 = vadd.f32 %v1857_v29, %v1435_v32  ;;  %v1481_v35 = vadd.f32 %v1479_v30, %v1473_v31 }
 0x160   :  { %v1484_v36 = vsel %vm1483_vm0, %v1481_v35, 0.0  ;;  %v1482_v37 = vadd.f32 %v1480_v33, %v1476_v34 }
 0x161   :  { %1485 = vadd.xlane.f32.xlu0 %v1484_v36 }
 0x162   :  { %v1487_v38 = vsel %vm1483_vm0, %v1482_v37, 0.0 }
 0x165   :  { %1488 = vadd.xlane.f32.xlu0 %v1487_v38 }
 0x1ee   :  { %v1486_v39 = vpop.xlane.xlu0 %1485 }
 0x1ef   :  { %v1491_v40 = vmul.f32 0.03125, %v1486_v39 }
 0x1f1   :  { %v1493_v41 = vsub.f32 %v1481_v35, %v1491_v40 }
 0x1f2   :  { %v1489_v42 = vpop.xlane.xlu0 %1488 }
 0x1f3   :  { %v1492_v43 = vmul.f32 0.03125, %v1489_v42  ;;  %v1495_v44 = vmul.f32 %v1493_v41, %v1493_v41 }
 0x1f5   :  { %v1494_v45 = vsub.f32 %v1482_v37, %v1492_v43  ;;  %v1497_v46 = vsel %vm1483_vm0, %v1495_v44, 0.0 }
 0x1f6   :  { %1498 = vadd.xlane.f32.xlu1 %v1497_v46 }
 0x1f7   :  { %v1496_v47 = vmul.f32 %v1494_v45, %v1494_v45 }
 0x1f9   :  { %v1500_v48 = vsel %vm1483_vm0, %v1496_v47, 0.0 }
 0x1fa   :  { %1501 = vadd.xlane.f32.xlu1 %v1500_v48 }
 0x283   :  { %v1499_v49 = vpop.xlane.xlu1 %1498 }
 0x284   :  { %v1503_v50 = vmul.f32 0.03125, %v1499_v49 }
 0x286   :  { %v1505_v51 = vadd.f32 1e-05, %v1503_v50 }
 0x287   :  { %v1502_v52 = vpop.xlane.xlu1 %1501 }
 0x288   :  { %1986 = vrsqrt.f32 %v1505_v51  ;;  %v1504_v53 = vmul.f32 0.03125, %v1502_v52 }
 0x28a   :  { %v1506_v54 = vadd.f32 1e-05, %v1504_v53 }
 0x28c   :  { %1988 = vrsqrt.f32 %v1506_v54 }
 0x292   :  { %v1987_v55 = vpop.eup %1986 }
 0x293   :  { %v1509_v57 = vmul.f32 %v1987_v55, %v1493_v41 }
 0x295   :  { %v1518_v59 = vmul.f32 %v1680_v56, %v1509_v57 }
 0x296   :  { %v1989_v60 = vpop.eup %1988 }
 0x297   :  { %v1527_v61 = vadd.f32 %v1681_v58, %v1518_v59  ;;  %v1510_v62 = vmul.f32 %v1989_v60, %v1494_v45 }
 0x299   :  { %1529 = vst.msk [vmem:[%s2490_s6] sm:$0xff] %vm1483_vm0, %v1527_v61  ;;  %v1519_v63 = vmul.f32 %v1680_v56, %v1510_v62 }
 0x29b   :  { %v1528_v0 = vadd.f32 %v1681_v58, %v1519_v63 }
 0x29d   :  { %1530 = vst.msk [vmem:[%s2490_s6 + $0x8] sm:$0xff] %vm1483_vm0, %v1528_v0 }

</bundles_post_ra>
